<compile_context>
chip_gen: v5e
topology: v5e:2x2
jax: 0.10.0
libtpu: 0.0.40
codegen_flags: <defaults>
</compile_context>

<pallas_src>
import jax
import jax.numpy as jnp
from jax import lax
from jax.experimental import pallas as pl
from jax.experimental.pallas import tpu as pltpu

EPS = 1e-5
_VMEM_LIMIT = 48 * 1024 * 1024   # below v7x's 64 MiB physical, above default scoped


def _cparams(dims):
    return pltpu.CompilerParams(dimension_semantics=dims,
                                vmem_limit_bytes=_VMEM_LIMIT)


def _row_tile(m, max_rows=512):
    """Largest multiple-of-8 divisor of m that is <= max_rows (else m itself)."""
    t = min(m, max_rows)
    t -= t % 8
    while t >= 8:
        if m % t == 0:
            return t
        t -= 8
    # TODO(synk): m not a multiple of 8 falls back to a single full-extent block
    # (legal, but pad rows instead if m is huge and not 8-divisible).
    return m


def _pick_band(H, W, target_rows=512):
    """Rows per conv2 band: divides H, hb*W <= target_rows, hb*W % 8 == 0."""
    for hb in range(H, 0, -1):
        if H % hb == 0 and hb * W <= target_rows and (hb * W) % 8 == 0:
            return hb
    # TODO(synk): H*W not a multiple of 8 (e.g. 7x7 with N>1) needs row padding.
    return H


def _bn_affine(s, ss, gamma, beta, count):
    """Finalize per-channel sum / sumsq into BN scale/shift (tiny XLA ops)."""
    # TODO(synk): E[x^2]-mean^2 can cancel for large-mean channels; switch to a
    # shifted/Welford accumulation if needed at real activation scales.
    mean = s / count
    var = ss / count - mean * mean
    g = gamma.reshape(1, -1).astype(jnp.float32)
    b = beta.reshape(1, -1).astype(jnp.float32)
    scale = g * lax.rsqrt(var + EPS)
    shift = b - mean * scale
    return scale, shift


# --------------------------- kernel A: channel stats ------------------------ #

def _stats_kernel(x_ref, sum_ref, sq_ref):
    @pl.when(pl.program_id(0) == 0)
    def _():
        sum_ref[...] = jnp.zeros_like(sum_ref)
        sq_ref[...] = jnp.zeros_like(sq_ref)
    x = x_ref[...].astype(jnp.float32)
    sum_ref[...] += jnp.sum(x, axis=0, keepdims=True)
    sq_ref[...] += jnp.sum(x * x, axis=0, keepdims=True)


def channel_stats(x2d, block_rows=512):
    m, c = x2d.shape
    tm = _row_tile(m, block_rows)
    s, ss = pl.pallas_call(
        _stats_kernel,
        grid=(m // tm,),
        in_specs=[pl.BlockSpec((tm, c), lambda i: (i, 0))],
        out_specs=[pl.BlockSpec((1, c), lambda i: (0, 0)),
                   pl.BlockSpec((1, c), lambda i: (0, 0))],
        out_shape=[jax.ShapeDtypeStruct((1, c), jnp.float32),
                   jax.ShapeDtypeStruct((1, c), jnp.float32)],
        compiler_params=_cparams(("arbitrary",)),
    )(x2d)
    return s, ss


# --------------- kernel B: bn1+relu+conv1 (+shortcut) + bn2 stats ----------- #

def _make_conv1_kernel(has_shortcut, matmul_dtype):
    if has_shortcut:
        def kernel(x_ref, sc1_ref, sh1_ref, scs_ref, shs_ref, w1_ref, ws_ref,
                   out1_ref, sc_ref, sum_ref, sq_ref):
            @pl.when(pl.program_id(0) == 0)
            def _():
                sum_ref[...] = jnp.zeros_like(sum_ref)
                sq_ref[...] = jnp.zeros_like(sq_ref)
            x = x_ref[...].astype(jnp.float32)
            a1 = jnp.maximum(x * sc1_ref[...] + sh1_ref[...], 0.0)
            o1 = jnp.dot(a1.astype(matmul_dtype), w1_ref[...],
                         preferred_element_type=jnp.float32)
            out1_ref[...] = o1.astype(out1_ref.dtype)
            sum_ref[...] += jnp.sum(o1, axis=0, keepdims=True)
            sq_ref[...] += jnp.sum(o1 * o1, axis=0, keepdims=True)
            # Shortcut shares the x tile already in VMEM (x stats reused).
            a_s = jnp.maximum(x * scs_ref[...] + shs_ref[...], 0.0)
            sc_ref[...] = jnp.dot(a_s.astype(matmul_dtype), ws_ref[...],
                                  preferred_element_type=jnp.float32
                                  ).astype(sc_ref.dtype)
    else:
        def kernel(x_ref, sc1_ref, sh1_ref, w1_ref, out1_ref, sum_ref, sq_ref):
            @pl.when(pl.program_id(0) == 0)
            def _():
                sum_ref[...] = jnp.zeros_like(sum_ref)
                sq_ref[...] = jnp.zeros_like(sq_ref)
            x = x_ref[...].astype(jnp.float32)
            a1 = jnp.maximum(x * sc1_ref[...] + sh1_ref[...], 0.0)
            o1 = jnp.dot(a1.astype(matmul_dtype), w1_ref[...],
                         preferred_element_type=jnp.float32)
            out1_ref[...] = o1.astype(out1_ref.dtype)
            sum_ref[...] += jnp.sum(o1, axis=0, keepdims=True)
            sq_ref[...] += jnp.sum(o1 * o1, axis=0, keepdims=True)
    return kernel


def conv1_stage(x2d, scale1, shift1, w1, shortcut, block_rows, matmul_dtype,
                store_dtype):
    m, cin = x2d.shape
    planes = w1.shape[1]
    tm = _row_tile(m, block_rows)
    grid = (m // tm,)
    vec = pl.BlockSpec((1, cin), lambda i: (0, 0))
    if shortcut is not None:
        scale_s, shift_s, ws = shortcut
        cexp = ws.shape[1]
        # TODO(synk): v7x — weight BlockSpecs here could use pl.Buffered(1).
        return pl.pallas_call(
            _make_conv1_kernel(True, matmul_dtype),
            grid=grid,
            in_specs=[pl.BlockSpec((tm, cin), lambda i: (i, 0)),
                      vec, vec, vec, vec,
                      pl.BlockSpec((cin, planes), lambda i: (0, 0)),
                      pl.BlockSpec((cin, cexp), lambda i: (0, 0))],
            out_specs=[pl.BlockSpec((tm, planes), lambda i: (i, 0)),
                       pl.BlockSpec((tm, cexp), lambda i: (i, 0)),
                       pl.BlockSpec((1, planes), lambda i: (0, 0)),
                       pl.BlockSpec((1, planes), lambda i: (0, 0))],
            out_shape=[jax.ShapeDtypeStruct((m, planes), store_dtype),
                       jax.ShapeDtypeStruct((m, cexp), store_dtype),
                       jax.ShapeDtypeStruct((1, planes), jnp.float32),
                       jax.ShapeDtypeStruct((1, planes), jnp.float32)],
            compiler_params=_cparams(("arbitrary",)),
        )(x2d, scale1, shift1, scale_s, shift_s,
          w1.astype(matmul_dtype), ws.astype(matmul_dtype))
    else:
        out1, s1, ss1 = pl.pallas_call(
            _make_conv1_kernel(False, matmul_dtype),
            grid=grid,
            in_specs=[pl.BlockSpec((tm, cin), lambda i: (i, 0)),
                      vec, vec,
                      pl.BlockSpec((cin, planes), lambda i: (0, 0))],
            out_specs=[pl.BlockSpec((tm, planes), lambda i: (i, 0)),
                       pl.BlockSpec((1, planes), lambda i: (0, 0)),
                       pl.BlockSpec((1, planes), lambda i: (0, 0))],
            out_shape=[jax.ShapeDtypeStruct((m, planes), store_dtype),
                       jax.ShapeDtypeStruct((1, planes), jnp.float32),
                       jax.ShapeDtypeStruct((1, planes), jnp.float32)],
            compiler_params=_cparams(("arbitrary",)),
        )(x2d, scale1, shift1, w1.astype(matmul_dtype))
        return out1, None, s1, ss1


# ---------------- kernel C: bn2+relu + 3x3 conv + bn3 stats ----------------- #

def _make_conv2_kernel(H, W, C, hb, matmul_dtype, emit_stats):
    HW = H * W
    BW = hb * W

    def kernel(x_ref, sc2_ref, sh2_ref, w2_ref, out_ref, *rest):
        if emit_stats:
            sum_ref, sq_ref, pad_ref, taps_ref = rest
        else:
            pad_ref, taps_ref = rest
        n = pl.program_id(0)
        b = pl.program_id(1)

        @pl.when((n == 0) & (b == 0))
        def _():
            pad_ref[...] = jnp.zeros_like(pad_ref)   # borders stay zero forever
            if emit_stats:
                sum_ref[...] = jnp.zeros_like(sum_ref)
                sq_ref[...] = jnp.zeros_like(sq_ref)

        @pl.when(b == 0)
        def _():
            # Fused bn2 + relu for the whole image, written once into the
            # padded VMEM slab (already in matmul dtype).
            x = x_ref[...].astype(jnp.float32)
            a2 = jnp.maximum(x * sc2_ref[...] + sh2_ref[...], 0.0)
            pad_ref[1 + W:1 + W + HW, :] = a2.astype(pad_ref.dtype)

        # In-kernel left/right column masks (no HBM mask inputs).
        col = lax.broadcasted_iota(jnp.int32, (BW, 1), 0) % W
        mask_l = col > 0
        mask_r = col < (W - 1)

        # Build the (BW, 9*C) tap matrix for this band from shifted windows of
        # the padded slab (H padding = zero rows; W wrap handled by masks).
        base = pl.multiple_of(b * BW, 8)
        for kh in range(3):
            for kw in range(3):
                t = kh * 3 + kw
                win = pad_ref[pl.ds(base + kh * W + kw, BW), :]
                if kw == 0:
                    win = jnp.where(mask_l, win, jnp.zeros_like(win))
                elif kw == 2:
                    win = jnp.where(mask_r, win, jnp.zeros_like(win))
                taps_ref[:, t * C:(t + 1) * C] = win

        # Single MXU contraction with K = 9*C.
        o2 = jnp.dot(taps_ref[...], w2_ref[...],
                     preferred_element_type=jnp.float32)
        out_ref[...] = o2.astype(out_ref.dtype)
        if emit_stats:
            sum_ref[...] += jnp.sum(o2, axis=0, keepdims=True)
            sq_ref[...] += jnp.sum(o2 * o2, axis=0, keepdims=True)

    return kernel


def conv2_stage(out1_2d, scale2, shift2, w2_flat, N, H, W, hb, matmul_dtype,
                store_dtype, emit_stats=True):
    M, C = out1_2d.shape
    Cout = w2_flat.shape[1]
    HW = H * W
    BW = hb * W
    NB = H // hb

    out_specs = [pl.BlockSpec((BW, Cout), lambda n, b: (n * NB + b, 0))]
    out_shape = [jax.ShapeDtypeStruct((M, Cout), store_dtype)]
    if emit_stats:
        out_specs += [pl.BlockSpec((1, Cout), lambda n, b: (0, 0)),
                      pl.BlockSpec((1, Cout), lambda n, b: (0, 0))]
        out_shape += [jax.ShapeDtypeStruct((1, Cout), jnp.float32),
                      jax.ShapeDtypeStruct((1, Cout), jnp.float32)]

    res = pl.pallas_call(
        _make_conv2_kernel(H, W, C, hb, matmul_dtype, emit_stats),
        grid=(N, NB),
        in_specs=[pl.BlockSpec((HW, C), lambda n, b: (n, 0)),     # full image, resident across bands
                  pl.BlockSpec((1, C), lambda n, b: (0, 0)),
                  pl.BlockSpec((1, C), lambda n, b: (0, 0)),
                  pl.BlockSpec((9 * C, Cout), lambda n, b: (0, 0))],
        out_specs=out_specs,
        out_shape=out_shape,
        scratch_shapes=[pltpu.VMEM(((H + 2) * W + 2, C), matmul_dtype),
                        pltpu.VMEM((BW, 9 * C), matmul_dtype)],
        compiler_params=_cparams(("arbitrary", "arbitrary")),
    )(out1_2d, scale2, shift2, w2_flat.astype(matmul_dtype))

    if emit_stats:
        out2, s2, ss2 = res
        return out2, s2, ss2
    return res[0], None, None


# ---------------- kernel D: bn3+relu + conv3 + residual add ----------------- #

def _make_conv3_kernel(matmul_dtype):
    def kernel(x_ref, sc_ref, sh_ref, w_ref, res_ref, o_ref):
        x = x_ref[...].astype(jnp.float32)
        a = jnp.maximum(x * sc_ref[...] + sh_ref[...], 0.0)
        o = jnp.dot(a.astype(matmul_dtype), w_ref[...],
                    preferred_element_type=jnp.float32)
        o_ref[...] = (o + res_ref[...].astype(jnp.float32)).astype(o_ref.dtype)
    return kernel


def conv3_stage(out2_2d, scale3, shift3, w3, res, block_rows, matmul_dtype):
    m, cmid = out2_2d.shape
    cexp = w3.shape[1]
    tm = _row_tile(m, block_rows)
    return pl.pallas_call(
        _make_conv3_kernel(matmul_dtype),
        grid=(m // tm,),
        in_specs=[pl.BlockSpec((tm, cmid), lambda i: (i, 0)),
                  pl.BlockSpec((1, cmid), lambda i: (0, 0)),
                  pl.BlockSpec((1, cmid), lambda i: (0, 0)),
                  pl.BlockSpec((cmid, cexp), lambda i: (0, 0)),
                  pl.BlockSpec((tm, cexp), lambda i: (i, 0))],
        out_specs=pl.BlockSpec((tm, cexp), lambda i: (i, 0)),
        out_shape=jax.ShapeDtypeStruct((m, cexp), jnp.float32),
        compiler_params=_cparams(("parallel",)),
    )(out2_2d, scale3, shift3, w3.astype(matmul_dtype), res)


# ------------------------------ Bottleneck fwd ------------------------------ #

def bottleneck_forward(x_nchw, p, stride=1, block_rows=512, conv2_band_rows=512,
                       matmul_dtype=jnp.bfloat16):
    N, cin, H, W = x_nchw.shape
    planes = p["conv1_w"].shape[0]
    cexp = p["conv3_w"].shape[0]
    has_shortcut = (stride != 1) or (cin != cexp)
    M = N * H * W
    store_dtype = matmul_dtype          # inter-stage activations in matmul dtype
    hb = _pick_band(H, W, conv2_band_rows)

    # TODO(synk): in a full network keep NHWC end-to-end instead of transposing
    # NCHW<->NHWC around every block.
    x2d = jnp.transpose(x_nchw, (0, 2, 3, 1)).astype(jnp.float32).reshape(M, cin)

    # -- pass over x: per-channel stats shared by bn1 and the shortcut BN --
    sx, sxx = channel_stats(x2d, block_rows)
    scale1, shift1 = _bn_affine(sx, sxx, p["bn1_g"], p["bn1_b"], M)

    # -- fused bn1+relu+conv1 (+ shortcut bn+relu+1x1) + bn2 partial stats --
    w1 = p["conv1_w"][:, :, 0, 0].T                               # (cin, planes)
    if has_shortcut:
        scale_s, shift_s = _bn_affine(sx, sxx, p["bns_g"], p["bns_b"], M)
        ws = p["convs_w"][:, :, 0, 0].T                           # (cin, cexp)
        out1, sc_full, s1, ss1 = conv1_stage(
            x2d, scale1, shift1, w1, (scale_s, shift_s, ws),
            block_rows, matmul_dtype, store_dtype)
    else:
        out1, _, s1, ss1 = conv1_stage(x2d, scale1, shift1, w1, None,
                                       block_rows, matmul_dtype, store_dtype)
        sc_full = x2d                                             # identity
    scale2, shift2 = _bn_affine(s1, ss1, p["bn2_g"], p["bn2_b"], M)

    # -- fused bn2+relu+3x3 conv (band-tiled) + bn3 partial stats --
    w2 = jnp.transpose(p["conv2_w"], (2, 3, 1, 0)).reshape(9 * planes, planes)
    out2_full, s2, ss2 = conv2_stage(out1, scale2, shift2, w2, N, H, W, hb,
                                     matmul_dtype, store_dtype,
                                     emit_stats=(stride == 1))

    if stride == 1:
        Ho, Wo, M2 = H, W, M
        out2 = out2_full
        res = sc_full
        scale3, shift3 = _bn_affine(s2, ss2, p["bn3_g"], p["bn3_b"], M2)
    else:
        # TODO(synk): stride>1 computes conv2 / shortcut at full resolution and
        # subsamples; a strided index_map would avoid the discarded MXU work.
        Ho = (H - 1) // stride + 1
        Wo = (W - 1) // stride + 1
        M2 = N * Ho * Wo
        out2 = out2_full.reshape(N, H, W, planes)[:, ::stride, ::stride, :]
        out2 = out2.reshape(M2, planes)
        res = sc_full.reshape(N, H, W, cexp)[:, ::stride, ::stride, :]
        res = res.reshape(M2, cexp)
        s2b, ss2b = channel_stats(out2, block_rows)               # strided stats
        scale3, shift3 = _bn_affine(s2b, ss2b, p["bn3_g"], p["bn3_b"], M2)

    # -- fused bn3+relu+conv3 + residual add --
    w3 = p["conv3_w"][:, :, 0, 0].T                               # (planes, cexp)
    out3 = conv3_stage(out2, scale3, shift3, w3, res, block_rows, matmul_dtype)

    out = out3.reshape(N, Ho, Wo, cexp)
    return jnp.transpose(out, (0, 3, 1, 2))                       # back to NCHW


# --------------------------- pure-JAX reference ----------------------------- #

def _bn_ref(x, g, b):
    mean = jnp.mean(x, axis=(0, 2, 3), keepdims=True)
    var = jnp.mean((x - mean) ** 2, axis=(0, 2, 3), keepdims=True)
    return ((x - mean) / jnp.sqrt(var + EPS) * g.reshape(1, -1, 1, 1)
            + b.reshape(1, -1, 1, 1))


def _conv_ref(x, w, stride=1, padding=0):
    return lax.conv_general_dilated(x, w, (stride, stride),
                                    [(padding, padding)] * 2,
                                    dimension_numbers=("NCHW", "OIHW", "NCHW"))


def bottleneck_ref(x, p, stride=1):
    out = jax.nn.relu(_bn_ref(x, p["bn1_g"], p["bn1_b"]))
    out = _conv_ref(out, p["conv1_w"])
    out = jax.nn.relu(_bn_ref(out, p["bn2_g"], p["bn2_b"]))
    out = _conv_ref(out, p["conv2_w"], stride=stride, padding=1)
    out = jax.nn.relu(_bn_ref(out, p["bn3_g"], p["bn3_b"]))
    out = _conv_ref(out, p["conv3_w"])
    cexp = p["conv3_w"].shape[0]
    if stride != 1 or x.shape[1] != cexp:
        sc = jax.nn.relu(_bn_ref(x, p["bns_g"], p["bns_b"]))
        sc = _conv_ref(sc, p["convs_w"], stride=stride)
    else:
        sc = x
    return out + sc


# ---------------------------------- main ------------------------------------ #

if __name__ == "__main__":
    key = jax.random.PRNGKey(0)
    N, in_planes, H, W = 2, 4, 16, 16
    planes, stride = 4, 1
    cexp = 4 * planes

    ks = jax.random.split(key, 13)
    rnd = lambda k, shp, s=0.2: jax.random.normal(k, shp, jnp.float32) * s
    # TODO(synk): BatchNorm running-stat updates (training side effect) are not
    # modeled; they do not affect the forward output.
    params = {
        "bn1_g": 1.0 + rnd(ks[0], (in_planes,), 0.1),
        "bn1_b": rnd(ks[1], (in_planes,), 0.1),
        "conv1_w": rnd(ks[2], (planes, in_planes, 1, 1)),
        "bn2_g": 1.0 + rnd(ks[3], (planes,), 0.1),
        "bn2_b": rnd(ks[4], (planes,), 0.1),
        "conv2_w": rnd(ks[5], (planes, planes, 3, 3)),
        "bn3_g": 1.0 + rnd(ks[6], (planes,), 0.1),
        "bn3_b": rnd(ks[7], (planes,), 0.1),
        "conv3_w": rnd(ks[8], (cexp, planes, 1, 1)),
        "bns_g": 1.0 + rnd(ks[9], (in_planes,), 0.1),
        "bns_b": rnd(ks[10], (in_planes,), 0.1),
        "convs_w": rnd(ks[11], (cexp, in_planes, 1, 1)),
    }
    x = jax.random.normal(ks[12], (N, in_planes, H, W), jnp.float32)

    fwd = jax.jit(bottleneck_forward,
                  static_argnames=("stride", "block_rows", "conv2_band_rows",
                                   "matmul_dtype"))
    ref = bottleneck_ref(x, params, stride=stride)

    # 1) f32 matmul path: tight numerical check (band logic exercised, NB=2).
    out_f32 = jax.block_until_ready(
        fwd(x, params, stride=stride, conv2_band_rows=128,
            matmul_dtype=jnp.float32))
    assert out_f32.shape == ref.shape == (N, cexp, H, W), (out_f32.shape, ref.shape)
    err_f32 = float(jnp.max(jnp.abs(out_f32 - ref)))
    if err_f32 > 1e-3:
        raise AssertionError(f"f32 Pallas mismatch vs reference: max|err|={err_f32}")

    # 2) bf16 matmul / bf16 inter-stage path (the perf default): looser
    #    tolerance for bf16 MXU-input rounding through 3 matmuls + 3 BNs.
    out_bf16 = jax.block_until_ready(
        fwd(x, params, stride=stride, conv2_band_rows=128,
            matmul_dtype=jnp.bfloat16))
    err_bf16 = float(jnp.max(jnp.abs(out_bf16 - ref)))
    tol_bf16 = 6e-2 * max(1.0, float(jnp.max(jnp.abs(ref))))
    if err_bf16 > tol_bf16:
        raise AssertionError(
            f"bf16 Pallas mismatch vs reference: max|err|={err_bf16} > {tol_bf16}")

    print("KERNEL_OK")
</pallas_src>

<mosaic_0001>
module attributes {stable_mosaic.version = 11 : i64} {
  func.func @_stats_kernel(%arg0: i32, %arg1: memref<512x4xf32, #tpu.memory_space<vmem>>, %arg2: memref<1x4xf32, #tpu.memory_space<vmem>>, %arg3: memref<1x4xf32, #tpu.memory_space<vmem>>) attributes {dimension_semantics = [#tpu.dimension_semantics<arbitrary>], iteration_bounds = array<i64: 1>, scalar_prefetch = 0 : i64, scratch_operands = 0 : i64, tpu.core_type = #tpu.core_type<tc>, window_params = [{transform_indices = @transform_0, window_bounds = array<i64: 512, 4>}, {pipeline_mode = #tpu.pipeline_mode<synchronous>, transform_indices = @transform_1, window_bounds = array<i64: 1, 4>}, {pipeline_mode = #tpu.pipeline_mode<synchronous>, transform_indices = @transform_2, window_bounds = array<i64: 1, 4>}]} {
    %c0_i32 = arith.constant 0 : i32
    %0 = arith.cmpi eq, %arg0, %c0_i32 : i32
    %1 = arith.extui %0 : i1 to i32
    %c0_i32_0 = arith.constant 0 : i32
    %2 = arith.cmpi ne, %1, %c0_i32_0 : i32
    scf.if %2 {
      %cst_11 = arith.constant 0.000000e+00 : f32
      %15 = vector.broadcast %cst_11 : f32 to vector<1x4xf32>
      %c0_12 = arith.constant 0 : index
      %c0_13 = arith.constant 0 : index
      %16 = vector.load %arg2[%c0_12, %c0_13] : memref<1x4xf32, #tpu.memory_space<vmem>>, vector<1x4xf32>
      tpu.vector_store %arg2[%c0_12, %c0_13], %15 {strides = array<i32>} : memref<1x4xf32, #tpu.memory_space<vmem>>, vector<1x4xf32>,
      %cst_14 = arith.constant 0.000000e+00 : f32
      %17 = vector.broadcast %cst_14 : f32 to vector<1x4xf32>
      %c0_15 = arith.constant 0 : index
      %c0_16 = arith.constant 0 : index
      %18 = vector.load %arg3[%c0_15, %c0_16] : memref<1x4xf32, #tpu.memory_space<vmem>>, vector<1x4xf32>
      tpu.vector_store %arg3[%c0_15, %c0_16], %17 {strides = array<i32>} : memref<1x4xf32, #tpu.memory_space<vmem>>, vector<1x4xf32>,
    } else {
    }
    %c0 = arith.constant 0 : index
    %c0_1 = arith.constant 0 : index
    %3 = vector.load %arg1[%c0, %c0_1] : memref<512x4xf32, #tpu.memory_space<vmem>>, vector<512x4xf32>
    %c0_2 = arith.constant 0 : index
    %c0_3 = arith.constant 0 : index
    %4 = vector.load %arg2[%c0_2, %c0_3] : memref<1x4xf32, #tpu.memory_space<vmem>>, vector<1x4xf32>
    %cst = arith.constant dense<0.000000e+00> : vector<4xf32>
    %5 = vector.multi_reduction <add>, %3, %cst [0] : vector<512x4xf32> to vector<4xf32>
    %6 = vector.shape_cast %5 : vector<4xf32> to vector<1x4xf32>
    %7 = arith.addf %4, %6 : vector<1x4xf32>
    %c0_4 = arith.constant 0 : index
    %c0_5 = arith.constant 0 : index
    %8 = vector.load %arg2[%c0_4, %c0_5] : memref<1x4xf32, #tpu.memory_space<vmem>>, vector<1x4xf32>
    tpu.vector_store %arg2[%c0_4, %c0_5], %7 {strides = array<i32>} : memref<1x4xf32, #tpu.memory_space<vmem>>, vector<1x4xf32>,
    %c0_6 = arith.constant 0 : index
    %c0_7 = arith.constant 0 : index
    %9 = vector.load %arg3[%c0_6, %c0_7] : memref<1x4xf32, #tpu.memory_space<vmem>>, vector<1x4xf32>
    %10 = arith.mulf %3, %3 : vector<512x4xf32>
    %cst_8 = arith.constant dense<0.000000e+00> : vector<4xf32>
    %11 = vector.multi_reduction <add>, %10, %cst_8 [0] : vector<512x4xf32> to vector<4xf32>
    %12 = vector.shape_cast %11 : vector<4xf32> to vector<1x4xf32>
    %13 = arith.addf %9, %12 : vector<1x4xf32>
    %c0_9 = arith.constant 0 : index
    %c0_10 = arith.constant 0 : index
    %14 = vector.load %arg3[%c0_9, %c0_10] : memref<1x4xf32, #tpu.memory_space<vmem>>, vector<1x4xf32>
    tpu.vector_store %arg3[%c0_9, %c0_10], %13 {strides = array<i32>} : memref<1x4xf32, #tpu.memory_space<vmem>>, vector<1x4xf32>,
    return
  }
  func.func @transform_0(%arg0: i32) -> (i32, i32) {
    %c0_i32 = arith.constant 0 : i32
    %c0_i32_0 = arith.constant 0 : i32
    return %arg0, %c0_i32 : i32, i32
  }
  func.func @transform_1(%arg0: i32) -> (i32, i32) {
    %c0_i32 = arith.constant 0 : i32
    %c0_i32_0 = arith.constant 0 : i32
    %c0_i32_1 = arith.constant 0 : i32
    return %c0_i32, %c0_i32_0 : i32, i32
  }
  func.func @transform_2(%arg0: i32) -> (i32, i32) {
    %c0_i32 = arith.constant 0 : i32
    %c0_i32_0 = arith.constant 0 : i32
    %c0_i32_1 = arith.constant 0 : i32
    return %c0_i32, %c0_i32_0 : i32, i32
  }
}

module attributes {stable_mosaic.version = 11 : i64} {
  func.func @kernel(%arg0: i32, %arg1: memref<512x4xf32, #tpu.memory_space<vmem>>, %arg2: memref<1x4xf32, #tpu.memory_space<vmem>>, %arg3: memref<1x4xf32, #tpu.memory_space<vmem>>, %arg4: memref<1x4xf32, #tpu.memory_space<vmem>>, %arg5: memref<1x4xf32, #tpu.memory_space<vmem>>, %arg6: memref<4x4xf32, #tpu.memory_space<vmem>>, %arg7: memref<4x16xf32, #tpu.memory_space<vmem>>, %arg8: memref<512x4xf32, #tpu.memory_space<vmem>>, %arg9: memref<512x16xf32, #tpu.memory_space<vmem>>, %arg10: memref<1x4xf32, #tpu.memory_space<vmem>>, %arg11: memref<1x4xf32, #tpu.memory_space<vmem>>) attributes {dimension_semantics = [#tpu.dimension_semantics<arbitrary>], iteration_bounds = array<i64: 1>, scalar_prefetch = 0 : i64, scratch_operands = 0 : i64, tpu.core_type = #tpu.core_type<tc>, window_params = [{transform_indices = @transform_0, window_bounds = array<i64: 512, 4>}, {pipeline_mode = #tpu.pipeline_mode<synchronous>, transform_indices = @transform_1, window_bounds = array<i64: 1, 4>}, {pipeline_mode = #tpu.pipeline_mode<synchronous>, transform_indices = @transform_2, window_bounds = array<i64: 1, 4>}, {pipeline_mode = #tpu.pipeline_mode<synchronous>, transform_indices = @transform_3, window_bounds = array<i64: 1, 4>}, {pipeline_mode = #tpu.pipeline_mode<synchronous>, transform_indices = @transform_4, window_bounds = array<i64: 1, 4>}, {pipeline_mode = #tpu.pipeline_mode<synchronous>, transform_indices = @transform_5, window_bounds = array<i64: 4, 4>}, {pipeline_mode = #tpu.pipeline_mode<synchronous>, transform_indices = @transform_6, window_bounds = array<i64: 4, 16>}, {transform_indices = @transform_7, window_bounds = array<i64: 512, 4>}, {transform_indices = @transform_8, window_bounds = array<i64: 512, 16>}, {pipeline_mode = #tpu.pipeline_mode<synchronous>, transform_indices = @transform_9, window_bounds = array<i64: 1, 4>}, {pipeline_mode = #tpu.pipeline_mode<synchronous>, transform_indices = @transform_10, window_bounds = array<i64: 1, 4>}]} {
    %c0_i32 = arith.constant 0 : i32
    %0 = arith.cmpi eq, %arg0, %c0_i32 : i32
    %1 = arith.extui %0 : i1 to i32
    %c0_i32_0 = arith.constant 0 : i32
    %2 = arith.cmpi ne, %1, %c0_i32_0 : i32
    scf.if %2 {
      %cst_31 = arith.constant 0.000000e+00 : f32
      %37 = vector.broadcast %cst_31 : f32 to vector<1x4xf32>
      %c0_32 = arith.constant 0 : index
      %c0_33 = arith.constant 0 : index
      %38 = vector.load %arg10[%c0_32, %c0_33] : memref<1x4xf32, #tpu.memory_space<vmem>>, vector<1x4xf32>
      tpu.vector_store %arg10[%c0_32, %c0_33], %37 {strides = array<i32>} : memref<1x4xf32, #tpu.memory_space<vmem>>, vector<1x4xf32>,
      %cst_34 = arith.constant 0.000000e+00 : f32
      %39 = vector.broadcast %cst_34 : f32 to vector<1x4xf32>
      %c0_35 = arith.constant 0 : index
      %c0_36 = arith.constant 0 : index
      %40 = vector.load %arg11[%c0_35, %c0_36] : memref<1x4xf32, #tpu.memory_space<vmem>>, vector<1x4xf32>
      tpu.vector_store %arg11[%c0_35, %c0_36], %39 {strides = array<i32>} : memref<1x4xf32, #tpu.memory_space<vmem>>, vector<1x4xf32>,
    } else {
    }
    %c0 = arith.constant 0 : index
    %c0_1 = arith.constant 0 : index
    %3 = vector.load %arg1[%c0, %c0_1] : memref<512x4xf32, #tpu.memory_space<vmem>>, vector<512x4xf32>
    %c0_2 = arith.constant 0 : index
    %c0_3 = arith.constant 0 : index
    %4 = vector.load %arg2[%c0_2, %c0_3] : memref<1x4xf32, #tpu.memory_space<vmem>>, vector<1x4xf32>
    %5 = vector.broadcast %4 : vector<1x4xf32> to vector<512x4xf32>
    %6 = arith.mulf %3, %5 : vector<512x4xf32>
    %c0_4 = arith.constant 0 : index
    %c0_5 = arith.constant 0 : index
    %7 = vector.load %arg3[%c0_4, %c0_5] : memref<1x4xf32, #tpu.memory_space<vmem>>, vector<1x4xf32>
    %8 = vector.broadcast %7 : vector<1x4xf32> to vector<512x4xf32>
    %9 = arith.addf %6, %8 : vector<512x4xf32>
    %cst = arith.constant 0.000000e+00 : f32
    %10 = vector.broadcast %cst : f32 to vector<512x4xf32>
    %11 = arith.maximumf %9, %10 : vector<512x4xf32>
    %c0_6 = arith.constant 0 : index
    %c0_7 = arith.constant 0 : index
    %12 = vector.load %arg6[%c0_6, %c0_7] : memref<4x4xf32, #tpu.memory_space<vmem>>, vector<4x4xf32>
    %cst_8 = arith.constant dense<0.000000e+00> : vector<512x4xf32>
    %13 = tpu.matmul %11, %12, %cst_8 {dimension_numbers = #tpu.dot_dimension_numbers<[1], [0], [0], [1], [0, 0, 1, 1], [], []>} : vector<512x4xf32>, vector<4x4xf32>, vector<512x4xf32> -> vector<512x4xf32>
    %c0_9 = arith.constant 0 : index
    %c0_10 = arith.constant 0 : index
    %14 = vector.load %arg8[%c0_9, %c0_10] : memref<512x4xf32, #tpu.memory_space<vmem>>, vector<512x4xf32>
    tpu.vector_store %arg8[%c0_9, %c0_10], %13 {strides = array<i32>} : memref<512x4xf32, #tpu.memory_space<vmem>>, vector<512x4xf32>,
    %c0_11 = arith.constant 0 : index
    %c0_12 = arith.constant 0 : index
    %15 = vector.load %arg10[%c0_11, %c0_12] : memref<1x4xf32, #tpu.memory_space<vmem>>, vector<1x4xf32>
    %cst_13 = arith.constant dense<0.000000e+00> : vector<4xf32>
    %16 = vector.multi_reduction <add>, %13, %cst_13 [0] : vector<512x4xf32> to vector<4xf32>
    %17 = vector.shape_cast %16 : vector<4xf32> to vector<1x4xf32>
    %18 = arith.addf %15, %17 : vector<1x4xf32>
    %c0_14 = arith.constant 0 : index
    %c0_15 = arith.constant 0 : index
    %19 = vector.load %arg10[%c0_14, %c0_15] : memref<1x4xf32, #tpu.memory_space<vmem>>, vector<1x4xf32>
    tpu.vector_store %arg10[%c0_14, %c0_15], %18 {strides = array<i32>} : memref<1x4xf32, #tpu.memory_space<vmem>>, vector<1x4xf32>,
    %c0_16 = arith.constant 0 : index
    %c0_17 = arith.constant 0 : index
    %20 = vector.load %arg11[%c0_16, %c0_17] : memref<1x4xf32, #tpu.memory_space<vmem>>, vector<1x4xf32>
    %21 = arith.mulf %13, %13 : vector<512x4xf32>
    %cst_18 = arith.constant dense<0.000000e+00> : vector<4xf32>
    %22 = vector.multi_reduction <add>, %21, %cst_18 [0] : vector<512x4xf32> to vector<4xf32>
    %23 = vector.shape_cast %22 : vector<4xf32> to vector<1x4xf32>
    %24 = arith.addf %20, %23 : vector<1x4xf32>
    %c0_19 = arith.constant 0 : index
    %c0_20 = arith.constant 0 : index
    %25 = vector.load %arg11[%c0_19, %c0_20] : memref<1x4xf32, #tpu.memory_space<vmem>>, vector<1x4xf32>
    tpu.vector_store %arg11[%c0_19, %c0_20], %24 {strides = array<i32>} : memref<1x4xf32, #tpu.memory_space<vmem>>, vector<1x4xf32>,
    %c0_21 = arith.constant 0 : index
    %c0_22 = arith.constant 0 : index
    %26 = vector.load %arg4[%c0_21, %c0_22] : memref<1x4xf32, #tpu.memory_space<vmem>>, vector<1x4xf32>
    %27 = vector.broadcast %26 : vector<1x4xf32> to vector<512x4xf32>
    %28 = arith.mulf %3, %27 : vector<512x4xf32>
    %c0_23 = arith.constant 0 : index
    %c0_24 = arith.constant 0 : index
    %29 = vector.load %arg5[%c0_23, %c0_24] : memref<1x4xf32, #tpu.memory_space<vmem>>, vector<1x4xf32>
    %30 = vector.broadcast %29 : vector<1x4xf32> to vector<512x4xf32>
    %31 = arith.addf %28, %30 : vector<512x4xf32>
    %cst_25 = arith.constant 0.000000e+00 : f32
    %32 = vector.broadcast %cst_25 : f32 to vector<512x4xf32>
    %33 = arith.maximumf %31, %32 : vector<512x4xf32>
    %c0_26 = arith.constant 0 : index
    %c0_27 = arith.constant 0 : index
    %34 = vector.load %arg7[%c0_26, %c0_27] : memref<4x16xf32, #tpu.memory_space<vmem>>, vector<4x16xf32>
    %cst_28 = arith.constant dense<0.000000e+00> : vector<512x16xf32>
    %35 = tpu.matmul %33, %34, %cst_28 {dimension_numbers = #tpu.dot_dimension_numbers<[1], [0], [0], [1], [0, 0, 1, 1], [], []>} : vector<512x4xf32>, vector<4x16xf32>, vector<512x16xf32> -> vector<512x16xf32>
    %c0_29 = arith.constant 0 : index
    %c0_30 = arith.constant 0 : index
    %36 = vector.load %arg9[%c0_29, %c0_30] : memref<512x16xf32, #tpu.memory_space<vmem>>, vector<512x16xf32>
    tpu.vector_store %arg9[%c0_29, %c0_30], %35 {strides = array<i32>} : memref<512x16xf32, #tpu.memory_space<vmem>>, vector<512x16xf32>,
    return
  }
  func.func @transform_0(%arg0: i32) -> (i32, i32) {
    %c0_i32 = arith.constant 0 : i32
    %c0_i32_0 = arith.constant 0 : i32
    return %arg0, %c0_i32 : i32, i32
  }
  func.func @transform_1(%arg0: i32) -> (i32, i32) {
    %c0_i32 = arith.constant 0 : i32
    %c0_i32_0 = arith.constant 0 : i32
    %c0_i32_1 = arith.constant 0 : i32
    return %c0_i32, %c0_i32_0 : i32, i32
  }
  func.func @transform_2(%arg0: i32) -> (i32, i32) {
    %c0_i32 = arith.constant 0 : i32
    %c0_i32_0 = arith.constant 0 : i32
    %c0_i32_1 = arith.constant 0 : i32
    return %c0_i32, %c0_i32_0 : i32, i32
  }
  func.func @transform_3(%arg0: i32) -> (i32, i32) {
    %c0_i32 = arith.constant 0 : i32
    %c0_i32_0 = arith.constant 0 : i32
    %c0_i32_1 = arith.constant 0 : i32
    return %c0_i32, %c0_i32_0 : i32, i32
  }
  func.func @transform_4(%arg0: i32) -> (i32, i32) {
    %c0_i32 = arith.constant 0 : i32
    %c0_i32_0 = arith.constant 0 : i32
    %c0_i32_1 = arith.constant 0 : i32
    return %c0_i32, %c0_i32_0 : i32, i32
  }
  func.func @transform_5(%arg0: i32) -> (i32, i32) {
    %c0_i32 = arith.constant 0 : i32
    %c0_i32_0 = arith.constant 0 : i32
    %c0_i32_1 = arith.constant 0 : i32
    return %c0_i32, %c0_i32_0 : i32, i32
  }
  func.func @transform_6(%arg0: i32) -> (i32, i32) {
    %c0_i32 = arith.constant 0 : i32
    %c0_i32_0 = arith.constant 0 : i32
    %c0_i32_1 = arith.constant 0 : i32
    return %c0_i32, %c0_i32_0 : i32, i32
  }
  func.func @transform_7(%arg0: i32) -> (i32, i32) {
    %c0_i32 = arith.constant 0 : i32
    %c0_i32_0 = arith.constant 0 : i32
    return %arg0, %c0_i32 : i32, i32
  }
  func.func @transform_8(%arg0: i32) -> (i32, i32) {
    %c0_i32 = arith.constant 0 : i32
    %c0_i32_0 = arith.constant 0 : i32
    return %arg0, %c0_i32 : i32, i32
  }
  func.func @transform_9(%arg0: i32) -> (i32, i32) {
    %c0_i32 = arith.constant 0 : i32
    %c0_i32_0 = arith.constant 0 : i32
    %c0_i32_1 = arith.constant 0 : i32
    return %c0_i32, %c0_i32_0 : i32, i32
  }
  func.func @transform_10(%arg0: i32) -> (i32, i32) {
    %c0_i32 = arith.constant 0 : i32
    %c0_i32_0 = arith.constant 0 : i32
    %c0_i32_1 = arith.constant 0 : i32
    return %c0_i32, %c0_i32_0 : i32, i32
  }
}

module attributes {stable_mosaic.version = 11 : i64} {
  func.func @kernel(%arg0: i32, %arg1: memref<512x4xf32, #tpu.memory_space<vmem>>, %arg2: memref<1x4xf32, #tpu.memory_space<vmem>>, %arg3: memref<1x4xf32, #tpu.memory_space<vmem>>, %arg4: memref<4x16xf32, #tpu.memory_space<vmem>>, %arg5: memref<512x16xf32, #tpu.memory_space<vmem>>, %arg6: memref<512x16xf32, #tpu.memory_space<vmem>>) attributes {dimension_semantics = [#tpu.dimension_semantics<parallel>], iteration_bounds = array<i64: 1>, scalar_prefetch = 0 : i64, scratch_operands = 0 : i64, tpu.core_type = #tpu.core_type<tc>, window_params = [{transform_indices = @transform_0, window_bounds = array<i64: 512, 4>}, {pipeline_mode = #tpu.pipeline_mode<synchronous>, transform_indices = @transform_1, window_bounds = array<i64: 1, 4>}, {pipeline_mode = #tpu.pipeline_mode<synchronous>, transform_indices = @transform_2, window_bounds = array<i64: 1, 4>}, {pipeline_mode = #tpu.pipeline_mode<synchronous>, transform_indices = @transform_3, window_bounds = array<i64: 4, 16>}, {transform_indices = @transform_4, window_bounds = array<i64: 512, 16>}, {transform_indices = @transform_5, window_bounds = array<i64: 512, 16>}]} {
    %c0 = arith.constant 0 : index
    %c0_0 = arith.constant 0 : index
    %0 = vector.load %arg1[%c0, %c0_0] : memref<512x4xf32, #tpu.memory_space<vmem>>, vector<512x4xf32>
    %c0_1 = arith.constant 0 : index
    %c0_2 = arith.constant 0 : index
    %1 = vector.load %arg2[%c0_1, %c0_2] : memref<1x4xf32, #tpu.memory_space<vmem>>, vector<1x4xf32>
    %2 = vector.broadcast %1 : vector<1x4xf32> to vector<512x4xf32>
    %3 = arith.mulf %0, %2 : vector<512x4xf32>
    %c0_3 = arith.constant 0 : index
    %c0_4 = arith.constant 0 : index
    %4 = vector.load %arg3[%c0_3, %c0_4] : memref<1x4xf32, #tpu.memory_space<vmem>>, vector<1x4xf32>
    %5 = vector.broadcast %4 : vector<1x4xf32> to vector<512x4xf32>
    %6 = arith.addf %3, %5 : vector<512x4xf32>
    %cst = arith.constant 0.000000e+00 : f32
    %7 = vector.broadcast %cst : f32 to vector<512x4xf32>
    %8 = arith.maximumf %6, %7 : vector<512x4xf32>
    %c0_5 = arith.constant 0 : index
    %c0_6 = arith.constant 0 : index
    %9 = vector.load %arg4[%c0_5, %c0_6] : memref<4x16xf32, #tpu.memory_space<vmem>>, vector<4x16xf32>
    %cst_7 = arith.constant dense<0.000000e+00> : vector<512x16xf32>
    %10 = tpu.matmul %8, %9, %cst_7 {dimension_numbers = #tpu.dot_dimension_numbers<[1], [0], [0], [1], [0, 0, 1, 1], [], []>} : vector<512x4xf32>, vector<4x16xf32>, vector<512x16xf32> -> vector<512x16xf32>
    %c0_8 = arith.constant 0 : index
    %c0_9 = arith.constant 0 : index
    %11 = vector.load %arg5[%c0_8, %c0_9] : memref<512x16xf32, #tpu.memory_space<vmem>>, vector<512x16xf32>
    %12 = arith.addf %10, %11 : vector<512x16xf32>
    %c0_10 = arith.constant 0 : index
    %c0_11 = arith.constant 0 : index
    %13 = vector.load %arg6[%c0_10, %c0_11] : memref<512x16xf32, #tpu.memory_space<vmem>>, vector<512x16xf32>
    tpu.vector_store %arg6[%c0_10, %c0_11], %12 {strides = array<i32>} : memref<512x16xf32, #tpu.memory_space<vmem>>, vector<512x16xf32>,
    return
  }
  func.func @transform_0(%arg0: i32) -> (i32, i32) {
    %c0_i32 = arith.constant 0 : i32
    %c0_i32_0 = arith.constant 0 : i32
    return %arg0, %c0_i32 : i32, i32
  }
  func.func @transform_1(%arg0: i32) -> (i32, i32) {
    %c0_i32 = arith.constant 0 : i32
    %c0_i32_0 = arith.constant 0 : i32
    %c0_i32_1 = arith.constant 0 : i32
    return %c0_i32, %c0_i32_0 : i32, i32
  }
  func.func @transform_2(%arg0: i32) -> (i32, i32) {
    %c0_i32 = arith.constant 0 : i32
    %c0_i32_0 = arith.constant 0 : i32
    %c0_i32_1 = arith.constant 0 : i32
    return %c0_i32, %c0_i32_0 : i32, i32
  }
  func.func @transform_3(%arg0: i32) -> (i32, i32) {
    %c0_i32 = arith.constant 0 : i32
    %c0_i32_0 = arith.constant 0 : i32
    %c0_i32_1 = arith.constant 0 : i32
    return %c0_i32, %c0_i32_0 : i32, i32
  }
  func.func @transform_4(%arg0: i32) -> (i32, i32) {
    %c0_i32 = arith.constant 0 : i32
    %c0_i32_0 = arith.constant 0 : i32
    return %arg0, %c0_i32 : i32, i32
  }
  func.func @transform_5(%arg0: i32) -> (i32, i32) {
    %c0_i32 = arith.constant 0 : i32
    %c0_i32_0 = arith.constant 0 : i32
    return %arg0, %c0_i32 : i32, i32
  }
}

module attributes {stable_mosaic.version = 11 : i64} {
  func.func @kernel(%arg0: i32, %arg1: i32, %arg2: memref<256x4xf32, #tpu.memory_space<vmem>>, %arg3: memref<1x4xf32, #tpu.memory_space<vmem>>, %arg4: memref<1x4xf32, #tpu.memory_space<vmem>>, %arg5: memref<36x4xf32, #tpu.memory_space<vmem>>, %arg6: memref<128x4xf32, #tpu.memory_space<vmem>>, %arg7: memref<1x4xf32, #tpu.memory_space<vmem>>, %arg8: memref<1x4xf32, #tpu.memory_space<vmem>>, %arg9: memref<290x4xf32, #tpu.memory_space<vmem>>, %arg10: memref<128x36xf32, #tpu.memory_space<vmem>>) attributes {dimension_semantics = [#tpu.dimension_semantics<arbitrary>, #tpu.dimension_semantics<arbitrary>], iteration_bounds = array<i64: 2, 2>, scalar_prefetch = 0 : i64, scratch_operands = 2 : i64, tpu.core_type = #tpu.core_type<tc>, window_params = [{transform_indices = @transform_0, window_bounds = array<i64: 256, 4>}, {pipeline_mode = #tpu.pipeline_mode<synchronous>, transform_indices = @transform_1, window_bounds = array<i64: 1, 4>}, {pipeline_mode = #tpu.pipeline_mode<synchronous>, transform_indices = @transform_2, window_bounds = array<i64: 1, 4>}, {pipeline_mode = #tpu.pipeline_mode<synchronous>, transform_indices = @transform_3, window_bounds = array<i64: 36, 4>}, {transform_indices = @transform_4, window_bounds = array<i64: 128, 4>}, {pipeline_mode = #tpu.pipeline_mode<synchronous>, transform_indices = @transform_5, window_bounds = array<i64: 1, 4>}, {pipeline_mode = #tpu.pipeline_mode<synchronous>, transform_indices = @transform_6, window_bounds = array<i64: 1, 4>}]} {
    %c0_i32 = arith.constant 0 : i32
    %0 = arith.cmpi eq, %arg0, %c0_i32 : i32
    %c0_i32_0 = arith.constant 0 : i32
    %1 = arith.cmpi eq, %arg1, %c0_i32_0 : i32
    %2 = arith.andi %0, %1 : i1
    %3 = arith.extui %2 : i1 to i32
    %c0_i32_1 = arith.constant 0 : i32
    %4 = arith.cmpi ne, %3, %c0_i32_1 : i32
    scf.if %4 {
      %cst_65 = arith.constant 0.000000e+00 : f32
      %115 = vector.broadcast %cst_65 : f32 to vector<290x4xf32>
      %c0_66 = arith.constant 0 : index
      %c0_67 = arith.constant 0 : index
      %116 = vector.load %arg9[%c0_66, %c0_67] : memref<290x4xf32, #tpu.memory_space<vmem>>, vector<290x4xf32>
      tpu.vector_store %arg9[%c0_66, %c0_67], %115 {strides = array<i32>} : memref<290x4xf32, #tpu.memory_space<vmem>>, vector<290x4xf32>,
      %cst_68 = arith.constant 0.000000e+00 : f32
      %117 = vector.broadcast %cst_68 : f32 to vector<1x4xf32>
      %c0_69 = arith.constant 0 : index
      %c0_70 = arith.constant 0 : index
      %118 = vector.load %arg7[%c0_69, %c0_70] : memref<1x4xf32, #tpu.memory_space<vmem>>, vector<1x4xf32>
      tpu.vector_store %arg7[%c0_69, %c0_70], %117 {strides = array<i32>} : memref<1x4xf32, #tpu.memory_space<vmem>>, vector<1x4xf32>,
      %cst_71 = arith.constant 0.000000e+00 : f32
      %119 = vector.broadcast %cst_71 : f32 to vector<1x4xf32>
      %c0_72 = arith.constant 0 : index
      %c0_73 = arith.constant 0 : index
      %120 = vector.load %arg8[%c0_72, %c0_73] : memref<1x4xf32, #tpu.memory_space<vmem>>, vector<1x4xf32>
      tpu.vector_store %arg8[%c0_72, %c0_73], %119 {strides = array<i32>} : memref<1x4xf32, #tpu.memory_space<vmem>>, vector<1x4xf32>,
    } else {
    }
    %c0_i32_2 = arith.constant 0 : i32
    %5 = arith.cmpi eq, %arg1, %c0_i32_2 : i32
    %6 = arith.extui %5 : i1 to i32
    %c0_i32_3 = arith.constant 0 : i32
    %7 = arith.cmpi ne, %6, %c0_i32_3 : i32
    scf.if %7 {
      %c0_65 = arith.constant 0 : index
      %c0_66 = arith.constant 0 : index
      %115 = vector.load %arg2[%c0_65, %c0_66] : memref<256x4xf32, #tpu.memory_space<vmem>>, vector<256x4xf32>
      %c0_67 = arith.constant 0 : index
      %c0_68 = arith.constant 0 : index
      %116 = vector.load %arg3[%c0_67, %c0_68] : memref<1x4xf32, #tpu.memory_space<vmem>>, vector<1x4xf32>
      %117 = vector.broadcast %116 : vector<1x4xf32> to vector<256x4xf32>
      %118 = arith.mulf %115, %117 : vector<256x4xf32>
      %c0_69 = arith.constant 0 : index
      %c0_70 = arith.constant 0 : index
      %119 = vector.load %arg4[%c0_69, %c0_70] : memref<1x4xf32, #tpu.memory_space<vmem>>, vector<1x4xf32>
      %120 = vector.broadcast %119 : vector<1x4xf32> to vector<256x4xf32>
      %121 = arith.addf %118, %120 : vector<256x4xf32>
      %cst_71 = arith.constant 0.000000e+00 : f32
      %122 = vector.broadcast %cst_71 : f32 to vector<256x4xf32>
      %123 = arith.maximumf %121, %122 : vector<256x4xf32>
      %c17 = arith.constant 17 : index
      %c0_72 = arith.constant 0 : index
      %124 = vector.load %arg9[%c17, %c0_72] : memref<290x4xf32, #tpu.memory_space<vmem>>, vector<256x4xf32>
      tpu.vector_store %arg9[%c17, %c0_72], %123 {strides = array<i32>} : memref<290x4xf32, #tpu.memory_space<vmem>>, vector<256x4xf32>,
    } else {
    }
    %8 = tpu.iota {dimensions = array<i32: 0>} : vector<128x1xi32>
    %c16_i32 = arith.constant 16 : i32
    %c0_i32_4 = arith.constant 0 : i32
    %9 = arith.cmpi eq, %c16_i32, %c0_i32_4 : i32
    %c1_i32 = arith.constant 1 : i32
    %10 = arith.select %9, %c1_i32, %c16_i32 : i32
    %11 = vector.broadcast %10 : i32 to vector<128x1xi32>
    %12 = arith.remsi %8, %11 : vector<128x1xi32>
    %c0_i32_5 = arith.constant 0 : i32
    %13 = vector.broadcast %c0_i32_5 : i32 to vector<128x1xi32>
    %14 = arith.cmpi ne, %12, %13 : vector<128x1xi32>
    %c0_i32_6 = arith.constant 0 : i32
    %15 = vector.broadcast %c0_i32_6 : i32 to vector<128x1xi32>
    %16 = arith.cmpi slt, %12, %15 : vector<128x1xi32>
    %c0_i32_7 = arith.constant 0 : i32
    %17 = arith.cmpi slt, %10, %c0_i32_7 : i32
    %18 = vector.broadcast %17 : i1 to vector<128x1xi1>
    %19 = vector.broadcast %18 : vector<128x1xi1> to vector<128x1xi1>
    %20 = arith.xori %16, %19 : vector<128x1xi1>
    %21 = arith.andi %20, %14 : vector<128x1xi1>
    %22 = vector.broadcast %10 : i32 to vector<128x1xi32>
    %23 = arith.addi %12, %22 : vector<128x1xi32>
    %24 = arith.select %21, %23, %12 : vector<128x1xi1>, vector<128x1xi32>
    %c0_i32_8 = arith.constant 0 : i32
    %25 = vector.broadcast %c0_i32_8 : i32 to vector<128x1xi32>
    %26 = arith.cmpi sgt, %24, %25 : vector<128x1xi32>
    %c15_i32 = arith.constant 15 : i32
    %27 = vector.broadcast %c15_i32 : i32 to vector<128x1xi32>
    %28 = arith.cmpi slt, %24, %27 : vector<128x1xi32>
    %c128_i32 = arith.constant 128 : i32
    %29 = arith.muli %arg1, %c128_i32 : i32
    %30 = tpu.assume_multiple %29, 8 : i32
    %c0_i32_9 = arith.constant 0 : i32
    %31 = arith.addi %30, %c0_i32_9 : i32
    %c0_i32_10 = arith.constant 0 : i32
    %32 = arith.addi %31, %c0_i32_10 : i32
    %33 = arith.index_cast %32 : i32 to index
    %c0 = arith.constant 0 : index
    %34 = vector.load %arg9[%33, %c0] : memref<290x4xf32, #tpu.memory_space<vmem>>, vector<128x4xf32>
    %cst = arith.constant 0.000000e+00 : f32
    %35 = vector.broadcast %cst : f32 to vector<128x4xf32>
    %36 = vector.shape_cast %26 : vector<128x1xi1> to vector<128x1xi1>
    %37 = vector.broadcast %36 : vector<128x1xi1> to vector<128x4xi1>
    %38 = arith.select %37, %34, %35 : vector<128x4xi1>, vector<128x4xf32>
    %c0_11 = arith.constant 0 : index
    %c0_12 = arith.constant 0 : index
    %39 = vector.load %arg10[%c0_11, %c0_12] : memref<128x36xf32, #tpu.memory_space<vmem>>, vector<128x4xf32>
    tpu.vector_store %arg10[%c0_11, %c0_12], %38 {strides = array<i32>} : memref<128x36xf32, #tpu.memory_space<vmem>>, vector<128x4xf32>,
    %c0_i32_13 = arith.constant 0 : i32
    %40 = arith.addi %30, %c0_i32_13 : i32
    %c1_i32_14 = arith.constant 1 : i32
    %41 = arith.addi %40, %c1_i32_14 : i32
    %42 = arith.index_cast %41 : i32 to index
    %c0_15 = arith.constant 0 : index
    %43 = vector.load %arg9[%42, %c0_15] : memref<290x4xf32, #tpu.memory_space<vmem>>, vector<128x4xf32>
    %c0_16 = arith.constant 0 : index
    %c4 = arith.constant 4 : index
    %44 = vector.load %arg10[%c0_16, %c4] : memref<128x36xf32, #tpu.memory_space<vmem>>, vector<128x4xf32>
    tpu.vector_store %arg10[%c0_16, %c4], %43 {strides = array<i32>} : memref<128x36xf32, #tpu.memory_space<vmem>>, vector<128x4xf32>,
    %c0_i32_17 = arith.constant 0 : i32
    %45 = arith.addi %30, %c0_i32_17 : i32
    %c2_i32 = arith.constant 2 : i32
    %46 = arith.addi %45, %c2_i32 : i32
    %47 = arith.index_cast %46 : i32 to index
    %c0_18 = arith.constant 0 : index
    %48 = vector.load %arg9[%47, %c0_18] : memref<290x4xf32, #tpu.memory_space<vmem>>, vector<128x4xf32>
    %cst_19 = arith.constant 0.000000e+00 : f32
    %49 = vector.broadcast %cst_19 : f32 to vector<128x4xf32>
    %50 = vector.shape_cast %28 : vector<128x1xi1> to vector<128x1xi1>
    %51 = vector.broadcast %50 : vector<128x1xi1> to vector<128x4xi1>
    %52 = arith.select %51, %48, %49 : vector<128x4xi1>, vector<128x4xf32>
    %c0_20 = arith.constant 0 : index
    %c8 = arith.constant 8 : index
    %53 = vector.load %arg10[%c0_20, %c8] : memref<128x36xf32, #tpu.memory_space<vmem>>, vector<128x4xf32>
    tpu.vector_store %arg10[%c0_20, %c8], %52 {strides = array<i32>} : memref<128x36xf32, #tpu.memory_space<vmem>>, vector<128x4xf32>,
    %c16_i32_21 = arith.constant 16 : i32
    %54 = arith.addi %30, %c16_i32_21 : i32
    %c0_i32_22 = arith.constant 0 : i32
    %55 = arith.addi %54, %c0_i32_22 : i32
    %56 = arith.index_cast %55 : i32 to index
    %c0_23 = arith.constant 0 : index
    %57 = vector.load %arg9[%56, %c0_23] : memref<290x4xf32, #tpu.memory_space<vmem>>, vector<128x4xf32>
    %cst_24 = arith.constant 0.000000e+00 : f32
    %58 = vector.broadcast %cst_24 : f32 to vector<128x4xf32>
    %59 = vector.shape_cast %26 : vector<128x1xi1> to vector<128x1xi1>
    %60 = vector.broadcast %59 : vector<128x1xi1> to vector<128x4xi1>
    %61 = arith.select %60, %57, %58 : vector<128x4xi1>, vector<128x4xf32>
    %c0_25 = arith.constant 0 : index
    %c12 = arith.constant 12 : index
    %62 = vector.load %arg10[%c0_25, %c12] : memref<128x36xf32, #tpu.memory_space<vmem>>, vector<128x4xf32>
    tpu.vector_store %arg10[%c0_25, %c12], %61 {strides = array<i32>} : memref<128x36xf32, #tpu.memory_space<vmem>>, vector<128x4xf32>,
    %c16_i32_26 = arith.constant 16 : i32
    %63 = arith.addi %30, %c16_i32_26 : i32
    %c1_i32_27 = arith.constant 1 : i32
    %64 = arith.addi %63, %c1_i32_27 : i32
    %65 = arith.index_cast %64 : i32 to index
    %c0_28 = arith.constant 0 : index
    %66 = vector.load %arg9[%65, %c0_28] : memref<290x4xf32, #tpu.memory_space<vmem>>, vector<128x4xf32>
    %c0_29 = arith.constant 0 : index
    %c16 = arith.constant 16 : index
    %67 = vector.load %arg10[%c0_29, %c16] : memref<128x36xf32, #tpu.memory_space<vmem>>, vector<128x4xf32>
    tpu.vector_store %arg10[%c0_29, %c16], %66 {strides = array<i32>} : memref<128x36xf32, #tpu.memory_space<vmem>>, vector<128x4xf32>,
    %c16_i32_30 = arith.constant 16 : i32
    %68 = arith.addi %30, %c16_i32_30 : i32
    %c2_i32_31 = arith.constant 2 : i32
    %69 = arith.addi %68, %c2_i32_31 : i32
    %70 = arith.index_cast %69 : i32 to index
    %c0_32 = arith.constant 0 : index
    %71 = vector.load %arg9[%70, %c0_32] : memref<290x4xf32, #tpu.memory_space<vmem>>, vector<128x4xf32>
    %cst_33 = arith.constant 0.000000e+00 : f32
    %72 = vector.broadcast %cst_33 : f32 to vector<128x4xf32>
    %73 = vector.shape_cast %28 : vector<128x1xi1> to vector<128x1xi1>
    %74 = vector.broadcast %73 : vector<128x1xi1> to vector<128x4xi1>
    %75 = arith.select %74, %71, %72 : vector<128x4xi1>, vector<128x4xf32>
    %c0_34 = arith.constant 0 : index
    %c20 = arith.constant 20 : index
    %76 = vector.load %arg10[%c0_34, %c20] : memref<128x36xf32, #tpu.memory_space<vmem>>, vector<128x4xf32>
    tpu.vector_store %arg10[%c0_34, %c20], %75 {strides = array<i32>} : memref<128x36xf32, #tpu.memory_space<vmem>>, vector<128x4xf32>,
    %c32_i32 = arith.constant 32 : i32
    %77 = arith.addi %30, %c32_i32 : i32
    %c0_i32_35 = arith.constant 0 : i32
    %78 = arith.addi %77, %c0_i32_35 : i32
    %79 = arith.index_cast %78 : i32 to index
    %c0_36 = arith.constant 0 : index
    %80 = vector.load %arg9[%79, %c0_36] : memref<290x4xf32, #tpu.memory_space<vmem>>, vector<128x4xf32>
    %cst_37 = arith.constant 0.000000e+00 : f32
    %81 = vector.broadcast %cst_37 : f32 to vector<128x4xf32>
    %82 = vector.shape_cast %26 : vector<128x1xi1> to vector<128x1xi1>
    %83 = vector.broadcast %82 : vector<128x1xi1> to vector<128x4xi1>
    %84 = arith.select %83, %80, %81 : vector<128x4xi1>, vector<128x4xf32>
    %c0_38 = arith.constant 0 : index
    %c24 = arith.constant 24 : index
    %85 = vector.load %arg10[%c0_38, %c24] : memref<128x36xf32, #tpu.memory_space<vmem>>, vector<128x4xf32>
    tpu.vector_store %arg10[%c0_38, %c24], %84 {strides = array<i32>} : memref<128x36xf32, #tpu.memory_space<vmem>>, vector<128x4xf32>,
    %c32_i32_39 = arith.constant 32 : i32
    %86 = arith.addi %30, %c32_i32_39 : i32
    %c1_i32_40 = arith.constant 1 : i32
    %87 = arith.addi %86, %c1_i32_40 : i32
    %88 = arith.index_cast %87 : i32 to index
    %c0_41 = arith.constant 0 : index
    %89 = vector.load %arg9[%88, %c0_41] : memref<290x4xf32, #tpu.memory_space<vmem>>, vector<128x4xf32>
    %c0_42 = arith.constant 0 : index
    %c28 = arith.constant 28 : index
    %90 = vector.load %arg10[%c0_42, %c28] : memref<128x36xf32, #tpu.memory_space<vmem>>, vector<128x4xf32>
    tpu.vector_store %arg10[%c0_42, %c28], %89 {strides = array<i32>} : memref<128x36xf32, #tpu.memory_space<vmem>>, vector<128x4xf32>,
    %c32_i32_43 = arith.constant 32 : i32
    %91 = arith.addi %30, %c32_i32_43 : i32
    %c2_i32_44 = arith.constant 2 : i32
    %92 = arith.addi %91, %c2_i32_44 : i32
    %93 = arith.index_cast %92 : i32 to index
    %c0_45 = arith.constant 0 : index
    %94 = vector.load %arg9[%93, %c0_45] : memref<290x4xf32, #tpu.memory_space<vmem>>, vector<128x4xf32>
    %cst_46 = arith.constant 0.000000e+00 : f32
    %95 = vector.broadcast %cst_46 : f32 to vector<128x4xf32>
    %96 = vector.shape_cast %28 : vector<128x1xi1> to vector<128x1xi1>
    %97 = vector.broadcast %96 : vector<128x1xi1> to vector<128x4xi1>
    %98 = arith.select %97, %94, %95 : vector<128x4xi1>, vector<128x4xf32>
    %c0_47 = arith.constant 0 : index
    %c32 = arith.constant 32 : index
    %99 = vector.load %arg10[%c0_47, %c32] : memref<128x36xf32, #tpu.memory_space<vmem>>, vector<128x4xf32>
    tpu.vector_store %arg10[%c0_47, %c32], %98 {strides = array<i32>} : memref<128x36xf32, #tpu.memory_space<vmem>>, vector<128x4xf32>,
    %c0_48 = arith.constant 0 : index
    %c0_49 = arith.constant 0 : index
    %100 = vector.load %arg10[%c0_48, %c0_49] : memref<128x36xf32, #tpu.memory_space<vmem>>, vector<128x36xf32>
    %c0_50 = arith.constant 0 : index
    %c0_51 = arith.constant 0 : index
    %101 = vector.load %arg5[%c0_50, %c0_51] : memref<36x4xf32, #tpu.memory_space<vmem>>, vector<36x4xf32>
    %cst_52 = arith.constant dense<0.000000e+00> : vector<128x4xf32>
    %102 = tpu.matmul %100, %101, %cst_52 {dimension_numbers = #tpu.dot_dimension_numbers<[1], [0], [0], [1], [0, 0, 1, 1], [], []>} : vector<128x36xf32>, vector<36x4xf32>, vector<128x4xf32> -> vector<128x4xf32>
    %c0_53 = arith.constant 0 : index
    %c0_54 = arith.constant 0 : index
    %103 = vector.load %arg6[%c0_53, %c0_54] : memref<128x4xf32, #tpu.memory_space<vmem>>, vector<128x4xf32>
    tpu.vector_store %arg6[%c0_53, %c0_54], %102 {strides = array<i32>} : memref<128x4xf32, #tpu.memory_space<vmem>>, vector<128x4xf32>,
    %c0_55 = arith.constant 0 : index
    %c0_56 = arith.constant 0 : index
    %104 = vector.load %arg7[%c0_55, %c0_56] : memref<1x4xf32, #tpu.memory_space<vmem>>, vector<1x4xf32>
    %cst_57 = arith.constant dense<0.000000e+00> : vector<4xf32>
    %105 = vector.multi_reduction <add>, %102, %cst_57 [0] : vector<128x4xf32> to vector<4xf32>
    %106 = vector.shape_cast %105 : vector<4xf32> to vector<1x4xf32>
    %107 = arith.addf %104, %106 : vector<1x4xf32>
    %c0_58 = arith.constant 0 : index
    %c0_59 = arith.constant 0 : index
    %108 = vector.load %arg7[%c0_58, %c0_59] : memref<1x4xf32, #tpu.memory_space<vmem>>, vector<1x4xf32>
    tpu.vector_store %arg7[%c0_58, %c0_59], %107 {strides = array<i32>} : memref<1x4xf32, #tpu.memory_space<vmem>>, vector<1x4xf32>,
    %c0_60 = arith.constant 0 : index
    %c0_61 = arith.constant 0 : index
    %109 = vector.load %arg8[%c0_60, %c0_61] : memref<1x4xf32, #tpu.memory_space<vmem>>, vector<1x4xf32>
    %110 = arith.mulf %102, %102 : vector<128x4xf32>
    %cst_62 = arith.constant dense<0.000000e+00> : vector<4xf32>
    %111 = vector.multi_reduction <add>, %110, %cst_62 [0] : vector<128x4xf32> to vector<4xf32>
    %112 = vector.shape_cast %111 : vector<4xf32> to vector<1x4xf32>
    %113 = arith.addf %109, %112 : vector<1x4xf32>
    %c0_63 = arith.constant 0 : index
    %c0_64 = arith.constant 0 : index
    %114 = vector.load %arg8[%c0_63, %c0_64] : memref<1x4xf32, #tpu.memory_space<vmem>>, vector<1x4xf32>
    tpu.vector_store %arg8[%c0_63, %c0_64], %113 {strides = array<i32>} : memref<1x4xf32, #tpu.memory_space<vmem>>, vector<1x4xf32>,
    return
  }
  func.func @transform_0(%arg0: i32, %arg1: i32) -> (i32, i32) {
    %c0_i32 = arith.constant 0 : i32
    %c0_i32_0 = arith.constant 0 : i32
    return %arg0, %c0_i32 : i32, i32
  }
  func.func @transform_1(%arg0: i32, %arg1: i32) -> (i32, i32) {
    %c0_i32 = arith.constant 0 : i32
    %c0_i32_0 = arith.constant 0 : i32
    %c0_i32_1 = arith.constant 0 : i32
    return %c0_i32, %c0_i32_0 : i32, i32
  }
  func.func @transform_2(%arg0: i32, %arg1: i32) -> (i32, i32) {
    %c0_i32 = arith.constant 0 : i32
    %c0_i32_0 = arith.constant 0 : i32
    %c0_i32_1 = arith.constant 0 : i32
    return %c0_i32, %c0_i32_0 : i32, i32
  }
  func.func @transform_3(%arg0: i32, %arg1: i32) -> (i32, i32) {
    %c0_i32 = arith.constant 0 : i32
    %c0_i32_0 = arith.constant 0 : i32
    %c0_i32_1 = arith.constant 0 : i32
    return %c0_i32, %c0_i32_0 : i32, i32
  }
  func.func @transform_4(%arg0: i32, %arg1: i32) -> (i32, i32) {
    %c2_i32 = arith.constant 2 : i32
    %0 = arith.muli %arg0, %c2_i32 : i32
    %1 = arith.addi %0, %arg1 : i32
    %c0_i32 = arith.constant 0 : i32
    %c0_i32_0 = arith.constant 0 : i32
    return %1, %c0_i32 : i32, i32
  }
  func.func @transform_5(%arg0: i32, %arg1: i32) -> (i32, i32) {
    %c0_i32 = arith.constant 0 : i32
    %c0_i32_0 = arith.constant 0 : i32
    %c0_i32_1 = arith.constant 0 : i32
    return %c0_i32, %c0_i32_0 : i32, i32
  }
  func.func @transform_6(%arg0: i32, %arg1: i32) -> (i32, i32) {
    %c0_i32 = arith.constant 0 : i32
    %c0_i32_0 = arith.constant 0 : i32
    %c0_i32_1 = arith.constant 0 : i32
    return %c0_i32, %c0_i32_0 : i32, i32
  }
}

</mosaic_0001>

<bundles_post_ra>
// kernel: bottleneck_forward.4
= control target key start
LH: loop header
LB: loop body
LE: loop exit
PB: predicated region body
PF: predicated region fallthrough
CT: control target
= control target key end

     0   :  { %vm14_vm0 = vcmask 24576   ;;  %vm82_vm1 = vcmask 31744   ;;  %v428_v0 = vmov 0.0   ;;  %s786_s0 = inlined_call_operand.vmem [shape: f32[512,4], index: 0, kind: input, shape index: {}]   ;;  %s787_s1 = inlined_call_operand.vmem [shape: f32[1,4], index: 1, kind: output, shape index: {0}]   ;;  %s788_s2 = inlined_call_operand.vmem [shape: f32[1,4], index: 2, kind: output, shape index: {1}]  }
   0x1   :  { %15 = vst.msk [vmem:[%s787_s1] sm:$0x1] %vm14_vm0, %v428_v0  ;;  %v17_v1 = vld [vmem:[%s786_s0] sm:$0xff]  ;;  %v18_v2 = vld [vmem:[%s786_s0 + $0x8] sm:$0xff]  ;;  %v19_v3 = vld [vmem:[%s786_s0 + $0x10] sm:$0xff] }
   0x2   :  { %16 = vst.msk [vmem:[%s788_s2] sm:$0x1] %vm14_vm0, %v428_v0  ;;  %v83_v4 = vsel %vm82_vm1, %v17_v1, 0.0  ;;  %v84_v5 = vsel %vm82_vm1, %v18_v2, 0.0  ;;  %v86_v6 = vsel %vm82_vm1, %v19_v3, 0.0  ;;  %v20_v7 = vld [vmem:[%s786_s0 + $0x18] sm:$0xff]  ;;  %v220_v19 = vmul.f32 %v17_v1, %v17_v1 }
   0x3   :  { %v85_v8 = vadd.f32 %v84_v5, %v83_v4  ;;  %v88_v9 = vsel %vm82_vm1, %v20_v7, 0.0  ;;  %v21_v10 = vld [vmem:[%s786_s0 + $0x20] sm:$0xff]  ;;  %v22_v13 = vld [vmem:[%s786_s0 + $0x28] sm:$0xff]  ;;  %v23_v16 = vld [vmem:[%s786_s0 + $0x30] sm:$0xff]  ;;  %v221_v20 = vmul.f32 %v18_v2, %v18_v2  ;;  %v222_v24 = vmul.f32 %v19_v3, %v19_v3 }
   0x4   :  { %v90_v12 = vsel %vm82_vm1, %v21_v10, 0.0  ;;  %v92_v15 = vsel %vm82_vm1, %v22_v13, 0.0  ;;  %v94_v18 = vsel %vm82_vm1, %v23_v16, 0.0  ;;  %v24_v21 = vld [vmem:[%s786_s0 + $0x38] sm:$0xff]  ;;  %v223_v25 = vmul.f32 %v20_v7, %v20_v7  ;;  %v25_v26 = vld [vmem:[%s786_s0 + $0x40] sm:$0xff]  ;;  %v26_v32 = vld [vmem:[%s786_s0 + $0x48] sm:$0xff] }
   0x5   :  { %v87_v11 = vadd.f32 %v86_v6, %v85_v8  ;;  %v96_v23 = vsel %vm82_vm1, %v24_v21, 0.0  ;;  %v98_v28 = vsel %vm82_vm1, %v25_v26, 0.0  ;;  %v224_v29 = vmul.f32 %v21_v10, %v21_v10  ;;  %v27_v39 = vld [vmem:[%s786_s0 + $0x50] sm:$0xff]  ;;  %v28_v45 = vld [vmem:[%s786_s0 + $0x58] sm:$0xff]  ;;  %v29_v51 = vld [vmem:[%s786_s0 + $0x60] sm:$0xff] }
   0x6   :  { %v284_v30 = vsel %vm82_vm1, %v220_v19, 0.0  ;;  %v285_v31 = vsel %vm82_vm1, %v221_v20, 0.0  ;;  %v100_v35 = vsel %vm82_vm1, %v26_v32, 0.0  ;;  %v225_v36 = vmul.f32 %v22_v13, %v22_v13  ;;  %v30_v57 = vld [vmem:[%s786_s0 + $0x68] sm:$0xff]  ;;  %v31_v63 = vld [vmem:[%s786_s0 + $0x70] sm:$0xff]  ;;  %v32_v5 = vld [vmem:[%s786_s0 + $0x78] sm:$0xff] }
   0x7   :  { %v89_v14 = vadd.f32 %v88_v9, %v87_v11  ;;  %v286_v34 = vadd.f32 %v285_v31, %v284_v30  ;;  %v287_v37 = vsel %vm82_vm1, %v222_v24, 0.0  ;;  %v289_v38 = vsel %vm82_vm1, %v223_v25, 0.0  ;;  %v33_v11 = vld [vmem:[%s786_s0 + $0x80] sm:$0xff] }
   0x8   :  { %v102_v42 = vsel %vm82_vm1, %v27_v39, 0.0  ;;  %v226_v43 = vmul.f32 %v23_v16, %v23_v16  ;;  %v291_v44 = vsel %vm82_vm1, %v224_v29, 0.0  ;;  %v104_v48 = vsel %vm82_vm1, %v28_v45, 0.0  ;;  %v36_v29 = vld [vmem:[%s786_s0 + $0x98] sm:$0xff] }
   0x9   :  { %v91_v17 = vadd.f32 %v90_v12, %v89_v14  ;;  %v288_v41 = vadd.f32 %v287_v37, %v286_v34  ;;  %v227_v49 = vmul.f32 %v24_v21, %v24_v21  ;;  %v293_v50 = vsel %vm82_vm1, %v225_v36, 0.0 }
   0xa   :  { %v106_v54 = vsel %vm82_vm1, %v29_v51, 0.0  ;;  %v228_v55 = vmul.f32 %v25_v26, %v25_v26  ;;  %v295_v56 = vsel %vm82_vm1, %v226_v43, 0.0  ;;  %v108_v60 = vsel %vm82_vm1, %v30_v57, 0.0 }
   0xb   :  { %v93_v22 = vadd.f32 %v92_v15, %v91_v17  ;;  %v290_v47 = vadd.f32 %v289_v38, %v288_v41  ;;  %v229_v61 = vmul.f32 %v26_v32, %v26_v32  ;;  %v297_v62 = vsel %vm82_vm1, %v227_v49, 0.0  ;;  %v34_v17 = vld [vmem:[%s786_s0 + $0x88] sm:$0xff] }
   0xc   :  { %v110_v2 = vsel %vm82_vm1, %v31_v63, 0.0  ;;  %v230_v3 = vmul.f32 %v27_v39, %v27_v39  ;;  %v299_v4 = vsel %vm82_vm1, %v228_v55, 0.0  ;;  %v112_v8 = vsel %vm82_vm1, %v32_v5, 0.0  ;;  %v38_v41 = vld [vmem:[%s786_s0 + $0xa8] sm:$0xff] }
   0xd   :  { %v95_v27 = vadd.f32 %v94_v18, %v93_v22  ;;  %v292_v53 = vadd.f32 %v291_v44, %v290_v47  ;;  %v231_v9 = vmul.f32 %v28_v45, %v28_v45  ;;  %v301_v10 = vsel %vm82_vm1, %v229_v61, 0.0  ;;  %v39_v47 = vld [vmem:[%s786_s0 + $0xb0] sm:$0xff] }
   0xe   :  { %v114_v14 = vsel %vm82_vm1, %v33_v11, 0.0  ;;  %v232_v15 = vmul.f32 %v29_v51, %v29_v51  ;;  %v303_v16 = vsel %vm82_vm1, %v230_v3, 0.0  ;;  %v116_v20 = vsel %vm82_vm1, %v34_v17, 0.0 }
   0xf   :  { %v97_v33 = vadd.f32 %v96_v23, %v95_v27  ;;  %v294_v59 = vadd.f32 %v293_v50, %v292_v53  ;;  %v233_v21 = vmul.f32 %v30_v57, %v30_v57  ;;  %v305_v22 = vsel %vm82_vm1, %v231_v9, 0.0  ;;  %v35_v23 = vld [vmem:[%s786_s0 + $0x90] sm:$0xff]  ;;  %v40_v53 = vld [vmem:[%s786_s0 + $0xb8] sm:$0xff] }
  0x10   :  { %v118_v26 = vsel %vm82_vm1, %v35_v23, 0.0  ;;  %v234_v27 = vmul.f32 %v31_v63, %v31_v63  ;;  %v120_v32 = vsel %vm82_vm1, %v36_v29, 0.0  ;;  %v236_v39 = vmul.f32 %v33_v11, %v33_v11 }
  0x11   :  { %v99_v40 = vadd.f32 %v98_v28, %v97_v33  ;;  %v296_v1 = vadd.f32 %v295_v56, %v294_v59  ;;  %v307_v28 = vsel %vm82_vm1, %v232_v15, 0.0  ;;  %v235_v33 = vmul.f32 %v32_v5, %v32_v5  ;;  %v41_v59 = vld [vmem:[%s786_s0 + $0xc0] sm:$0xff] }
  0x12   :  { %v309_v34 = vsel %vm82_vm1, %v233_v21, 0.0  ;;  %v124_v44 = vsel %vm82_vm1, %v38_v41, 0.0  ;;  %v237_v45 = vmul.f32 %v34_v17, %v34_v17  ;;  %v126_v50 = vsel %vm82_vm1, %v39_v47, 0.0 }
  0x13   :  { %v101_v46 = vadd.f32 %v100_v35, %v99_v40  ;;  %v298_v7 = vadd.f32 %v297_v62, %v296_v1  ;;  %v37_v35 = vld [vmem:[%s786_s0 + $0xa0] sm:$0xff]  ;;  %v311_v40 = vsel %vm82_vm1, %v234_v27, 0.0  ;;  %v238_v51 = vmul.f32 %v35_v23, %v35_v23  ;;  %v42_v1 = vld [vmem:[%s786_s0 + $0xc8] sm:$0xff] }
  0x14   :  { %v122_v38 = vsel %vm82_vm1, %v37_v35, 0.0  ;;  %v128_v56 = vsel %vm82_vm1, %v40_v53, 0.0  ;;  %v239_v57 = vmul.f32 %v36_v29, %v36_v29  ;;  %v130_v62 = vsel %vm82_vm1, %v41_v59, 0.0 }
  0x15   :  { %v103_v52 = vadd.f32 %v102_v42, %v101_v46  ;;  %v300_v13 = vadd.f32 %v299_v4, %v298_v7  ;;  %v313_v46 = vsel %vm82_vm1, %v235_v33, 0.0  ;;  %v240_v63 = vmul.f32 %v37_v35, %v37_v35  ;;  %v43_v7 = vld [vmem:[%s786_s0 + $0xd0] sm:$0xff] }
  0x16   :  { %v132_v4 = vsel %vm82_vm1, %v42_v1, 0.0  ;;  %v241_v5 = vmul.f32 %v38_v41, %v38_v41  ;;  %v242_v11 = vmul.f32 %v39_v47, %v39_v47  ;;  %v243_v17 = vmul.f32 %v40_v53, %v40_v53 }
  0x17   :  { %v105_v58 = vadd.f32 %v104_v48, %v103_v52  ;;  %v302_v19 = vadd.f32 %v301_v10, %v300_v13  ;;  %v315_v52 = vsel %vm82_vm1, %v236_v39, 0.0  ;;  %v134_v10 = vsel %vm82_vm1, %v43_v7, 0.0  ;;  %v44_v13 = vld [vmem:[%s786_s0 + $0xd8] sm:$0xff] }
  0x18   :  { %v244_v23 = vmul.f32 %v41_v59, %v41_v59  ;;  %v245_v29 = vmul.f32 %v42_v1, %v42_v1  ;;  %v246_v35 = vmul.f32 %v43_v7, %v43_v7  ;;  %v247_v41 = vmul.f32 %v44_v13, %v44_v13 }
  0x19   :  { %v107_v0 = vadd.f32 %v106_v54, %v105_v58  ;;  %v304_v25 = vadd.f32 %v303_v16, %v302_v19  ;;  %v317_v58 = vsel %vm82_vm1, %v237_v45, 0.0  ;;  %v136_v16 = vsel %vm82_vm1, %v44_v13, 0.0  ;;  %v45_v19 = vld [vmem:[%s786_s0 + $0xe0] sm:$0xff] }
  0x1a   :  { %v248_v47 = vmul.f32 %v45_v19, %v45_v19 }
  0x1b   :  { %v109_v6 = vadd.f32 %v108_v60, %v107_v0  ;;  %v306_v31 = vadd.f32 %v305_v22, %v304_v25  ;;  %v319_v0 = vsel %vm82_vm1, %v238_v51, 0.0  ;;  %v138_v22 = vsel %vm82_vm1, %v45_v19, 0.0  ;;  %v46_v25 = vld [vmem:[%s786_s0 + $0xe8] sm:$0xff] }
  0x1c   :  { %v249_v53 = vmul.f32 %v46_v25, %v46_v25 }
  0x1d   :  { %v111_v12 = vadd.f32 %v110_v2, %v109_v6  ;;  %v308_v37 = vadd.f32 %v307_v28, %v306_v31  ;;  %v321_v6 = vsel %vm82_vm1, %v239_v57, 0.0  ;;  %v140_v28 = vsel %vm82_vm1, %v46_v25, 0.0  ;;  %v47_v31 = vld [vmem:[%s786_s0 + $0xf0] sm:$0xff] }
  0x1e   :  { %v250_v59 = vmul.f32 %v47_v31, %v47_v31 }
  0x1f   :  { %v113_v18 = vadd.f32 %v112_v8, %v111_v12  ;;  %v310_v43 = vadd.f32 %v309_v34, %v308_v37  ;;  %v323_v12 = vsel %vm82_vm1, %v240_v63, 0.0  ;;  %v142_v34 = vsel %vm82_vm1, %v47_v31, 0.0  ;;  %v48_v37 = vld [vmem:[%s786_s0 + $0xf8] sm:$0xff] }
  0x20   :  { %v251_v1 = vmul.f32 %v48_v37, %v48_v37 }
  0x21   :  { %v115_v24 = vadd.f32 %v114_v14, %v113_v18  ;;  %v312_v49 = vadd.f32 %v311_v40, %v310_v43  ;;  %v325_v18 = vsel %vm82_vm1, %v241_v5, 0.0  ;;  %v144_v40 = vsel %vm82_vm1, %v48_v37, 0.0  ;;  %v49_v43 = vld [vmem:[%s786_s0 + $0x100] sm:$0xff] }
  0x22   :  { %v252_v7 = vmul.f32 %v49_v43, %v49_v43 }
  0x23   :  { %v117_v30 = vadd.f32 %v116_v20, %v115_v24  ;;  %v314_v55 = vadd.f32 %v313_v46, %v312_v49  ;;  %v327_v24 = vsel %vm82_vm1, %v242_v11, 0.0  ;;  %v146_v46 = vsel %vm82_vm1, %v49_v43, 0.0  ;;  %v50_v49 = vld [vmem:[%s786_s0 + $0x108] sm:$0xff] }
  0x24   :  { %v253_v13 = vmul.f32 %v50_v49, %v50_v49 }
  0x25   :  { %v119_v36 = vadd.f32 %v118_v26, %v117_v30  ;;  %v316_v61 = vadd.f32 %v315_v52, %v314_v55  ;;  %v329_v30 = vsel %vm82_vm1, %v243_v17, 0.0  ;;  %v148_v52 = vsel %vm82_vm1, %v50_v49, 0.0  ;;  %v51_v55 = vld [vmem:[%s786_s0 + $0x110] sm:$0xff] }
  0x26   :  { %v254_v19 = vmul.f32 %v51_v55, %v51_v55 }
  0x27   :  { %v121_v42 = vadd.f32 %v120_v32, %v119_v36  ;;  %v318_v3 = vadd.f32 %v317_v58, %v316_v61  ;;  %v331_v36 = vsel %vm82_vm1, %v244_v23, 0.0  ;;  %v150_v58 = vsel %vm82_vm1, %v51_v55, 0.0  ;;  %v52_v61 = vld [vmem:[%s786_s0 + $0x118] sm:$0xff] }
  0x28   :  { %v255_v25 = vmul.f32 %v52_v61, %v52_v61 }
  0x29   :  { %v123_v48 = vadd.f32 %v122_v38, %v121_v42  ;;  %v320_v9 = vadd.f32 %v319_v0, %v318_v3  ;;  %v333_v42 = vsel %vm82_vm1, %v245_v29, 0.0  ;;  %v152_v0 = vsel %vm82_vm1, %v52_v61, 0.0  ;;  %v53_v3 = vld [vmem:[%s786_s0 + $0x120] sm:$0xff] }
  0x2a   :  { %v256_v31 = vmul.f32 %v53_v3, %v53_v3 }
  0x2b   :  { %v125_v54 = vadd.f32 %v124_v44, %v123_v48  ;;  %v322_v15 = vadd.f32 %v321_v6, %v320_v9  ;;  %v335_v48 = vsel %vm82_vm1, %v246_v35, 0.0  ;;  %v154_v6 = vsel %vm82_vm1, %v53_v3, 0.0  ;;  %v54_v9 = vld [vmem:[%s786_s0 + $0x128] sm:$0xff] }
  0x2c   :  { %v257_v37 = vmul.f32 %v54_v9, %v54_v9 }
  0x2d   :  { %v127_v60 = vadd.f32 %v126_v50, %v125_v54  ;;  %v324_v21 = vadd.f32 %v323_v12, %v322_v15  ;;  %v337_v54 = vsel %vm82_vm1, %v247_v41, 0.0  ;;  %v156_v12 = vsel %vm82_vm1, %v54_v9, 0.0  ;;  %v55_v15 = vld [vmem:[%s786_s0 + $0x130] sm:$0xff] }
  0x2e   :  { %v258_v43 = vmul.f32 %v55_v15, %v55_v15 }
  0x2f   :  { %v129_v2 = vadd.f32 %v128_v56, %v127_v60  ;;  %v326_v27 = vadd.f32 %v325_v18, %v324_v21  ;;  %v339_v60 = vsel %vm82_vm1, %v248_v47, 0.0  ;;  %v158_v18 = vsel %vm82_vm1, %v55_v15, 0.0  ;;  %v56_v21 = vld [vmem:[%s786_s0 + $0x138] sm:$0xff] }
  0x30   :  { %v259_v49 = vmul.f32 %v56_v21, %v56_v21 }
  0x31   :  { %v131_v8 = vadd.f32 %v130_v62, %v129_v2  ;;  %v328_v33 = vadd.f32 %v327_v24, %v326_v27  ;;  %v341_v2 = vsel %vm82_vm1, %v249_v53, 0.0  ;;  %v160_v24 = vsel %vm82_vm1, %v56_v21, 0.0  ;;  %v57_v27 = vld [vmem:[%s786_s0 + $0x140] sm:$0xff] }
  0x32   :  { %v260_v55 = vmul.f32 %v57_v27, %v57_v27 }
  0x33   :  { %v133_v14 = vadd.f32 %v132_v4, %v131_v8  ;;  %v330_v39 = vadd.f32 %v329_v30, %v328_v33  ;;  %v343_v8 = vsel %vm82_vm1, %v250_v59, 0.0  ;;  %v162_v30 = vsel %vm82_vm1, %v57_v27, 0.0  ;;  %v58_v33 = vld [vmem:[%s786_s0 + $0x148] sm:$0xff] }
  0x34   :  { %v261_v61 = vmul.f32 %v58_v33, %v58_v33 }
  0x35   :  { %v135_v20 = vadd.f32 %v134_v10, %v133_v14  ;;  %v332_v45 = vadd.f32 %v331_v36, %v330_v39  ;;  %v345_v14 = vsel %vm82_vm1, %v251_v1, 0.0  ;;  %v164_v36 = vsel %vm82_vm1, %v58_v33, 0.0  ;;  %v59_v39 = vld [vmem:[%s786_s0 + $0x150] sm:$0xff] }
  0x36   :  { %v262_v3 = vmul.f32 %v59_v39, %v59_v39 }
  0x37   :  { %v137_v26 = vadd.f32 %v136_v16, %v135_v20  ;;  %v334_v51 = vadd.f32 %v333_v42, %v332_v45  ;;  %v347_v20 = vsel %vm82_vm1, %v252_v7, 0.0  ;;  %v166_v42 = vsel %vm82_vm1, %v59_v39, 0.0  ;;  %v60_v45 = vld [vmem:[%s786_s0 + $0x158] sm:$0xff] }
  0x38   :  { %v263_v9 = vmul.f32 %v60_v45, %v60_v45 }
  0x39   :  { %v139_v32 = vadd.f32 %v138_v22, %v137_v26  ;;  %v336_v57 = vadd.f32 %v335_v48, %v334_v51  ;;  %v349_v26 = vsel %vm82_vm1, %v253_v13, 0.0  ;;  %v168_v48 = vsel %vm82_vm1, %v60_v45, 0.0  ;;  %v61_v51 = vld [vmem:[%s786_s0 + $0x160] sm:$0xff] }
  0x3a   :  { %v264_v15 = vmul.f32 %v61_v51, %v61_v51 }
  0x3b   :  { %v141_v38 = vadd.f32 %v140_v28, %v139_v32  ;;  %v338_v63 = vadd.f32 %v337_v54, %v336_v57  ;;  %v351_v32 = vsel %vm82_vm1, %v254_v19, 0.0  ;;  %v170_v54 = vsel %vm82_vm1, %v61_v51, 0.0  ;;  %v62_v57 = vld [vmem:[%s786_s0 + $0x168] sm:$0xff] }
  0x3c   :  { %v265_v21 = vmul.f32 %v62_v57, %v62_v57 }
  0x3d   :  { %v143_v44 = vadd.f32 %v142_v34, %v141_v38  ;;  %v340_v5 = vadd.f32 %v339_v60, %v338_v63  ;;  %v353_v38 = vsel %vm82_vm1, %v255_v25, 0.0  ;;  %v172_v60 = vsel %vm82_vm1, %v62_v57, 0.0  ;;  %v63_v63 = vld [vmem:[%s786_s0 + $0x170] sm:$0xff] }
  0x3e   :  { %v266_v27 = vmul.f32 %v63_v63, %v63_v63 }
  0x3f   :  { %v145_v50 = vadd.f32 %v144_v40, %v143_v44  ;;  %v342_v11 = vadd.f32 %v341_v2, %v340_v5  ;;  %v355_v44 = vsel %vm82_vm1, %v256_v31, 0.0  ;;  %v174_v2 = vsel %vm82_vm1, %v63_v63, 0.0  ;;  %v64_v5 = vld [vmem:[%s786_s0 + $0x178] sm:$0xff] }
  0x40   :  { %v267_v33 = vmul.f32 %v64_v5, %v64_v5 }
  0x41   :  { %v147_v56 = vadd.f32 %v146_v46, %v145_v50  ;;  %v344_v17 = vadd.f32 %v343_v8, %v342_v11  ;;  %v357_v50 = vsel %vm82_vm1, %v257_v37, 0.0  ;;  %v176_v8 = vsel %vm82_vm1, %v64_v5, 0.0  ;;  %v65_v11 = vld [vmem:[%s786_s0 + $0x180] sm:$0xff] }
  0x42   :  { %v268_v39 = vmul.f32 %v65_v11, %v65_v11 }
  0x43   :  { %v149_v62 = vadd.f32 %v148_v52, %v147_v56  ;;  %v346_v23 = vadd.f32 %v345_v14, %v344_v17  ;;  %v359_v56 = vsel %vm82_vm1, %v258_v43, 0.0  ;;  %v178_v14 = vsel %vm82_vm1, %v65_v11, 0.0  ;;  %v66_v17 = vld [vmem:[%s786_s0 + $0x188] sm:$0xff] }
  0x44   :  { %v269_v45 = vmul.f32 %v66_v17, %v66_v17 }
  0x45   :  { %v151_v4 = vadd.f32 %v150_v58, %v149_v62  ;;  %v348_v29 = vadd.f32 %v347_v20, %v346_v23  ;;  %v361_v62 = vsel %vm82_vm1, %v259_v49, 0.0  ;;  %v180_v20 = vsel %vm82_vm1, %v66_v17, 0.0  ;;  %v67_v23 = vld [vmem:[%s786_s0 + $0x190] sm:$0xff] }
  0x46   :  { %v270_v51 = vmul.f32 %v67_v23, %v67_v23 }
  0x47   :  { %v153_v10 = vadd.f32 %v152_v0, %v151_v4  ;;  %v350_v35 = vadd.f32 %v349_v26, %v348_v29  ;;  %v363_v4 = vsel %vm82_vm1, %v260_v55, 0.0  ;;  %v182_v26 = vsel %vm82_vm1, %v67_v23, 0.0  ;;  %v68_v29 = vld [vmem:[%s786_s0 + $0x198] sm:$0xff] }
  0x48   :  { %v271_v57 = vmul.f32 %v68_v29, %v68_v29 }
  0x49   :  { %v155_v16 = vadd.f32 %v154_v6, %v153_v10  ;;  %v352_v41 = vadd.f32 %v351_v32, %v350_v35  ;;  %v365_v10 = vsel %vm82_vm1, %v261_v61, 0.0  ;;  %v184_v32 = vsel %vm82_vm1, %v68_v29, 0.0  ;;  %v69_v35 = vld [vmem:[%s786_s0 + $0x1a0] sm:$0xff] }
  0x4a   :  { %v272_v63 = vmul.f32 %v69_v35, %v69_v35 }
  0x4b   :  { %v157_v22 = vadd.f32 %v156_v12, %v155_v16  ;;  %v354_v47 = vadd.f32 %v353_v38, %v352_v41  ;;  %v367_v16 = vsel %vm82_vm1, %v262_v3, 0.0  ;;  %v186_v38 = vsel %vm82_vm1, %v69_v35, 0.0  ;;  %v70_v41 = vld [vmem:[%s786_s0 + $0x1a8] sm:$0xff] }
  0x4c   :  { %v273_v5 = vmul.f32 %v70_v41, %v70_v41 }
  0x4d   :  { %v159_v28 = vadd.f32 %v158_v18, %v157_v22  ;;  %v356_v53 = vadd.f32 %v355_v44, %v354_v47  ;;  %v369_v22 = vsel %vm82_vm1, %v263_v9, 0.0  ;;  %v188_v44 = vsel %vm82_vm1, %v70_v41, 0.0  ;;  %v71_v47 = vld [vmem:[%s786_s0 + $0x1b0] sm:$0xff] }
  0x4e   :  { %v274_v11 = vmul.f32 %v71_v47, %v71_v47 }
  0x4f   :  { %v161_v34 = vadd.f32 %v160_v24, %v159_v28  ;;  %v358_v59 = vadd.f32 %v357_v50, %v356_v53  ;;  %v371_v28 = vsel %vm82_vm1, %v264_v15, 0.0  ;;  %v190_v50 = vsel %vm82_vm1, %v71_v47, 0.0  ;;  %v72_v53 = vld [vmem:[%s786_s0 + $0x1b8] sm:$0xff] }
  0x50   :  { %v275_v17 = vmul.f32 %v72_v53, %v72_v53 }
  0x51   :  { %v163_v40 = vadd.f32 %v162_v30, %v161_v34  ;;  %v360_v1 = vadd.f32 %v359_v56, %v358_v59  ;;  %v373_v34 = vsel %vm82_vm1, %v265_v21, 0.0  ;;  %v192_v56 = vsel %vm82_vm1, %v72_v53, 0.0  ;;  %v73_v59 = vld [vmem:[%s786_s0 + $0x1c0] sm:$0xff] }
  0x52   :  { %v276_v23 = vmul.f32 %v73_v59, %v73_v59 }
  0x53   :  { %v165_v46 = vadd.f32 %v164_v36, %v163_v40  ;;  %v362_v7 = vadd.f32 %v361_v62, %v360_v1  ;;  %v375_v40 = vsel %vm82_vm1, %v266_v27, 0.0  ;;  %v194_v62 = vsel %vm82_vm1, %v73_v59, 0.0  ;;  %v74_v1 = vld [vmem:[%s786_s0 + $0x1c8] sm:$0xff] }
  0x54   :  { %v277_v29 = vmul.f32 %v74_v1, %v74_v1 }
  0x55   :  { %v167_v52 = vadd.f32 %v166_v42, %v165_v46  ;;  %v364_v13 = vadd.f32 %v363_v4, %v362_v7  ;;  %v377_v46 = vsel %vm82_vm1, %v267_v33, 0.0  ;;  %v196_v4 = vsel %vm82_vm1, %v74_v1, 0.0  ;;  %v75_v7 = vld [vmem:[%s786_s0 + $0x1d0] sm:$0xff] }
  0x56   :  { %v278_v35 = vmul.f32 %v75_v7, %v75_v7 }
  0x57   :  { %v169_v58 = vadd.f32 %v168_v48, %v167_v52  ;;  %v366_v19 = vadd.f32 %v365_v10, %v364_v13  ;;  %v379_v52 = vsel %vm82_vm1, %v268_v39, 0.0  ;;  %v198_v10 = vsel %vm82_vm1, %v75_v7, 0.0  ;;  %v76_v13 = vld [vmem:[%s786_s0 + $0x1d8] sm:$0xff] }
  0x58   :  { %v279_v41 = vmul.f32 %v76_v13, %v76_v13 }
  0x59   :  { %v171_v0 = vadd.f32 %v170_v54, %v169_v58  ;;  %v368_v25 = vadd.f32 %v367_v16, %v366_v19  ;;  %v381_v58 = vsel %vm82_vm1, %v269_v45, 0.0  ;;  %v200_v16 = vsel %vm82_vm1, %v76_v13, 0.0  ;;  %v77_v19 = vld [vmem:[%s786_s0 + $0x1e0] sm:$0xff] }
  0x5a   :  { %v280_v45 = vmul.f32 %v77_v19, %v77_v19 }
  0x5b   :  { %v173_v6 = vadd.f32 %v172_v60, %v171_v0  ;;  %v370_v31 = vadd.f32 %v369_v22, %v368_v25  ;;  %v383_v0 = vsel %vm82_vm1, %v270_v51, 0.0  ;;  %v202_v22 = vsel %vm82_vm1, %v77_v19, 0.0  ;;  %v78_v25 = vld [vmem:[%s786_s0 + $0x1e8] sm:$0xff] }
  0x5d   :  { %v175_v12 = vadd.f32 %v174_v2, %v173_v6  ;;  %v372_v37 = vadd.f32 %v371_v28, %v370_v31  ;;  %v385_v6 = vsel %vm82_vm1, %v271_v57, 0.0  ;;  %v204_v28 = vsel %vm82_vm1, %v78_v25, 0.0  ;;  %v79_v31 = vld [vmem:[%s786_s0 + $0x1f0] sm:$0xff] }
  0x5e   :  { %v282_v53 = vmul.f32 %v79_v31, %v79_v31 }
  0x5f   :  { %v177_v18 = vadd.f32 %v176_v8, %v175_v12  ;;  %v374_v43 = vadd.f32 %v373_v34, %v372_v37  ;;  %v387_v12 = vsel %vm82_vm1, %v272_v63, 0.0  ;;  %v206_v34 = vsel %vm82_vm1, %v79_v31, 0.0  ;;  %v80_v37 = vld [vmem:[%s786_s0 + $0x1f8] sm:$0xff] }
  0x60   :  { %v283_v57 = vmul.f32 %v80_v37, %v80_v37 }
  0x61   :  { %v179_v24 = vadd.f32 %v178_v14, %v177_v18  ;;  %v376_v49 = vadd.f32 %v375_v40, %v374_v43  ;;  %v389_v18 = vsel %vm82_vm1, %v273_v5, 0.0  ;;  %v208_v40 = vsel %vm82_vm1, %v80_v37, 0.0 }
  0x63   :  { %v181_v30 = vadd.f32 %v180_v20, %v179_v24  ;;  %v378_v55 = vadd.f32 %v377_v46, %v376_v49  ;;  %v391_v24 = vsel %vm82_vm1, %v274_v11, 0.0  ;;  %v399_v46 = vsel %vm82_vm1, %v278_v35, 0.0 }
  0x64   :  { %v281_v49 = vmul.f32 %v78_v25, %v78_v25 }
  0x65   :  { %v183_v36 = vadd.f32 %v182_v26, %v181_v30  ;;  %v380_v61 = vadd.f32 %v379_v52, %v378_v55  ;;  %v393_v30 = vsel %vm82_vm1, %v275_v17, 0.0 }
  0x67   :  { %v185_v42 = vadd.f32 %v184_v32, %v183_v36  ;;  %v382_v3 = vadd.f32 %v381_v58, %v380_v61  ;;  %v395_v36 = vsel %vm82_vm1, %v276_v23, 0.0  ;;  %v405_v58 = vsel %vm82_vm1, %v281_v49, 0.0 }
  0x68   :  { %v407_v61 = vsel %vm82_vm1, %v282_v53, 0.0 }
  0x69   :  { %v187_v48 = vadd.f32 %v186_v38, %v185_v42  ;;  %v384_v9 = vadd.f32 %v383_v0, %v382_v3  ;;  %v397_v42 = vsel %vm82_vm1, %v277_v29, 0.0  ;;  %v409_v0 = vsel %vm82_vm1, %v283_v57, 0.0  ;;  %v81_v3 = vld [vmem:[%s787_s1] sm:$0x1] }
  0x6b   :  { %v189_v54 = vadd.f32 %v188_v44, %v187_v48  ;;  %v386_v15 = vadd.f32 %v385_v6, %v384_v9 }
  0x6d   :  { %v191_v60 = vadd.f32 %v190_v50, %v189_v54  ;;  %v388_v21 = vadd.f32 %v387_v12, %v386_v15  ;;  %v401_v50 = vsel %vm82_vm1, %v279_v41, 0.0  ;;  %v403_v54 = vsel %vm82_vm1, %v280_v45, 0.0  ;;  %v219_v12 = vld [vmem:[%s788_s2] sm:$0x1] }
  0x6f   :  { %v193_v2 = vadd.f32 %v192_v56, %v191_v60  ;;  %v390_v27 = vadd.f32 %v389_v18, %v388_v21 }
  0x71   :  { %v195_v8 = vadd.f32 %v194_v62, %v193_v2  ;;  %v392_v33 = vadd.f32 %v391_v24, %v390_v27 }
  0x73   :  { %v197_v14 = vadd.f32 %v196_v4, %v195_v8  ;;  %v394_v39 = vadd.f32 %v393_v30, %v392_v33 }
  0x75   :  { %v199_v20 = vadd.f32 %v198_v10, %v197_v14  ;;  %v396_v44 = vadd.f32 %v395_v36, %v394_v39 }
  0x77   :  { %v201_v26 = vadd.f32 %v200_v16, %v199_v20  ;;  %v398_v48 = vadd.f32 %v397_v42, %v396_v44 }
  0x79   :  { %v203_v32 = vadd.f32 %v202_v22, %v201_v26  ;;  %v400_v52 = vadd.f32 %v399_v46, %v398_v48 }
  0x7b   :  { %v205_v38 = vadd.f32 %v204_v28, %v203_v32  ;;  %v402_v56 = vadd.f32 %v401_v50, %v400_v52 }
  0x7d   :  { %v207_v43 = vadd.f32 %v206_v34, %v205_v38  ;;  %v404_v60 = vadd.f32 %v403_v54, %v402_v56 }
  0x7f   :  { %v209_v47 = vadd.f32 %v208_v40, %v207_v43  ;;  %v406_v63 = vadd.f32 %v405_v58, %v404_v60 }
  0x81   :  { %v210_v51 = vrot.slane %v209_v47, 4  ;;  %v408_v2 = vadd.f32 %v407_v61, %v406_v63 }
  0x83   :  { %v211_v55 = vadd.f32 %v210_v51, %v209_v47  ;;  %v410_v5 = vadd.f32 %v409_v0, %v408_v2 }
  0x85   :  { %v212_v59 = vrot.slane %v211_v55, 2  ;;  %v411_v7 = vrot.slane %v410_v5, 4 }
  0x87   :  { %v213_v62 = vadd.f32 %v212_v59, %v211_v55  ;;  %v412_v8 = vadd.f32 %v411_v7, %v410_v5 }
  0x89   :  { %v214_v1 = vrot.slane %v213_v62, 1  ;;  %v413_v9 = vrot.slane %v412_v8, 2 }
  0x8b   :  { %v215_v4 = vadd.f32 %v214_v1, %v213_v62  ;;  %v414_v10 = vadd.f32 %v413_v9, %v412_v8 }
  0x8d   :  { %v216_v6 = vadd.f32 %v215_v4, %v81_v3  ;;  %v415_v11 = vrot.slane %v414_v10, 1 }
  0x8f   :  { %218 = vst.msk [vmem:[%s787_s1] sm:$0x1] %vm14_vm0, %v216_v6  ;;  %v416_v13 = vadd.f32 %v415_v11, %v414_v10 }
  0x91   :  { %v417_v14 = vadd.f32 %v416_v13, %v219_v12 }
  0x93   :  { %418 = vst.msk [vmem:[%s788_s2] sm:$0x1] %vm14_vm0, %v417_v14 }

// kernel: bottleneck_forward.7
= control target key start
LH: loop header
LB: loop body
LE: loop exit
PB: predicated region body
PF: predicated region fallthrough
CT: control target
= control target key end

     0   :  { %vm542_vm0 = vcmask 1043456   ;;  %vm349_vm1 = vcmask 31744   ;;  %vm755_vm2 = vcmask 130048   ;;  %s1769_s3 = inlined_call_operand.vmem [shape: f32[4,16], index: 3, kind: input, shape index: {}]   ;;  %s1770_s0 = inlined_call_operand.vmem [shape: f32[512,4], index: 0, kind: input, shape index: {}]   ;;  %s1771_s1 = inlined_call_operand.vmem [shape: f32[1,4], index: 1, kind: input, shape index: {}]   ;;  %s1772_s2 = inlined_call_operand.vmem [shape: f32[1,4], index: 2, kind: input, shape index: {}]   ;;  %s1773_s4 = inlined_call_operand.vmem [shape: f32[512,16], index: 4, kind: input, shape index: {}]   ;;  %s1774_s5 = inlined_call_operand.vmem [shape: f32[512,16], index: 5, kind: output, shape index: {}]  }
   0x1   :  { %v284_v0 = vld [vmem:[%s1769_s3] sm:$0xf]  ;;  %v53_v11 = vld [vmem:[%s1770_s0 + $0x108] sm:$0xff]  ;;  %v54_v31 = vld [vmem:[%s1770_s0 + $0x110] sm:$0xff] }
   0x2   :  { %v52_v1 = vld [vmem:[%s1770_s0 + $0x100] sm:$0xff]  ;;  %890 = vmatpush.msk.msra.mxu2 %vm542_vm0, %v284_v0  ;;  %891 = vmatpush.msk.msra.mxu3 %vm542_vm0, %v284_v0  ;;  %v69_v12 = vld [vmem:[%s1770_s0 + $0x188] sm:$0xff]  ;;  %v70_v32 = vld [vmem:[%s1770_s0 + $0x190] sm:$0xff] }
   0x3   :  { %v933_v2 = vld [vmem:[%s1771_s1] ss:$0 sm:$0xff]  ;;  %824 = vmatpush.msk.msra.mxu0 %vm542_vm0, %v284_v0  ;;  %889 = vmatpush.msk.msra.mxu1 %vm542_vm0, %v284_v0  ;;  %v21_v13 = vld [vmem:[%s1770_s0 + $0x8] sm:$0xff]  ;;  %v22_v33 = vld [vmem:[%s1770_s0 + $0x10] sm:$0xff] }
   0x4   :  { %v938_v3 = vld [vmem:[%s1772_s2] ss:$0 sm:$0xff]  ;;  %v120_v7 = vmul.f32 %v933_v2, %v52_v1  ;;  %v121_v14 = vmul.f32 %v933_v2, %v53_v11  ;;  %v137_v15 = vmul.f32 %v933_v2, %v69_v12  ;;  %v37_v16 = vld [vmem:[%s1770_s0 + $0x88] sm:$0xff]  ;;  %v89_v21 = vmul.f32 %v933_v2, %v21_v13  ;;  %v38_v34 = vld [vmem:[%s1770_s0 + $0x90] sm:$0xff] }
   0x5   :  { %v68_v4 = vld [vmem:[%s1770_s0 + $0x180] sm:$0xff]  ;;  %v105_v22 = vmul.f32 %v933_v2, %v37_v16  ;;  %v122_v37 = vmul.f32 %v933_v2, %v54_v31  ;;  %v138_v38 = vmul.f32 %v933_v2, %v70_v32  ;;  %v90_v41 = vmul.f32 %v933_v2, %v22_v33  ;;  %v55_v47 = vld [vmem:[%s1770_s0 + $0x118] sm:$0xff]  ;;  %v58_v33 = vld [vmem:[%s1770_s0 + $0x130] sm:$0xff] }
   0x6   :  { %v20_v5 = vld [vmem:[%s1770_s0] sm:$0xff]  ;;  %v136_v8 = vmul.f32 %v933_v2, %v68_v4  ;;  %v188_v17 = vadd.f32 %v938_v3, %v120_v7  ;;  %v189_v27 = vadd.f32 %v938_v3, %v121_v14  ;;  %v205_v28 = vadd.f32 %v938_v3, %v137_v15  ;;  %v71_v48 = vld [vmem:[%s1770_s0 + $0x198] sm:$0xff] }
   0x7   :  { %v36_v6 = vld [vmem:[%s1770_s0 + $0x80] sm:$0xff]  ;;  %v88_v9 = vmul.f32 %v933_v2, %v20_v5  ;;  %v157_v29 = vadd.f32 %v938_v3, %v89_v21  ;;  %v173_v30 = vadd.f32 %v938_v3, %v105_v22  ;;  %v106_v42 = vmul.f32 %v933_v2, %v38_v34  ;;  %v23_v49 = vld [vmem:[%s1770_s0 + $0x18] sm:$0xff]  ;;  %v74_v34 = vld [vmem:[%s1770_s0 + $0x1b0] sm:$0xff] }
   0x8   :  { %v104_v10 = vmul.f32 %v933_v2, %v36_v6  ;;  %v204_v18 = vadd.f32 %v938_v3, %v136_v8  ;;  %v252_v23 = vmax.f32 %v188_v17, 0.0  ;;  %v253_v35 = vmax.f32 %v189_v27, 0.0  ;;  %v39_v50 = vld [vmem:[%s1770_s0 + $0x98] sm:$0xff]  ;;  %v56_v63 = vld [vmem:[%s1770_s0 + $0x120] sm:$0xff]  ;;  %v57_v17 = vld [vmem:[%s1770_s0 + $0x128] sm:$0xff] }
   0x9   :  { %v156_v19 = vadd.f32 %v938_v3, %v88_v9  ;;  %v269_v36 = vmax.f32 %v205_v28, 0.0  ;;  %v221_v39 = vmax.f32 %v157_v29, 0.0  ;;  %v237_v40 = vmax.f32 %v173_v30, 0.0  ;;  %v72_v0 = vld [vmem:[%s1770_s0 + $0x1a0] sm:$0xff] }
   0xa   :  { %v172_v20 = vadd.f32 %v938_v3, %v104_v10  ;;  %v268_v24 = vmax.f32 %v204_v18, 0.0  ;;  %857 = vmatmul.msk.f32.vlgmr.msra.gmra.mxu2 %vm349_vm1, %v252_v23  ;;  %v190_v43 = vadd.f32 %v938_v3, %v122_v37  ;;  %v206_v44 = vadd.f32 %v938_v3, %v138_v38  ;;  %v24_v1 = vld [vmem:[%s1770_s0 + $0x20] sm:$0xff]  ;;  %v73_v18 = vld [vmem:[%s1770_s0 + $0x1a8] sm:$0xff] }
   0xb   :  { %v220_v25 = vmax.f32 %v156_v19, 0.0  ;;  %v158_v45 = vadd.f32 %v938_v3, %v90_v41  ;;  %v174_v46 = vadd.f32 %v938_v3, %v106_v42  ;;  %v123_v53 = vmul.f32 %v933_v2, %v55_v47  ;;  %v40_v4 = vld [vmem:[%s1770_s0 + $0xa0] sm:$0xff]  ;;  %v25_v19 = vld [vmem:[%s1770_s0 + $0x28] sm:$0xff] }
   0xc   :  { %v236_v26 = vmax.f32 %v172_v20, 0.0  ;;  %873 = vmatmul.msk.f32.vlgmr.msra.gmra.mxu3 %vm349_vm1, %v268_v24  ;;  %v254_v51 = vmax.f32 %v190_v43, 0.0  ;;  %v270_v52 = vmax.f32 %v206_v44, 0.0  ;;  %v139_v54 = vmul.f32 %v933_v2, %v71_v48  ;;  %v41_v20 = vld [vmem:[%s1770_s0 + $0xa8] sm:$0xff] }
   0xd   :  { %825 = vmatmul.msk.f32.vlgmr.msra.gmra.mxu0 %vm349_vm1, %v220_v25  ;;  %v222_v55 = vmax.f32 %v158_v45, 0.0  ;;  %v238_v56 = vmax.f32 %v174_v46, 0.0  ;;  %v91_v57 = vmul.f32 %v933_v2, %v23_v49  ;;  %v107_v58 = vmul.f32 %v933_v2, %v39_v50  ;;  %v59_v49 = vld [vmem:[%s1770_s0 + $0x138] sm:$0xff] }
   0xe   :  { %841 = vmatmul.msk.f32.vlgmr.msra.gmra.mxu1 %vm349_vm1, %v236_v26  ;;  %v191_v59 = vadd.f32 %v938_v3, %v123_v53  ;;  %v207_v60 = vadd.f32 %v938_v3, %v139_v54  ;;  %v124_v7 = vmul.f32 %v933_v2, %v56_v63  ;;  %v140_v8 = vmul.f32 %v933_v2, %v72_v0  ;;  %v75_v50 = vld [vmem:[%s1770_s0 + $0x1b8] sm:$0xff] }
   0xf   :  { %v159_v61 = vadd.f32 %v938_v3, %v91_v57  ;;  %v175_v62 = vadd.f32 %v938_v3, %v107_v58  ;;  %v92_v11 = vmul.f32 %v933_v2, %v24_v1  ;;  %v108_v12 = vmul.f32 %v933_v2, %v40_v4  ;;  %v60_v1 = vld [vmem:[%s1770_s0 + $0x140] sm:$0xff] }
  0x10   :  { %v255_v5 = vmax.f32 %v191_v59, 0.0  ;;  %v271_v6 = vmax.f32 %v207_v60, 0.0  ;;  %v192_v13 = vadd.f32 %v938_v3, %v124_v7  ;;  %v208_v14 = vadd.f32 %v938_v3, %v140_v8  ;;  %v76_v4 = vld [vmem:[%s1770_s0 + $0x1c0] sm:$0xff] }
  0x11   :  { %v223_v9 = vmax.f32 %v159_v61, 0.0  ;;  %v239_v10 = vmax.f32 %v175_v62, 0.0  ;;  %v160_v15 = vadd.f32 %v938_v3, %v92_v11  ;;  %v176_v16 = vadd.f32 %v938_v3, %v108_v12 }
  0x12   :  { %858 = vmatmul.msk.f32.gmra.mxu2 %vm349_vm1, %v253_v35  ;;  %v256_v21 = vmax.f32 %v192_v13, 0.0  ;;  %v272_v22 = vmax.f32 %v208_v14, 0.0  ;;  %v125_v23 = vmul.f32 %v933_v2, %v57_v17  ;;  %v141_v24 = vmul.f32 %v933_v2, %v73_v18  ;;  %v26_v35 = vld [vmem:[%s1770_s0 + $0x30] sm:$0xff] }
  0x13   :  { %v224_v25 = vmax.f32 %v160_v15, 0.0  ;;  %v240_v26 = vmax.f32 %v176_v16, 0.0  ;;  %v93_v27 = vmul.f32 %v933_v2, %v25_v19  ;;  %v109_v28 = vmul.f32 %v933_v2, %v41_v20  ;;  %v61_v19 = vld [vmem:[%s1770_s0 + $0x148] sm:$0xff] }
  0x14   :  { %874 = vmatmul.msk.f32.gmra.mxu3 %vm349_vm1, %v269_v36  ;;  %v193_v29 = vadd.f32 %v938_v3, %v125_v23  ;;  %v209_v30 = vadd.f32 %v938_v3, %v141_v24  ;;  %v42_v36 = vld [vmem:[%s1770_s0 + $0xb0] sm:$0xff]  ;;  %v94_v43 = vmul.f32 %v933_v2, %v26_v35  ;;  %v77_v20 = vld [vmem:[%s1770_s0 + $0x1c8] sm:$0xff] }
  0x15   :  { %826 = vmatmul.msk.f32.gmra.mxu0 %vm349_vm1, %v221_v39  ;;  %v161_v31 = vadd.f32 %v938_v3, %v93_v27  ;;  %v177_v32 = vadd.f32 %v938_v3, %v109_v28  ;;  %v126_v39 = vmul.f32 %v933_v2, %v58_v33  ;;  %v110_v44 = vmul.f32 %v933_v2, %v42_v36  ;;  %v62_v35 = vld [vmem:[%s1770_s0 + $0x150] sm:$0xff] }
  0x16   :  { %842 = vmatmul.msk.f32.gmra.mxu1 %vm349_vm1, %v237_v40  ;;  %v257_v37 = vmax.f32 %v193_v29, 0.0  ;;  %v273_v38 = vmax.f32 %v209_v30, 0.0  ;;  %v142_v40 = vmul.f32 %v933_v2, %v74_v34  ;;  %v162_v47 = vadd.f32 %v938_v3, %v94_v43  ;;  %v78_v36 = vld [vmem:[%s1770_s0 + $0x1d0] sm:$0xff] }
  0x17   :  { %v225_v41 = vmax.f32 %v161_v31, 0.0  ;;  %v241_v42 = vmax.f32 %v177_v32, 0.0  ;;  %v194_v45 = vadd.f32 %v938_v3, %v126_v39  ;;  %v178_v48 = vadd.f32 %v938_v3, %v110_v44 }
  0x18   :  { %v210_v46 = vadd.f32 %v938_v3, %v142_v40  ;;  %v226_v57 = vmax.f32 %v162_v47, 0.0 }
  0x19   :  { %v258_v53 = vmax.f32 %v194_v45, 0.0  ;;  %v242_v58 = vmax.f32 %v178_v48, 0.0 }
  0x1a   :  { %859 = vmatmul.msk.f32.gmra.mxu2 %vm349_vm1, %v254_v51  ;;  %v27_v51 = vld [vmem:[%s1770_s0 + $0x38] sm:$0xff]  ;;  %v274_v54 = vmax.f32 %v210_v46, 0.0 }
  0x1b   :  { %v95_v59 = vmul.f32 %v933_v2, %v27_v51  ;;  %v63_v51 = vld [vmem:[%s1770_s0 + $0x158] sm:$0xff] }
  0x1c   :  { %875 = vmatmul.msk.f32.gmra.mxu3 %vm349_vm1, %v270_v52  ;;  %v43_v52 = vld [vmem:[%s1770_s0 + $0xb8] sm:$0xff] }
  0x1d   :  { %827 = vmatmul.msk.f32.gmra.mxu0 %vm349_vm1, %v222_v55  ;;  %v127_v55 = vmul.f32 %v933_v2, %v59_v49  ;;  %v111_v60 = vmul.f32 %v933_v2, %v43_v52  ;;  %v163_v63 = vadd.f32 %v938_v3, %v95_v59  ;;  %v79_v52 = vld [vmem:[%s1770_s0 + $0x1d8] sm:$0xff] }
  0x1e   :  { %843 = vmatmul.msk.f32.gmra.mxu1 %vm349_vm1, %v238_v56  ;;  %v143_v56 = vmul.f32 %v933_v2, %v75_v50 }
  0x1f   :  { %v195_v61 = vadd.f32 %v938_v3, %v127_v55  ;;  %v179_v0 = vadd.f32 %v938_v3, %v111_v60  ;;  %v227_v11 = vmax.f32 %v163_v63, 0.0 }
  0x20   :  { %v211_v62 = vadd.f32 %v938_v3, %v143_v56 }
  0x21   :  { %v259_v7 = vmax.f32 %v195_v61, 0.0  ;;  %v243_v12 = vmax.f32 %v179_v0, 0.0 }
  0x22   :  { %860 = vmatmul.msk.f32.gmra.mxu2 %vm349_vm1, %v255_v5  ;;  %v28_v5 = vld [vmem:[%s1770_s0 + $0x40] sm:$0xff]  ;;  %v275_v8 = vmax.f32 %v211_v62, 0.0 }
  0x23   :  { %v96_v13 = vmul.f32 %v933_v2, %v28_v5  ;;  %v64_v5 = vld [vmem:[%s1770_s0 + $0x160] sm:$0xff] }
  0x24   :  { %876 = vmatmul.msk.f32.gmra.mxu3 %vm349_vm1, %v271_v6  ;;  %v44_v6 = vld [vmem:[%s1770_s0 + $0xc0] sm:$0xff] }
  0x25   :  { %828 = vmatmul.msk.f32.gmra.mxu0 %vm349_vm1, %v223_v9  ;;  %v128_v9 = vmul.f32 %v933_v2, %v60_v1  ;;  %v112_v14 = vmul.f32 %v933_v2, %v44_v6  ;;  %v164_v17 = vadd.f32 %v938_v3, %v96_v13  ;;  %v80_v6 = vld [vmem:[%s1770_s0 + $0x1e0] sm:$0xff] }
  0x26   :  { %844 = vmatmul.msk.f32.gmra.mxu1 %vm349_vm1, %v239_v10  ;;  %v144_v10 = vmul.f32 %v933_v2, %v76_v4 }
  0x27   :  { %v196_v15 = vadd.f32 %v938_v3, %v128_v9  ;;  %v180_v18 = vadd.f32 %v938_v3, %v112_v14  ;;  %v228_v27 = vmax.f32 %v164_v17, 0.0 }
  0x28   :  { %v212_v16 = vadd.f32 %v938_v3, %v144_v10 }
  0x29   :  { %v260_v23 = vmax.f32 %v196_v15, 0.0  ;;  %v244_v28 = vmax.f32 %v180_v18, 0.0 }
  0x2a   :  { %861 = vmatmul.msk.f32.gmra.mxu2 %vm349_vm1, %v256_v21  ;;  %v29_v21 = vld [vmem:[%s1770_s0 + $0x48] sm:$0xff]  ;;  %v276_v24 = vmax.f32 %v212_v16, 0.0 }
  0x2b   :  { %v97_v29 = vmul.f32 %v933_v2, %v29_v21  ;;  %v65_v21 = vld [vmem:[%s1770_s0 + $0x168] sm:$0xff] }
  0x2c   :  { %877 = vmatmul.msk.f32.gmra.mxu3 %vm349_vm1, %v272_v22  ;;  %v45_v22 = vld [vmem:[%s1770_s0 + $0xc8] sm:$0xff] }
  0x2d   :  { %829 = vmatmul.msk.f32.gmra.mxu0 %vm349_vm1, %v224_v25  ;;  %v129_v25 = vmul.f32 %v933_v2, %v61_v19  ;;  %v113_v30 = vmul.f32 %v933_v2, %v45_v22  ;;  %v165_v33 = vadd.f32 %v938_v3, %v97_v29  ;;  %v81_v22 = vld [vmem:[%s1770_s0 + $0x1e8] sm:$0xff] }
  0x2e   :  { %845 = vmatmul.msk.f32.gmra.mxu1 %vm349_vm1, %v240_v26  ;;  %v145_v26 = vmul.f32 %v933_v2, %v77_v20 }
  0x2f   :  { %v197_v31 = vadd.f32 %v938_v3, %v129_v25  ;;  %v181_v34 = vadd.f32 %v938_v3, %v113_v30  ;;  %v229_v43 = vmax.f32 %v165_v33, 0.0 }
  0x30   :  { %v213_v32 = vadd.f32 %v938_v3, %v145_v26 }
  0x31   :  { %v261_v39 = vmax.f32 %v197_v31, 0.0  ;;  %v245_v44 = vmax.f32 %v181_v34, 0.0 }
  0x32   :  { %862 = vmatmul.msk.f32.gmra.mxu2 %vm349_vm1, %v257_v37  ;;  %v30_v37 = vld [vmem:[%s1770_s0 + $0x50] sm:$0xff]  ;;  %v277_v40 = vmax.f32 %v213_v32, 0.0 }
  0x33   :  { %v98_v45 = vmul.f32 %v933_v2, %v30_v37  ;;  %v66_v37 = vld [vmem:[%s1770_s0 + $0x170] sm:$0xff] }
  0x34   :  { %878 = vmatmul.msk.f32.gmra.mxu3 %vm349_vm1, %v273_v38  ;;  %v46_v38 = vld [vmem:[%s1770_s0 + $0xd0] sm:$0xff] }
  0x35   :  { %830 = vmatmul.msk.f32.gmra.mxu0 %vm349_vm1, %v225_v41  ;;  %v130_v41 = vmul.f32 %v933_v2, %v62_v35  ;;  %v114_v46 = vmul.f32 %v933_v2, %v46_v38  ;;  %v166_v49 = vadd.f32 %v938_v3, %v98_v45  ;;  %v82_v38 = vld [vmem:[%s1770_s0 + $0x1f0] sm:$0xff] }
  0x36   :  { %846 = vmatmul.msk.f32.gmra.mxu1 %vm349_vm1, %v241_v42  ;;  %v146_v42 = vmul.f32 %v933_v2, %v78_v36 }
  0x37   :  { %v198_v47 = vadd.f32 %v938_v3, %v130_v41  ;;  %v182_v50 = vadd.f32 %v938_v3, %v114_v46  ;;  %v230_v59 = vmax.f32 %v166_v49, 0.0 }
  0x38   :  { %v214_v48 = vadd.f32 %v938_v3, %v146_v42 }
  0x39   :  { %v262_v55 = vmax.f32 %v198_v47, 0.0  ;;  %v246_v60 = vmax.f32 %v182_v50, 0.0 }
  0x3a   :  { %863 = vmatmul.msk.f32.gmra.mxu2 %vm349_vm1, %v258_v53  ;;  %v31_v53 = vld [vmem:[%s1770_s0 + $0x58] sm:$0xff]  ;;  %v278_v56 = vmax.f32 %v214_v48, 0.0 }
  0x3b   :  { %v99_v61 = vmul.f32 %v933_v2, %v31_v53  ;;  %v67_v53 = vld [vmem:[%s1770_s0 + $0x178] sm:$0xff] }
  0x3c   :  { %879 = vmatmul.msk.f32.gmra.mxu3 %vm349_vm1, %v274_v54  ;;  %v47_v54 = vld [vmem:[%s1770_s0 + $0xd8] sm:$0xff] }
  0x3d   :  { %831 = vmatmul.msk.f32.gmra.mxu0 %vm349_vm1, %v226_v57  ;;  %v131_v57 = vmul.f32 %v933_v2, %v63_v51  ;;  %v115_v62 = vmul.f32 %v933_v2, %v47_v54  ;;  %v167_v1 = vadd.f32 %v938_v3, %v99_v61  ;;  %v83_v54 = vld [vmem:[%s1770_s0 + $0x1f8] sm:$0xff] }
  0x3e   :  { %847 = vmatmul.msk.f32.gmra.mxu1 %vm349_vm1, %v242_v58  ;;  %v147_v58 = vmul.f32 %v933_v2, %v79_v52 }
  0x3f   :  { %v199_v63 = vadd.f32 %v938_v3, %v131_v57  ;;  %v183_v4 = vadd.f32 %v938_v3, %v115_v62  ;;  %v231_v13 = vmax.f32 %v167_v1, 0.0 }
  0x40   :  { %v215_v0 = vadd.f32 %v938_v3, %v147_v58 }
  0x41   :  { %v263_v9 = vmax.f32 %v199_v63, 0.0  ;;  %v247_v14 = vmax.f32 %v183_v4, 0.0 }
  0x42   :  { %864 = vmatmul.msk.f32.gmra.mxu2 %vm349_vm1, %v259_v7  ;;  %v32_v7 = vld [vmem:[%s1770_s0 + $0x60] sm:$0xff]  ;;  %v279_v10 = vmax.f32 %v215_v0, 0.0 }
  0x43   :  { %v100_v15 = vmul.f32 %v933_v2, %v32_v7 }
  0x44   :  { %880 = vmatmul.msk.f32.gmra.mxu3 %vm349_vm1, %v275_v8  ;;  %v48_v8 = vld [vmem:[%s1770_s0 + $0xe0] sm:$0xff] }
  0x45   :  { %832 = vmatmul.msk.f32.gmra.mxu0 %vm349_vm1, %v227_v11  ;;  %v132_v11 = vmul.f32 %v933_v2, %v64_v5  ;;  %v116_v16 = vmul.f32 %v933_v2, %v48_v8  ;;  %v168_v19 = vadd.f32 %v938_v3, %v100_v15  ;;  %v317_v15 = vld [vmem:[%s1773_s4 + $0x100] sm:$0xff] }
  0x46   :  { %848 = vmatmul.msk.f32.gmra.mxu1 %vm349_vm1, %v243_v12  ;;  %v148_v12 = vmul.f32 %v933_v2, %v80_v6 }
  0x47   :  { %v200_v17 = vadd.f32 %v938_v3, %v132_v11  ;;  %v184_v20 = vadd.f32 %v938_v3, %v116_v16  ;;  %v232_v29 = vmax.f32 %v168_v19, 0.0  ;;  %v333_v16 = vld [vmem:[%s1773_s4 + $0x180] sm:$0xff] }
  0x48   :  { %v216_v18 = vadd.f32 %v938_v3, %v148_v12 }
  0x49   :  { %v264_v25 = vmax.f32 %v200_v17, 0.0  ;;  %v248_v30 = vmax.f32 %v184_v20, 0.0 }
  0x4a   :  { %865 = vmatmul.msk.f32.gmra.mxu2 %vm349_vm1, %v260_v23  ;;  %v33_v23 = vld [vmem:[%s1770_s0 + $0x68] sm:$0xff]  ;;  %v280_v26 = vmax.f32 %v216_v18, 0.0 }
  0x4b   :  { %v101_v31 = vmul.f32 %v933_v2, %v33_v23 }
  0x4c   :  { %881 = vmatmul.msk.f32.gmra.mxu3 %vm349_vm1, %v276_v24  ;;  %v49_v24 = vld [vmem:[%s1770_s0 + $0xe8] sm:$0xff] }
  0x4d   :  { %833 = vmatmul.msk.f32.gmra.mxu0 %vm349_vm1, %v228_v27  ;;  %v133_v27 = vmul.f32 %v933_v2, %v65_v21  ;;  %v117_v32 = vmul.f32 %v933_v2, %v49_v24  ;;  %v169_v35 = vadd.f32 %v938_v3, %v101_v31  ;;  %v286_v21 = vld [vmem:[%s1773_s4 + $0x8] sm:$0xff] }
  0x4e   :  { %849 = vmatmul.msk.f32.gmra.mxu1 %vm349_vm1, %v244_v28  ;;  %v149_v28 = vmul.f32 %v933_v2, %v81_v22  ;;  %v302_v22 = vld [vmem:[%s1773_s4 + $0x88] sm:$0xff] }
  0x4f   :  { %v201_v33 = vadd.f32 %v938_v3, %v133_v27  ;;  %v185_v36 = vadd.f32 %v938_v3, %v117_v32  ;;  %v233_v45 = vmax.f32 %v169_v35, 0.0  ;;  %v318_v27 = vld [vmem:[%s1773_s4 + $0x108] sm:$0xff] }
  0x50   :  { %v217_v34 = vadd.f32 %v938_v3, %v149_v28  ;;  %v334_v28 = vld [vmem:[%s1773_s4 + $0x188] sm:$0xff] }
  0x51   :  { %v265_v41 = vmax.f32 %v201_v33, 0.0  ;;  %v249_v46 = vmax.f32 %v185_v36, 0.0  ;;  %v287_v33 = vld [vmem:[%s1773_s4 + $0x10] sm:$0xff] }
  0x52   :  { %866 = vmatmul.msk.f32.gmra.mxu2 %vm349_vm1, %v261_v39  ;;  %v34_v39 = vld [vmem:[%s1770_s0 + $0x70] sm:$0xff]  ;;  %v281_v42 = vmax.f32 %v217_v34, 0.0 }
  0x53   :  { %v102_v47 = vmul.f32 %v933_v2, %v34_v39  ;;  %v303_v34 = vld [vmem:[%s1773_s4 + $0x90] sm:$0xff] }
  0x54   :  { %882 = vmatmul.msk.f32.gmra.mxu3 %vm349_vm1, %v277_v40  ;;  %v50_v40 = vld [vmem:[%s1770_s0 + $0xf0] sm:$0xff] }
  0x55   :  { %834 = vmatmul.msk.f32.gmra.mxu0 %vm349_vm1, %v229_v43  ;;  %v134_v43 = vmul.f32 %v933_v2, %v66_v37  ;;  %v118_v48 = vmul.f32 %v933_v2, %v50_v40  ;;  %v170_v51 = vadd.f32 %v938_v3, %v102_v47  ;;  %v319_v39 = vld [vmem:[%s1773_s4 + $0x110] sm:$0xff] }
  0x56   :  { %850 = vmatmul.msk.f32.gmra.mxu1 %vm349_vm1, %v245_v44  ;;  %v150_v44 = vmul.f32 %v933_v2, %v82_v38  ;;  %v335_v40 = vld [vmem:[%s1773_s4 + $0x190] sm:$0xff] }
  0x57   :  { %v202_v49 = vadd.f32 %v938_v3, %v134_v43  ;;  %v186_v52 = vadd.f32 %v938_v3, %v118_v48  ;;  %v234_v61 = vmax.f32 %v170_v51, 0.0  ;;  %v320_v51 = vld [vmem:[%s1773_s4 + $0x118] sm:$0xff] }
  0x58   :  { %v218_v50 = vadd.f32 %v938_v3, %v150_v44 }
  0x59   :  { %v266_v57 = vmax.f32 %v202_v49, 0.0  ;;  %v250_v62 = vmax.f32 %v186_v52, 0.0  ;;  %v336_v52 = vld [vmem:[%s1773_s4 + $0x198] sm:$0xff] }
  0x5a   :  { %867 = vmatmul.msk.f32.gmra.mxu2 %vm349_vm1, %v262_v55  ;;  %v35_v55 = vld [vmem:[%s1770_s0 + $0x78] sm:$0xff]  ;;  %v282_v58 = vmax.f32 %v218_v50, 0.0 }
  0x5b   :  { %v103_v63 = vmul.f32 %v933_v2, %v35_v55 }
  0x5c   :  { %883 = vmatmul.msk.f32.gmra.mxu3 %vm349_vm1, %v278_v56  ;;  %v51_v56 = vld [vmem:[%s1770_s0 + $0xf8] sm:$0xff] }
  0x5d   :  { %835 = vmatmul.msk.f32.gmra.mxu0 %vm349_vm1, %v230_v59  ;;  %v135_v59 = vmul.f32 %v933_v2, %v67_v53  ;;  %v119_v0 = vmul.f32 %v933_v2, %v51_v56  ;;  %v171_v5 = vadd.f32 %v938_v3, %v103_v63  ;;  %v321_v63 = vld [vmem:[%s1773_s4 + $0x120] sm:$0xff] }
  0x5e   :  { %851 = vmatmul.msk.f32.gmra.mxu1 %vm349_vm1, %v246_v60  ;;  %v151_v60 = vmul.f32 %v933_v2, %v83_v54 }
  0x5f   :  { %v203_v1 = vadd.f32 %v938_v3, %v135_v59  ;;  %v187_v6 = vadd.f32 %v938_v3, %v119_v0  ;;  %v337_v0 = vld [vmem:[%s1773_s4 + $0x1a0] sm:$0xff] }
  0x60   :  { %v219_v4 = vadd.f32 %v938_v3, %v151_v60  ;;  %v301_v3 = vld [vmem:[%s1773_s4 + $0x80] sm:$0xff] }
  0x61   :  { %v267_v7 = vmax.f32 %v203_v1, 0.0  ;;  %v251_v2 = vmax.f32 %v187_v6, 0.0 }
  0x62   :  { %868 = vmatmul.msk.f32.gmra.mxu2 %vm349_vm1, %v263_v9  ;;  %v283_v8 = vmax.f32 %v219_v4, 0.0  ;;  %v235_v9 = vmax.f32 %v171_v5, 0.0 }
  0x64   :  { %884 = vmatmul.msk.f32.gmra.mxu3 %vm349_vm1, %v279_v10  ;;  %v285_v10 = vld [vmem:[%s1773_s4] sm:$0xff] }
  0x65   :  { %836 = vmatmul.msk.f32.gmra.mxu0 %vm349_vm1, %v231_v13 }
  0x66   :  { %852 = vmatmul.msk.f32.gmra.mxu1 %vm349_vm1, %v247_v14 }
  0x6a   :  { %869 = vmatmul.msk.f32.gmra.mxu2 %vm349_vm1, %v264_v25 }
  0x6c   :  { %885 = vmatmul.msk.f32.gmra.mxu3 %vm349_vm1, %v280_v26 }
  0x6d   :  { %837 = vmatmul.msk.f32.gmra.mxu0 %vm349_vm1, %v232_v29 }
  0x6e   :  { %853 = vmatmul.msk.f32.gmra.mxu1 %vm349_vm1, %v248_v30 }
  0x72   :  { %870 = vmatmul.msk.f32.gmra.mxu2 %vm349_vm1, %v265_v41 }
  0x74   :  { %886 = vmatmul.msk.f32.gmra.mxu3 %vm349_vm1, %v281_v42 }
  0x75   :  { %838 = vmatmul.msk.f32.gmra.mxu0 %vm349_vm1, %v233_v45  ;;  %v288_v45 = vld [vmem:[%s1773_s4 + $0x18] sm:$0xff] }
  0x76   :  { %854 = vmatmul.msk.f32.gmra.mxu1 %vm349_vm1, %v249_v46  ;;  %v304_v46 = vld [vmem:[%s1773_s4 + $0x98] sm:$0xff] }
  0x7a   :  { %871 = vmatmul.msk.f32.gmra.mxu2 %vm349_vm1, %v266_v57  ;;  %v289_v57 = vld [vmem:[%s1773_s4 + $0x20] sm:$0xff] }
  0x7c   :  { %887 = vmatmul.msk.f32.gmra.mxu3 %vm349_vm1, %v282_v58  ;;  %v305_v58 = vld [vmem:[%s1773_s4 + $0xa0] sm:$0xff] }
  0x7d   :  { %839 = vmatmul.msk.f32.gmra.mxu0 %vm349_vm1, %v234_v61 }
  0x7e   :  { %855 = vmatmul.msk.f32.gmra.mxu1 %vm349_vm1, %v250_v62 }
  0x82   :  { %872 = vmatmul.msk.f32.gmra.mxu2 %vm349_vm1, %v267_v7  ;;  %v290_v7 = vld [vmem:[%s1773_s4 + $0x28] sm:$0xff] }
  0x84   :  { %888 = vmatmul.msk.f32.gmra.mxu3 %vm349_vm1, %v283_v8  ;;  %v306_v8 = vld [vmem:[%s1773_s4 + $0xa8] sm:$0xff] }
  0x85   :  { %840 = vmatmul.msk.f32.gmra.mxu0 %vm349_vm1, %v235_v9 }
  0x86   :  { %856 = vmatmul.msk.f32.gmra.mxu1 %vm349_vm1, %v251_v2 }
  0x8a   :  { %v563_v11 = vpop.f32.mrf.mxu0 }
  0x8b   :  { %v611_v12 = vpop.f32.mrf.mxu1  ;;  %v564_v13 = vadd.f32 %v563_v11, %v285_v10  ;;  %v322_v11 = vld [vmem:[%s1773_s4 + $0x128] sm:$0xff] }
  0x8c   :  { %v612_v14 = vadd.f32 %v611_v12, %v301_v3  ;;  %v338_v12 = vld [vmem:[%s1773_s4 + $0x1a8] sm:$0xff] }
  0x8d   :  { %756 = vst.msk [vmem:[%s1774_s5] sm:$0xff] %vm755_vm2, %v564_v13  ;;  %v659_v17 = vpop.f32.mrf.mxu2 }
  0x8e   :  { %772 = vst.msk [vmem:[%s1774_s5 + $0x80] sm:$0xff] %vm755_vm2, %v612_v14  ;;  %v660_v19 = vadd.f32 %v659_v17, %v317_v15  ;;  %v291_v17 = vld [vmem:[%s1773_s4 + $0x30] sm:$0xff] }
  0x8f   :  { %v707_v18 = vpop.f32.mrf.mxu3 }
  0x90   :  { %v708_v20 = vadd.f32 %v707_v18, %v333_v16  ;;  %788 = vst.msk [vmem:[%s1774_s5 + $0x100] sm:$0xff] %vm755_vm2, %v660_v19  ;;  %v307_v18 = vld [vmem:[%s1773_s4 + $0xb0] sm:$0xff] }
  0x92   :  { %v566_v23 = vpop.f32.mrf.mxu0  ;;  %804 = vst.msk [vmem:[%s1774_s5 + $0x180] sm:$0xff] %vm755_vm2, %v708_v20 }
  0x93   :  { %v614_v24 = vpop.f32.mrf.mxu1  ;;  %v567_v25 = vadd.f32 %v566_v23, %v286_v21  ;;  %v323_v23 = vld [vmem:[%s1773_s4 + $0x130] sm:$0xff] }
  0x94   :  { %v615_v26 = vadd.f32 %v614_v24, %v302_v22  ;;  %v339_v24 = vld [vmem:[%s1773_s4 + $0x1b0] sm:$0xff] }
  0x95   :  { %757 = vst.msk [vmem:[%s1774_s5 + $0x8] sm:$0xff] %vm755_vm2, %v567_v25  ;;  %v662_v29 = vpop.f32.mrf.mxu2 }
  0x96   :  { %773 = vst.msk [vmem:[%s1774_s5 + $0x88] sm:$0xff] %vm755_vm2, %v615_v26  ;;  %v663_v31 = vadd.f32 %v662_v29, %v318_v27  ;;  %v292_v29 = vld [vmem:[%s1773_s4 + $0x38] sm:$0xff] }
  0x97   :  { %v710_v30 = vpop.f32.mrf.mxu3 }
  0x98   :  { %v711_v32 = vadd.f32 %v710_v30, %v334_v28  ;;  %789 = vst.msk [vmem:[%s1774_s5 + $0x108] sm:$0xff] %vm755_vm2, %v663_v31  ;;  %v308_v30 = vld [vmem:[%s1773_s4 + $0xb8] sm:$0xff] }
  0x9a   :  { %v569_v35 = vpop.f32.mrf.mxu0  ;;  %805 = vst.msk [vmem:[%s1774_s5 + $0x188] sm:$0xff] %vm755_vm2, %v711_v32 }
  0x9b   :  { %v617_v36 = vpop.f32.mrf.mxu1  ;;  %v570_v37 = vadd.f32 %v569_v35, %v287_v33  ;;  %v324_v35 = vld [vmem:[%s1773_s4 + $0x138] sm:$0xff] }
  0x9c   :  { %v618_v38 = vadd.f32 %v617_v36, %v303_v34  ;;  %v340_v36 = vld [vmem:[%s1773_s4 + $0x1b8] sm:$0xff] }
  0x9d   :  { %758 = vst.msk [vmem:[%s1774_s5 + $0x10] sm:$0xff] %vm755_vm2, %v570_v37  ;;  %v665_v41 = vpop.f32.mrf.mxu2 }
  0x9e   :  { %774 = vst.msk [vmem:[%s1774_s5 + $0x90] sm:$0xff] %vm755_vm2, %v618_v38  ;;  %v666_v43 = vadd.f32 %v665_v41, %v319_v39  ;;  %v293_v41 = vld [vmem:[%s1773_s4 + $0x40] sm:$0xff] }
  0x9f   :  { %v713_v42 = vpop.f32.mrf.mxu3 }
  0xa0   :  { %v714_v44 = vadd.f32 %v713_v42, %v335_v40  ;;  %790 = vst.msk [vmem:[%s1774_s5 + $0x110] sm:$0xff] %vm755_vm2, %v666_v43  ;;  %v309_v42 = vld [vmem:[%s1773_s4 + $0xc0] sm:$0xff] }
  0xa2   :  { %v572_v47 = vpop.f32.mrf.mxu0  ;;  %806 = vst.msk [vmem:[%s1774_s5 + $0x190] sm:$0xff] %vm755_vm2, %v714_v44 }
  0xa3   :  { %v620_v48 = vpop.f32.mrf.mxu1  ;;  %v573_v49 = vadd.f32 %v572_v47, %v288_v45  ;;  %v325_v47 = vld [vmem:[%s1773_s4 + $0x140] sm:$0xff] }
  0xa4   :  { %v621_v50 = vadd.f32 %v620_v48, %v304_v46  ;;  %v341_v48 = vld [vmem:[%s1773_s4 + $0x1c0] sm:$0xff] }
  0xa5   :  { %759 = vst.msk [vmem:[%s1774_s5 + $0x18] sm:$0xff] %vm755_vm2, %v573_v49  ;;  %v668_v53 = vpop.f32.mrf.mxu2 }
  0xa6   :  { %775 = vst.msk [vmem:[%s1774_s5 + $0x98] sm:$0xff] %vm755_vm2, %v621_v50  ;;  %v669_v55 = vadd.f32 %v668_v53, %v320_v51  ;;  %v294_v53 = vld [vmem:[%s1773_s4 + $0x48] sm:$0xff] }
  0xa7   :  { %v716_v54 = vpop.f32.mrf.mxu3 }
  0xa8   :  { %v717_v56 = vadd.f32 %v716_v54, %v336_v52  ;;  %791 = vst.msk [vmem:[%s1774_s5 + $0x118] sm:$0xff] %vm755_vm2, %v669_v55  ;;  %v310_v54 = vld [vmem:[%s1773_s4 + $0xc8] sm:$0xff] }
  0xaa   :  { %v575_v59 = vpop.f32.mrf.mxu0  ;;  %807 = vst.msk [vmem:[%s1774_s5 + $0x198] sm:$0xff] %vm755_vm2, %v717_v56 }
  0xab   :  { %v623_v60 = vpop.f32.mrf.mxu1  ;;  %v576_v61 = vadd.f32 %v575_v59, %v289_v57  ;;  %v326_v59 = vld [vmem:[%s1773_s4 + $0x148] sm:$0xff] }
  0xac   :  { %v624_v62 = vadd.f32 %v623_v60, %v305_v58  ;;  %v342_v60 = vld [vmem:[%s1773_s4 + $0x1c8] sm:$0xff] }
  0xad   :  { %760 = vst.msk [vmem:[%s1774_s5 + $0x20] sm:$0xff] %vm755_vm2, %v576_v61  ;;  %v671_v1 = vpop.f32.mrf.mxu2 }
  0xae   :  { %776 = vst.msk [vmem:[%s1774_s5 + $0xa0] sm:$0xff] %vm755_vm2, %v624_v62  ;;  %v672_v5 = vadd.f32 %v671_v1, %v321_v63  ;;  %v295_v1 = vld [vmem:[%s1773_s4 + $0x50] sm:$0xff] }
  0xaf   :  { %v719_v4 = vpop.f32.mrf.mxu3 }
  0xb0   :  { %v720_v6 = vadd.f32 %v719_v4, %v337_v0  ;;  %792 = vst.msk [vmem:[%s1774_s5 + $0x120] sm:$0xff] %vm755_vm2, %v672_v5  ;;  %v311_v4 = vld [vmem:[%s1773_s4 + $0xd0] sm:$0xff] }
  0xb2   :  { %v578_v9 = vpop.f32.mrf.mxu0  ;;  %808 = vst.msk [vmem:[%s1774_s5 + $0x1a0] sm:$0xff] %vm755_vm2, %v720_v6 }
  0xb3   :  { %v626_v2 = vpop.f32.mrf.mxu1  ;;  %v579_v10 = vadd.f32 %v578_v9, %v290_v7  ;;  %v327_v9 = vld [vmem:[%s1773_s4 + $0x150] sm:$0xff] }
  0xb4   :  { %v627_v3 = vadd.f32 %v626_v2, %v306_v8  ;;  %v343_v2 = vld [vmem:[%s1773_s4 + $0x1d0] sm:$0xff] }
  0xb5   :  { %761 = vst.msk [vmem:[%s1774_s5 + $0x28] sm:$0xff] %vm755_vm2, %v579_v10  ;;  %v674_v13 = vpop.f32.mrf.mxu2 }
  0xb6   :  { %777 = vst.msk [vmem:[%s1774_s5 + $0xa8] sm:$0xff] %vm755_vm2, %v627_v3  ;;  %v675_v15 = vadd.f32 %v674_v13, %v322_v11  ;;  %v296_v13 = vld [vmem:[%s1773_s4 + $0x58] sm:$0xff] }
  0xb7   :  { %v722_v14 = vpop.f32.mrf.mxu3 }
  0xb8   :  { %v723_v16 = vadd.f32 %v722_v14, %v338_v12  ;;  %793 = vst.msk [vmem:[%s1774_s5 + $0x128] sm:$0xff] %vm755_vm2, %v675_v15  ;;  %v312_v14 = vld [vmem:[%s1773_s4 + $0xd8] sm:$0xff] }
  0xba   :  { %v581_v19 = vpop.f32.mrf.mxu0  ;;  %809 = vst.msk [vmem:[%s1774_s5 + $0x1a8] sm:$0xff] %vm755_vm2, %v723_v16 }
  0xbb   :  { %v629_v20 = vpop.f32.mrf.mxu1  ;;  %v582_v21 = vadd.f32 %v581_v19, %v291_v17  ;;  %v328_v19 = vld [vmem:[%s1773_s4 + $0x158] sm:$0xff] }
  0xbc   :  { %v630_v22 = vadd.f32 %v629_v20, %v307_v18  ;;  %v344_v20 = vld [vmem:[%s1773_s4 + $0x1d8] sm:$0xff] }
  0xbd   :  { %762 = vst.msk [vmem:[%s1774_s5 + $0x30] sm:$0xff] %vm755_vm2, %v582_v21  ;;  %v677_v25 = vpop.f32.mrf.mxu2 }
  0xbe   :  { %778 = vst.msk [vmem:[%s1774_s5 + $0xb0] sm:$0xff] %vm755_vm2, %v630_v22  ;;  %v678_v27 = vadd.f32 %v677_v25, %v323_v23  ;;  %v297_v25 = vld [vmem:[%s1773_s4 + $0x60] sm:$0xff] }
  0xbf   :  { %v725_v26 = vpop.f32.mrf.mxu3 }
  0xc0   :  { %v726_v28 = vadd.f32 %v725_v26, %v339_v24  ;;  %794 = vst.msk [vmem:[%s1774_s5 + $0x130] sm:$0xff] %vm755_vm2, %v678_v27  ;;  %v313_v26 = vld [vmem:[%s1773_s4 + $0xe0] sm:$0xff] }
  0xc2   :  { %v584_v31 = vpop.f32.mrf.mxu0  ;;  %810 = vst.msk [vmem:[%s1774_s5 + $0x1b0] sm:$0xff] %vm755_vm2, %v726_v28 }
  0xc3   :  { %v632_v32 = vpop.f32.mrf.mxu1  ;;  %v585_v33 = vadd.f32 %v584_v31, %v292_v29  ;;  %v329_v31 = vld [vmem:[%s1773_s4 + $0x160] sm:$0xff] }
  0xc4   :  { %v633_v34 = vadd.f32 %v632_v32, %v308_v30  ;;  %v345_v32 = vld [vmem:[%s1773_s4 + $0x1e0] sm:$0xff] }
  0xc5   :  { %763 = vst.msk [vmem:[%s1774_s5 + $0x38] sm:$0xff] %vm755_vm2, %v585_v33  ;;  %v680_v37 = vpop.f32.mrf.mxu2 }
  0xc6   :  { %779 = vst.msk [vmem:[%s1774_s5 + $0xb8] sm:$0xff] %vm755_vm2, %v633_v34  ;;  %v681_v39 = vadd.f32 %v680_v37, %v324_v35  ;;  %v298_v37 = vld [vmem:[%s1773_s4 + $0x68] sm:$0xff] }
  0xc7   :  { %v728_v38 = vpop.f32.mrf.mxu3 }
  0xc8   :  { %v729_v40 = vadd.f32 %v728_v38, %v340_v36  ;;  %795 = vst.msk [vmem:[%s1774_s5 + $0x138] sm:$0xff] %vm755_vm2, %v681_v39  ;;  %v314_v38 = vld [vmem:[%s1773_s4 + $0xe8] sm:$0xff] }
  0xca   :  { %v587_v43 = vpop.f32.mrf.mxu0  ;;  %811 = vst.msk [vmem:[%s1774_s5 + $0x1b8] sm:$0xff] %vm755_vm2, %v729_v40 }
  0xcb   :  { %v635_v44 = vpop.f32.mrf.mxu1  ;;  %v588_v45 = vadd.f32 %v587_v43, %v293_v41  ;;  %v330_v43 = vld [vmem:[%s1773_s4 + $0x168] sm:$0xff] }
  0xcc   :  { %v636_v46 = vadd.f32 %v635_v44, %v309_v42  ;;  %v346_v44 = vld [vmem:[%s1773_s4 + $0x1e8] sm:$0xff] }
  0xcd   :  { %764 = vst.msk [vmem:[%s1774_s5 + $0x40] sm:$0xff] %vm755_vm2, %v588_v45  ;;  %v683_v49 = vpop.f32.mrf.mxu2 }
  0xce   :  { %780 = vst.msk [vmem:[%s1774_s5 + $0xc0] sm:$0xff] %vm755_vm2, %v636_v46  ;;  %v684_v51 = vadd.f32 %v683_v49, %v325_v47  ;;  %v299_v49 = vld [vmem:[%s1773_s4 + $0x70] sm:$0xff] }
  0xcf   :  { %v731_v50 = vpop.f32.mrf.mxu3 }
  0xd0   :  { %v732_v52 = vadd.f32 %v731_v50, %v341_v48  ;;  %796 = vst.msk [vmem:[%s1774_s5 + $0x140] sm:$0xff] %vm755_vm2, %v684_v51  ;;  %v315_v50 = vld [vmem:[%s1773_s4 + $0xf0] sm:$0xff] }
  0xd2   :  { %v590_v55 = vpop.f32.mrf.mxu0  ;;  %812 = vst.msk [vmem:[%s1774_s5 + $0x1c0] sm:$0xff] %vm755_vm2, %v732_v52 }
  0xd3   :  { %v638_v56 = vpop.f32.mrf.mxu1  ;;  %v591_v57 = vadd.f32 %v590_v55, %v294_v53  ;;  %v331_v55 = vld [vmem:[%s1773_s4 + $0x170] sm:$0xff] }
  0xd4   :  { %v639_v58 = vadd.f32 %v638_v56, %v310_v54  ;;  %v347_v56 = vld [vmem:[%s1773_s4 + $0x1f0] sm:$0xff] }
  0xd5   :  { %765 = vst.msk [vmem:[%s1774_s5 + $0x48] sm:$0xff] %vm755_vm2, %v591_v57  ;;  %v686_v61 = vpop.f32.mrf.mxu2 }
  0xd6   :  { %781 = vst.msk [vmem:[%s1774_s5 + $0xc8] sm:$0xff] %vm755_vm2, %v639_v58  ;;  %v687_v63 = vadd.f32 %v686_v61, %v326_v59  ;;  %v300_v61 = vld [vmem:[%s1773_s4 + $0x78] sm:$0xff] }
  0xd7   :  { %v734_v62 = vpop.f32.mrf.mxu3 }
  0xd8   :  { %v735_v0 = vadd.f32 %v734_v62, %v342_v60  ;;  %797 = vst.msk [vmem:[%s1774_s5 + $0x148] sm:$0xff] %vm755_vm2, %v687_v63  ;;  %v316_v62 = vld [vmem:[%s1773_s4 + $0xf8] sm:$0xff] }
  0xda   :  { %v593_v5 = vpop.f32.mrf.mxu0  ;;  %813 = vst.msk [vmem:[%s1774_s5 + $0x1c8] sm:$0xff] %vm755_vm2, %v735_v0 }
  0xdb   :  { %v641_v6 = vpop.f32.mrf.mxu1  ;;  %v594_v7 = vadd.f32 %v593_v5, %v295_v1  ;;  %v332_v5 = vld [vmem:[%s1773_s4 + $0x178] sm:$0xff] }
  0xdc   :  { %v642_v8 = vadd.f32 %v641_v6, %v311_v4  ;;  %v348_v6 = vld [vmem:[%s1773_s4 + $0x1f8] sm:$0xff] }
  0xdd   :  { %766 = vst.msk [vmem:[%s1774_s5 + $0x50] sm:$0xff] %vm755_vm2, %v594_v7  ;;  %v689_v10 = vpop.f32.mrf.mxu2 }
  0xde   :  { %782 = vst.msk [vmem:[%s1774_s5 + $0xd0] sm:$0xff] %vm755_vm2, %v642_v8  ;;  %v690_v11 = vadd.f32 %v689_v10, %v327_v9 }
  0xdf   :  { %v737_v3 = vpop.f32.mrf.mxu3 }
  0xe0   :  { %v738_v12 = vadd.f32 %v737_v3, %v343_v2  ;;  %798 = vst.msk [vmem:[%s1774_s5 + $0x150] sm:$0xff] %vm755_vm2, %v690_v11 }
  0xe2   :  { %v596_v15 = vpop.f32.mrf.mxu0  ;;  %814 = vst.msk [vmem:[%s1774_s5 + $0x1d0] sm:$0xff] %vm755_vm2, %v738_v12 }
  0xe3   :  { %v644_v16 = vpop.f32.mrf.mxu1  ;;  %v597_v17 = vadd.f32 %v596_v15, %v296_v13 }
  0xe4   :  { %v645_v18 = vadd.f32 %v644_v16, %v312_v14 }
  0xe5   :  { %767 = vst.msk [vmem:[%s1774_s5 + $0x58] sm:$0xff] %vm755_vm2, %v597_v17  ;;  %v692_v21 = vpop.f32.mrf.mxu2 }
  0xe6   :  { %783 = vst.msk [vmem:[%s1774_s5 + $0xd8] sm:$0xff] %vm755_vm2, %v645_v18  ;;  %v693_v23 = vadd.f32 %v692_v21, %v328_v19 }
  0xe7   :  { %v740_v22 = vpop.f32.mrf.mxu3 }
  0xe8   :  { %v741_v24 = vadd.f32 %v740_v22, %v344_v20  ;;  %799 = vst.msk [vmem:[%s1774_s5 + $0x158] sm:$0xff] %vm755_vm2, %v693_v23 }
  0xea   :  { %v599_v27 = vpop.f32.mrf.mxu0  ;;  %815 = vst.msk [vmem:[%s1774_s5 + $0x1d8] sm:$0xff] %vm755_vm2, %v741_v24 }
  0xeb   :  { %v647_v28 = vpop.f32.mrf.mxu1  ;;  %v600_v29 = vadd.f32 %v599_v27, %v297_v25 }
  0xec   :  { %v648_v30 = vadd.f32 %v647_v28, %v313_v26 }
  0xed   :  { %768 = vst.msk [vmem:[%s1774_s5 + $0x60] sm:$0xff] %vm755_vm2, %v600_v29  ;;  %v695_v33 = vpop.f32.mrf.mxu2 }
  0xee   :  { %784 = vst.msk [vmem:[%s1774_s5 + $0xe0] sm:$0xff] %vm755_vm2, %v648_v30  ;;  %v696_v35 = vadd.f32 %v695_v33, %v329_v31 }
  0xef   :  { %v743_v34 = vpop.f32.mrf.mxu3 }
  0xf0   :  { %v744_v36 = vadd.f32 %v743_v34, %v345_v32  ;;  %800 = vst.msk [vmem:[%s1774_s5 + $0x160] sm:$0xff] %vm755_vm2, %v696_v35 }
  0xf2   :  { %v602_v39 = vpop.f32.mrf.mxu0  ;;  %816 = vst.msk [vmem:[%s1774_s5 + $0x1e0] sm:$0xff] %vm755_vm2, %v744_v36 }
  0xf3   :  { %v650_v40 = vpop.f32.mrf.mxu1  ;;  %v603_v41 = vadd.f32 %v602_v39, %v298_v37 }
  0xf4   :  { %v651_v42 = vadd.f32 %v650_v40, %v314_v38 }
  0xf5   :  { %769 = vst.msk [vmem:[%s1774_s5 + $0x68] sm:$0xff] %vm755_vm2, %v603_v41  ;;  %v698_v45 = vpop.f32.mrf.mxu2 }
  0xf6   :  { %785 = vst.msk [vmem:[%s1774_s5 + $0xe8] sm:$0xff] %vm755_vm2, %v651_v42  ;;  %v699_v47 = vadd.f32 %v698_v45, %v330_v43 }
  0xf7   :  { %v746_v46 = vpop.f32.mrf.mxu3 }
  0xf8   :  { %v747_v48 = vadd.f32 %v746_v46, %v346_v44  ;;  %801 = vst.msk [vmem:[%s1774_s5 + $0x168] sm:$0xff] %vm755_vm2, %v699_v47 }
  0xfa   :  { %v605_v51 = vpop.f32.mrf.mxu0  ;;  %817 = vst.msk [vmem:[%s1774_s5 + $0x1e8] sm:$0xff] %vm755_vm2, %v747_v48 }
  0xfb   :  { %v653_v52 = vpop.f32.mrf.mxu1  ;;  %v606_v53 = vadd.f32 %v605_v51, %v299_v49 }
  0xfc   :  { %v654_v54 = vadd.f32 %v653_v52, %v315_v50 }
  0xfd   :  { %770 = vst.msk [vmem:[%s1774_s5 + $0x70] sm:$0xff] %vm755_vm2, %v606_v53  ;;  %v701_v57 = vpop.f32.mrf.mxu2 }
  0xfe   :  { %786 = vst.msk [vmem:[%s1774_s5 + $0xf0] sm:$0xff] %vm755_vm2, %v654_v54  ;;  %v702_v59 = vadd.f32 %v701_v57, %v331_v55 }
  0xff   :  { %v749_v58 = vpop.f32.mrf.mxu3 }
 0x100   :  { %v750_v60 = vadd.f32 %v749_v58, %v347_v56  ;;  %802 = vst.msk [vmem:[%s1774_s5 + $0x170] sm:$0xff] %vm755_vm2, %v702_v59 }
 0x102   :  { %v608_v63 = vpop.f32.mrf.mxu0  ;;  %818 = vst.msk [vmem:[%s1774_s5 + $0x1f0] sm:$0xff] %vm755_vm2, %v750_v60 }
 0x103   :  { %v656_v0 = vpop.f32.mrf.mxu1  ;;  %v609_v1 = vadd.f32 %v608_v63, %v300_v61 }
 0x104   :  { %v657_v4 = vadd.f32 %v656_v0, %v316_v62 }
 0x105   :  { %771 = vst.msk [vmem:[%s1774_s5 + $0x78] sm:$0xff] %vm755_vm2, %v609_v1  ;;  %v704_v7 = vpop.f32.mrf.mxu2 }
 0x106   :  { %787 = vst.msk [vmem:[%s1774_s5 + $0xf8] sm:$0xff] %vm755_vm2, %v657_v4  ;;  %v705_v9 = vadd.f32 %v704_v7, %v332_v5 }
 0x107   :  { %v752_v8 = vpop.f32.mrf.mxu3 }
 0x108   :  { %v753_v2 = vadd.f32 %v752_v8, %v348_v6  ;;  %803 = vst.msk [vmem:[%s1774_s5 + $0x178] sm:$0xff] %vm755_vm2, %v705_v9 }
 0x10a   :  { %819 = vst.msk [vmem:[%s1774_s5 + $0x1f8] sm:$0xff] %vm755_vm2, %v753_v2 }

// kernel: bottleneck_forward.5
= control target key start
LH: loop header
LB: loop body
LE: loop exit
PB: predicated region body
PF: predicated region fallthrough
CT: control target
= control target key end

     0   :  { %vm495_vm0 = vcmask 1043456   ;;  %vm302_vm1 = vcmask 31744   ;;  %vm1714_vm2 = vcmask 130048   ;;  %vm34_vm3 = vcmask 24576   ;;  %s3706_s5 = inlined_call_operand.vmem [shape: f32[4,4], index: 5, kind: input, shape index: {}]   ;;  %s3707_s0 = inlined_call_operand.vmem [shape: f32[512,4], index: 0, kind: input, shape index: {}]   ;;  %s3708_s1 = inlined_call_operand.vmem [shape: f32[1,4], index: 1, kind: input, shape index: {}]   ;;  %s3709_s2 = inlined_call_operand.vmem [shape: f32[1,4], index: 2, kind: input, shape index: {}]   ;;  %s3710_s3 = inlined_call_operand.vmem [shape: f32[1,4], index: 3, kind: input, shape index: {}]   ;;  %s3711_s4 = inlined_call_operand.vmem [shape: f32[1,4], index: 4, kind: input, shape index: {}]   ;;  %s3712_s6 = inlined_call_operand.vmem [shape: f32[4,16], index: 6, kind: input, shape index: {}]   ;;  %s3713_s7 = inlined_call_operand.vmem [shape: f32[512,4], index: 7, kind: output, shape index: {0}]   ;;  %s3714_s8 = inlined_call_operand.vmem [shape: f32[512,16], index: 8, kind: output, shape index: {1}]   ;;  %s3715_s9 = inlined_call_operand.vmem [shape: f32[1,4], index: 9, kind: output, shape index: {2}]   ;;  %s3716_s10 = inlined_call_operand.vmem [shape: f32[1,4], index: 10, kind: output, shape index: {3}]  }
   0x1   :  { %v301_v0 = vld [vmem:[%s3706_s5] sm:$0xf]  ;;  %v2015_v4 = vld [vmem:[%s3707_s0 + $0x8] sm:$0xff]  ;;  %v2027_v10 = vld [vmem:[%s3707_s0 + $0x10] sm:$0xff] }
   0x2   :  { %v1998_v1 = vld [vmem:[%s3707_s0] sm:$0xff]  ;;  %1795 = vmatpush.msk.msra.mxu0 %vm495_vm0, %v301_v0  ;;  %1925 = vmatpush.msk.msra.mxu2 %vm495_vm0, %v301_v0  ;;  %v2036_v14 = vld [vmem:[%s3707_s0 + $0x18] sm:$0xff]  ;;  %v2059_v26 = vld [vmem:[%s3707_s0 + $0x28] sm:$0xff] }
   0x3   :  { %v2004_v2 = vld [vmem:[%s3708_s1] ss:$0 sm:$0xff]  ;;  %v70_v27 = vld [vmem:[%s3707_s0 + $0x108] sm:$0xff]  ;;  %v2074_v34 = vld [vmem:[%s3707_s0 + $0x30] sm:$0xff] }
   0x4   :  { %v2009_v3 = vld [vmem:[%s3709_s2] ss:$0 sm:$0xff]  ;;  %v105_v5 = vmul.f32 %v2004_v2, %v1998_v1  ;;  %v106_v7 = vmul.f32 %v2004_v2, %v2015_v4  ;;  %v107_v12 = vmul.f32 %v2004_v2, %v2027_v10  ;;  %v108_v16 = vmul.f32 %v2004_v2, %v2036_v14  ;;  %v71_v35 = vld [vmem:[%s3707_s0 + $0x110] sm:$0xff]  ;;  %v2103_v46 = vld [vmem:[%s3707_s0 + $0x38] sm:$0xff] }
   0x5   :  { %v2045_v18 = vld [vmem:[%s3707_s0 + $0x20] sm:$0xff]  ;;  %v110_v29 = vmul.f32 %v2004_v2, %v2059_v26  ;;  %v138_v30 = vmul.f32 %v2004_v2, %v70_v27  ;;  %v111_v37 = vmul.f32 %v2004_v2, %v2074_v34  ;;  %v139_v38 = vmul.f32 %v2004_v2, %v71_v35  ;;  %v72_v49 = vld [vmem:[%s3707_s0 + $0x118] sm:$0xff] }
   0x6   :  { %v173_v6 = vadd.f32 %v2009_v3, %v105_v5  ;;  %v174_v9 = vadd.f32 %v2009_v3, %v106_v7  ;;  %v175_v13 = vadd.f32 %v2009_v3, %v107_v12  ;;  %v176_v17 = vadd.f32 %v2009_v3, %v108_v16  ;;  %v69_v19 = vld [vmem:[%s3707_s0 + $0x100] sm:$0xff] }
   0x7   :  { %v109_v21 = vmul.f32 %v2004_v2, %v2045_v18  ;;  %v137_v22 = vmul.f32 %v2004_v2, %v69_v19  ;;  %v206_v31 = vadd.f32 %v2009_v3, %v138_v30  ;;  %v178_v32 = vadd.f32 %v2009_v3, %v110_v29  ;;  %v2086_v39 = vld [vmem:[%s3710_s3] ss:$0 sm:$0xff]  ;;  %v2170_v29 = vld [vmem:[%s3707_s0 + $0x50] sm:$0xff] }
   0x8   :  { %v237_v8 = vmax.f32 %v173_v6, 0.0  ;;  %v238_v11 = vmax.f32 %v174_v9, 0.0  ;;  %v239_v15 = vmax.f32 %v175_v13, 0.0  ;;  %v240_v20 = vmax.f32 %v176_v17, 0.0  ;;  %v2093_v42 = vld [vmem:[%s3711_s4] ss:$0 sm:$0xff] }
   0x9   :  { %v205_v23 = vadd.f32 %v2009_v3, %v137_v22  ;;  %v177_v24 = vadd.f32 %v2009_v3, %v109_v21  ;;  %v270_v33 = vmax.f32 %v206_v31, 0.0  ;;  %v242_v36 = vmax.f32 %v178_v32, 0.0  ;;  %v1309_v45 = vld [vmem:[%s3712_s6] sm:$0xf]  ;;  %v2148_v13 = vld [vmem:[%s3707_s0 + $0x48] sm:$0xff]  ;;  %v75_v32 = vld [vmem:[%s3707_s0 + $0x130] sm:$0xff] }
   0xa   :  { %1796 = vmatmul.msk.f32.vlgmr.msra.gmra.mxu0 %vm302_vm1, %v237_v8  ;;  %v207_v40 = vadd.f32 %v2009_v3, %v139_v38  ;;  %v1145_v41 = vmul.f32 %v2086_v39, %v69_v19  ;;  %v179_v43 = vadd.f32 %v2009_v3, %v111_v37  ;;  %1926 = vmatpush.msk.msra.mxu3 %vm495_vm0, %v1309_v45  ;;  %v2126_v59 = vld [vmem:[%s3707_s0 + $0x40] sm:$0xff]  ;;  %v74_v17 = vld [vmem:[%s3707_s0 + $0x128] sm:$0xff] }
   0xb   :  { %v269_v25 = vmax.f32 %v205_v23, 0.0  ;;  %v241_v28 = vmax.f32 %v177_v24, 0.0  ;;  %1860 = vmatpush.msk.msra.mxu1 %vm495_vm0, %v1309_v45  ;;  %v112_v51 = vmul.f32 %v2004_v2, %v2103_v46  ;;  %v140_v52 = vmul.f32 %v2004_v2, %v72_v49  ;;  %v73_v63 = vld [vmem:[%s3707_s0 + $0x120] sm:$0xff]  ;;  %v2192_v45 = vld [vmem:[%s3707_s0 + $0x58] sm:$0xff] }
   0xc   :  { %v271_v44 = vmax.f32 %v207_v40, 0.0  ;;  %v1213_v47 = vadd.f32 %v2093_v42, %v1145_v41  ;;  %v243_v50 = vmax.f32 %v179_v43, 0.0  ;;  %v1113_v53 = vmul.f32 %v2086_v39, %v1998_v1 }
   0xd   :  { %1828 = vmatmul.msk.f32.vlgmr.msra.gmra.mxu2 %vm302_vm1, %v269_v25  ;;  %v208_v54 = vadd.f32 %v2009_v3, %v140_v52  ;;  %v1146_v56 = vmul.f32 %v2086_v39, %v70_v27  ;;  %v180_v57 = vadd.f32 %v2009_v3, %v112_v51  ;;  %v113_v1 = vmul.f32 %v2004_v2, %v2126_v59 }
   0xe   :  { %v1277_v48 = vmax.f32 %v1213_v47, 0.0  ;;  %v1181_v55 = vadd.f32 %v2093_v42, %v1113_v53  ;;  %v141_v5 = vmul.f32 %v2004_v2, %v73_v63  ;;  %v1114_v6 = vmul.f32 %v2086_v39, %v2015_v4 }
   0xf   :  { %v272_v58 = vmax.f32 %v208_v54, 0.0  ;;  %v1214_v61 = vadd.f32 %v2093_v42, %v1146_v56  ;;  %v244_v0 = vmax.f32 %v180_v57, 0.0  ;;  %v1147_v9 = vmul.f32 %v2086_v39, %v71_v35 }
  0x10   :  { %1893 = vmatmul.msk.f32.vlgmr.msra.gmra.mxu3 %vm302_vm1, %v1277_v48  ;;  %v1245_v60 = vmax.f32 %v1181_v55, 0.0  ;;  %v209_v7 = vadd.f32 %v2009_v3, %v141_v5  ;;  %v1182_v8 = vadd.f32 %v2093_v42, %v1114_v6  ;;  %v142_v21 = vmul.f32 %v2004_v2, %v74_v17 }
  0x11   :  { %v1278_v62 = vmax.f32 %v1214_v61, 0.0  ;;  %v1215_v16 = vadd.f32 %v2093_v42, %v1147_v9  ;;  %v1115_v22 = vmul.f32 %v2086_v39, %v2027_v10  ;;  %v1148_v25 = vmul.f32 %v2086_v39, %v72_v49  ;;  %v76_v49 = vld [vmem:[%s3707_s0 + $0x138] sm:$0xff] }
  0x12   :  { %1797 = vmatmul.msk.f32.gmra.mxu0 %vm302_vm1, %v238_v11  ;;  %1861 = vmatmul.msk.f32.vlgmr.msra.gmra.mxu1 %vm302_vm1, %v1245_v60  ;;  %v181_v11 = vadd.f32 %v2009_v3, %v113_v1  ;;  %v273_v12 = vmax.f32 %v209_v7, 0.0  ;;  %v210_v23 = vadd.f32 %v2009_v3, %v142_v21  ;;  %v115_v35 = vmul.f32 %v2004_v2, %v2170_v29  ;;  %v2214_v60 = vld [vmem:[%s3707_s0 + $0x60] sm:$0xff] }
  0x13   :  { %v1279_v4 = vmax.f32 %v1215_v16, 0.0  ;;  %v1183_v24 = vadd.f32 %v2093_v42, %v1115_v22  ;;  %v1216_v31 = vadd.f32 %v2093_v42, %v1148_v25  ;;  %v1116_v37 = vmul.f32 %v2086_v39, %v2036_v14 }
  0x14   :  { %v245_v19 = vmax.f32 %v181_v11, 0.0  ;;  %v1149_v41 = vmul.f32 %v2086_v39, %v73_v63  ;;  %v183_v43 = vadd.f32 %v2009_v3, %v115_v35  ;;  %v116_v51 = vmul.f32 %v2004_v2, %v2192_v45  ;;  %v77_v63 = vld [vmem:[%s3707_s0 + $0x140] sm:$0xff] }
  0x15   :  { %1829 = vmatmul.msk.f32.gmra.mxu2 %vm302_vm1, %v270_v33  ;;  %v1247_v30 = vmax.f32 %v1183_v24, 0.0  ;;  %v1280_v10 = vmax.f32 %v1216_v31, 0.0  ;;  %v1184_v40 = vadd.f32 %v2093_v42, %v1116_v37  ;;  %v144_v52 = vmul.f32 %v2004_v2, %v76_v49 }
  0x16   :  { %v1217_v48 = vadd.f32 %v2093_v42, %v1149_v41  ;;  %v1117_v53 = vmul.f32 %v2086_v39, %v2045_v18  ;;  %v1150_v56 = vmul.f32 %v2086_v39, %v74_v17  ;;  %v184_v57 = vadd.f32 %v2009_v3, %v116_v51  ;;  %v78_v17 = vld [vmem:[%s3707_s0 + $0x148] sm:$0xff] }
  0x17   :  { %v1248_v47 = vmax.f32 %v1184_v40, 0.0  ;;  %v212_v54 = vadd.f32 %v2009_v3, %v144_v52  ;;  %v117_v1 = vmul.f32 %v2004_v2, %v2214_v60  ;;  %v145_v5 = vmul.f32 %v2004_v2, %v77_v63 }
  0x18   :  { %1894 = vmatmul.msk.f32.gmra.mxu3 %vm302_vm1, %v1278_v62  ;;  %v1281_v14 = vmax.f32 %v1217_v48, 0.0  ;;  %v1185_v55 = vadd.f32 %v2093_v42, %v1117_v53  ;;  %v1218_v62 = vadd.f32 %v2093_v42, %v1150_v56  ;;  %v1118_v6 = vmul.f32 %v2086_v39, %v2059_v26 }
  0x19   :  { %v213_v7 = vadd.f32 %v2009_v3, %v145_v5  ;;  %v1151_v9 = vmul.f32 %v2086_v39, %v75_v32  ;;  %v185_v11 = vadd.f32 %v2009_v3, %v117_v1  ;;  %v146_v21 = vmul.f32 %v2004_v2, %v78_v17 }
  0x1a   :  { %1798 = vmatmul.msk.f32.gmra.mxu0 %vm302_vm1, %v239_v15  ;;  %v1246_v15 = vmax.f32 %v1182_v8, 0.0  ;;  %v1249_v61 = vmax.f32 %v1185_v55, 0.0  ;;  %v1282_v18 = vmax.f32 %v1218_v62, 0.0  ;;  %v1186_v8 = vadd.f32 %v2093_v42, %v1118_v6 }
  0x1b   :  { %v1119_v22 = vmul.f32 %v2086_v39, %v2074_v34  ;;  %v1152_v25 = vmul.f32 %v2086_v39, %v76_v49  ;;  %v1120_v37 = vmul.f32 %v2086_v39, %v2103_v46  ;;  %v1153_v41 = vmul.f32 %v2086_v39, %v77_v63  ;;  %v80_v49 = vld [vmem:[%s3707_s0 + $0x158] sm:$0xff]  ;;  %v81_v63 = vld [vmem:[%s3707_s0 + $0x160] sm:$0xff] }
  0x1c   :  { %1862 = vmatmul.msk.f32.gmra.mxu1 %vm302_vm1, %v1246_v15  ;;  %v2236_v15 = vld [vmem:[%s3707_s0 + $0x68] sm:$0xff]  ;;  %v1250_v16 = vmax.f32 %v1186_v8, 0.0  ;;  %v148_v52 = vmul.f32 %v2004_v2, %v80_v49  ;;  %v1121_v53 = vmul.f32 %v2086_v39, %v2126_v59  ;;  %v1154_v56 = vmul.f32 %v2086_v39, %v78_v17 }
  0x1d   :  { %1830 = vmatmul.msk.f32.gmra.mxu2 %vm302_vm1, %v271_v44  ;;  %v1187_v24 = vadd.f32 %v2093_v42, %v1119_v22  ;;  %v1188_v40 = vadd.f32 %v2093_v42, %v1120_v37  ;;  %v149_v5 = vmul.f32 %v2004_v2, %v81_v63  ;;  %v1122_v6 = vmul.f32 %v2086_v39, %v2148_v13  ;;  %v82_v17 = vld [vmem:[%s3707_s0 + $0x168] sm:$0xff] }
  0x1e   :  { %v1189_v55 = vadd.f32 %v2093_v42, %v1121_v53 }
  0x1f   :  { %v1251_v31 = vmax.f32 %v1187_v24, 0.0  ;;  %v1252_v48 = vmax.f32 %v1188_v40, 0.0  ;;  %v1190_v8 = vadd.f32 %v2093_v42, %v1122_v6  ;;  %v1124_v40 = vmul.f32 %v2086_v39, %v2192_v45  ;;  %v2382_v45 = vld [vmem:[%s3707_s0 + $0x98] sm:$0xff] }
  0x20   :  { %1895 = vmatmul.msk.f32.gmra.mxu3 %vm302_vm1, %v1279_v4  ;;  %v1219_v4 = vadd.f32 %v2093_v42, %v1151_v9  ;;  %v1253_v62 = vmax.f32 %v1189_v55, 0.0  ;;  %v124_v53 = vmul.f32 %v2004_v2, %v2382_v45 }
  0x22   :  { %1799 = vmatmul.msk.f32.gmra.mxu0 %vm302_vm1, %v240_v20  ;;  %v114_v20 = vmul.f32 %v2004_v2, %v2148_v13  ;;  %v1283_v26 = vmax.f32 %v1219_v4, 0.0  ;;  %v1254_v4 = vmax.f32 %v1190_v8, 0.0 }
  0x24   :  { %v182_v27 = vadd.f32 %v2009_v3, %v114_v20  ;;  %1863 = vmatmul.msk.f32.gmra.mxu1 %vm302_vm1, %v1247_v30  ;;  %v118_v20 = vmul.f32 %v2004_v2, %v2236_v15  ;;  %v2258_v30 = vld [vmem:[%s3707_s0 + $0x70] sm:$0xff] }
  0x25   :  { %1831 = vmatmul.msk.f32.gmra.mxu2 %vm302_vm1, %v272_v58  ;;  %v276_v58 = vmax.f32 %v212_v54, 0.0  ;;  %v119_v35 = vmul.f32 %v2004_v2, %v2258_v30  ;;  %v216_v54 = vadd.f32 %v2009_v3, %v148_v52 }
  0x26   :  { %v246_v33 = vmax.f32 %v182_v27, 0.0  ;;  %v186_v27 = vadd.f32 %v2009_v3, %v118_v20 }
  0x28   :  { %1896 = vmatmul.msk.f32.gmra.mxu3 %vm302_vm1, %v1280_v10  ;;  %v1220_v10 = vadd.f32 %v2093_v42, %v1152_v25 }
  0x2a   :  { %1800 = vmatmul.msk.f32.gmra.mxu0 %vm302_vm1, %v241_v28  ;;  %v274_v28 = vmax.f32 %v210_v23, 0.0  ;;  %v214_v23 = vadd.f32 %v2009_v3, %v146_v21  ;;  %v1284_v34 = vmax.f32 %v1220_v10, 0.0  ;;  %v150_v21 = vmul.f32 %v2004_v2, %v82_v17 }
  0x2c   :  { %1864 = vmatmul.msk.f32.gmra.mxu1 %vm302_vm1, %v1248_v47  ;;  %v2280_v47 = vld [vmem:[%s3707_s0 + $0x78] sm:$0xff]  ;;  %v218_v24 = vadd.f32 %v2009_v3, %v150_v21 }
  0x2d   :  { %1832 = vmatmul.msk.f32.gmra.mxu2 %vm302_vm1, %v273_v12  ;;  %v277_v12 = vmax.f32 %v213_v7, 0.0  ;;  %v120_v51 = vmul.f32 %v2004_v2, %v2280_v47  ;;  %v217_v7 = vadd.f32 %v2009_v3, %v149_v5  ;;  %v85_v5 = vld [vmem:[%s3707_s0 + $0x180] sm:$0xff] }
  0x2e   :  { %v153_v8 = vmul.f32 %v2004_v2, %v85_v5 }
  0x30   :  { %1897 = vmatmul.msk.f32.gmra.mxu3 %vm302_vm1, %v1281_v14  ;;  %v1221_v14 = vadd.f32 %v2093_v42, %v1153_v41 }
  0x32   :  { %1801 = vmatmul.msk.f32.gmra.mxu0 %vm302_vm1, %v242_v36  ;;  %v143_v36 = vmul.f32 %v2004_v2, %v75_v32  ;;  %v79_v32 = vld [vmem:[%s3707_s0 + $0x150] sm:$0xff]  ;;  %v1285_v46 = vmax.f32 %v1221_v14, 0.0 }
  0x33   :  { %v1155_v9 = vmul.f32 %v2086_v39, %v79_v32 }
  0x34   :  { %v211_v38 = vadd.f32 %v2009_v3, %v143_v36  ;;  %1865 = vmatmul.msk.f32.gmra.mxu1 %vm302_vm1, %v1249_v61  ;;  %v147_v36 = vmul.f32 %v2004_v2, %v79_v32  ;;  %v2302_v61 = vld [vmem:[%s3707_s0 + $0x80] sm:$0xff] }
  0x35   :  { %1833 = vmatmul.msk.f32.gmra.mxu2 %vm302_vm1, %v274_v28  ;;  %v278_v28 = vmax.f32 %v214_v23, 0.0  ;;  %v121_v1 = vmul.f32 %v2004_v2, %v2302_v61  ;;  %v1123_v23 = vmul.f32 %v2086_v39, %v2170_v29  ;;  %v2353_v29 = vld [vmem:[%s3707_s0 + $0x90] sm:$0xff] }
  0x36   :  { %v275_v44 = vmax.f32 %v211_v38, 0.0  ;;  %v215_v38 = vadd.f32 %v2009_v3, %v147_v36  ;;  %v123_v36 = vmul.f32 %v2004_v2, %v2353_v29 }
  0x37   :  { %v1191_v25 = vadd.f32 %v2093_v42, %v1123_v23  ;;  %v2448_v23 = vld [vmem:[%s3707_s0 + $0x188] sm:$0xff] }
  0x38   :  { %1898 = vmatmul.msk.f32.gmra.mxu3 %vm302_vm1, %v1282_v18  ;;  %v1222_v18 = vadd.f32 %v2093_v42, %v1154_v56  ;;  %v1125_v56 = vmul.f32 %v2086_v39, %v2214_v60  ;;  %v2411_v60 = vld [vmem:[%s3707_s0 + $0xa0] sm:$0xff] }
  0x39   :  { %v1255_v10 = vmax.f32 %v1191_v25, 0.0 }
  0x3a   :  { %1802 = vmatmul.msk.f32.gmra.mxu0 %vm302_vm1, %v243_v50  ;;  %v247_v50 = vmax.f32 %v183_v43, 0.0  ;;  %v187_v43 = vadd.f32 %v2009_v3, %v119_v35  ;;  %v1286_v59 = vmax.f32 %v1222_v18, 0.0  ;;  %v192_v18 = vadd.f32 %v2009_v3, %v124_v53 }
  0x3b   :  { %v1161_v53 = vmul.f32 %v2086_v39, %v85_v5 }
  0x3c   :  { %1866 = vmatmul.msk.f32.gmra.mxu1 %vm302_vm1, %v1250_v16  ;;  %v2324_v16 = vld [vmem:[%s3707_s0 + $0x88] sm:$0xff]  ;;  %v256_v6 = vmax.f32 %v192_v18, 0.0 }
  0x3d   :  { %1834 = vmatmul.msk.f32.gmra.mxu2 %vm302_vm1, %v275_v44  ;;  %v279_v44 = vmax.f32 %v215_v38, 0.0  ;;  %v122_v20 = vmul.f32 %v2004_v2, %v2324_v16 }
  0x40   :  { %1899 = vmatmul.msk.f32.gmra.mxu3 %vm302_vm1, %v1283_v26  ;;  %v1223_v26 = vadd.f32 %v2093_v42, %v1155_v9 }
  0x42   :  { %1803 = vmatmul.msk.f32.gmra.mxu0 %vm302_vm1, %v244_v0  ;;  %v248_v0 = vmax.f32 %v184_v57, 0.0  ;;  %v188_v57 = vadd.f32 %v2009_v3, %v120_v51  ;;  %v1287_v13 = vmax.f32 %v1223_v26, 0.0  ;;  %v84_v51 = vld [vmem:[%s3707_s0 + $0x178] sm:$0xff] }
  0x44   :  { %1867 = vmatmul.msk.f32.gmra.mxu1 %vm302_vm1, %v1251_v31  ;;  %v282_v31 = vmax.f32 %v218_v24, 0.0 }
  0x45   :  { %1835 = vmatmul.msk.f32.gmra.mxu2 %vm302_vm1, %v276_v58  ;;  %v280_v58 = vmax.f32 %v216_v54, 0.0  ;;  %v152_v54 = vmul.f32 %v2004_v2, %v84_v51 }
  0x48   :  { %1900 = vmatmul.msk.f32.gmra.mxu3 %vm302_vm1, %v1284_v34 }
  0x4a   :  { %1804 = vmatmul.msk.f32.gmra.mxu0 %vm302_vm1, %v245_v19  ;;  %v249_v19 = vmax.f32 %v185_v11, 0.0  ;;  %v189_v11 = vadd.f32 %v2009_v3, %v121_v1 }
  0x4c   :  { %1868 = vmatmul.msk.f32.gmra.mxu1 %vm302_vm1, %v1252_v48  ;;  %v191_v48 = vadd.f32 %v2009_v3, %v123_v36 }
  0x4d   :  { %1836 = vmatmul.msk.f32.gmra.mxu2 %vm302_vm1, %v277_v12  ;;  %v281_v12 = vmax.f32 %v217_v7, 0.0  ;;  %v125_v7 = vmul.f32 %v2004_v2, %v2411_v60 }
  0x4e   :  { %v255_v52 = vmax.f32 %v191_v48, 0.0 }
  0x50   :  { %1901 = vmatmul.msk.f32.gmra.mxu3 %vm302_vm1, %v1285_v46 }
  0x52   :  { %1805 = vmatmul.msk.f32.gmra.mxu0 %vm302_vm1, %v246_v33  ;;  %v250_v33 = vmax.f32 %v186_v27, 0.0  ;;  %v1156_v27 = vmul.f32 %v2086_v39, %v80_v49 }
  0x54   :  { %1869 = vmatmul.msk.f32.gmra.mxu1 %vm302_vm1, %v1253_v62  ;;  %v1224_v34 = vadd.f32 %v2093_v42, %v1156_v27  ;;  %v1158_v62 = vmul.f32 %v2086_v39, %v82_v17  ;;  %v154_v27 = vmul.f32 %v2004_v2, %v2448_v23 }
  0x55   :  { %1837 = vmatmul.msk.f32.gmra.mxu2 %vm302_vm1, %v278_v28  ;;  %v190_v28 = vadd.f32 %v2009_v3, %v122_v20 }
  0x56   :  { %v1288_v32 = vmax.f32 %v1224_v34, 0.0  ;;  %v222_v34 = vadd.f32 %v2009_v3, %v154_v27 }
  0x57   :  { %v254_v35 = vmax.f32 %v190_v28, 0.0 }
  0x58   :  { %1902 = vmatmul.msk.f32.gmra.mxu3 %vm302_vm1, %v1286_v59  ;;  %v286_v36 = vmax.f32 %v222_v34, 0.0 }
  0x5a   :  { %1806 = vmatmul.msk.f32.gmra.mxu0 %vm302_vm1, %v247_v50  ;;  %v251_v50 = vmax.f32 %v187_v43, 0.0  ;;  %v1192_v43 = vadd.f32 %v2093_v42, %v1124_v40 }
  0x5c   :  { %1870 = vmatmul.msk.f32.gmra.mxu1 %vm302_vm1, %v1254_v4  ;;  %v1256_v46 = vmax.f32 %v1192_v43, 0.0  ;;  %v2487_v43 = vld [vmem:[%s3707_s0 + $0x190] sm:$0xff] }
  0x5d   :  { %1838 = vmatmul.msk.f32.gmra.mxu2 %vm302_vm1, %v279_v44  ;;  %v1157_v44 = vmul.f32 %v2086_v39, %v81_v63 }
  0x5f   :  { %v1225_v49 = vadd.f32 %v2093_v42, %v1157_v44 }
  0x60   :  { %1903 = vmatmul.msk.f32.gmra.mxu3 %vm302_vm1, %v1287_v13  ;;  %v193_v13 = vadd.f32 %v2009_v3, %v125_v7 }
  0x62   :  { %1807 = vmatmul.msk.f32.gmra.mxu0 %vm302_vm1, %v248_v0  ;;  %v252_v0 = vmax.f32 %v188_v57, 0.0  ;;  %v220_v57 = vadd.f32 %v2009_v3, %v152_v54  ;;  %v257_v24 = vmax.f32 %v193_v13, 0.0  ;;  %v2518_v54 = vld [vmem:[%s3707_s0 + $0xb8] sm:$0xff]  ;;  %v1162_v13 = vmul.f32 %v2086_v39, %v2448_v23 }
  0x64   :  { %1871 = vmatmul.msk.f32.gmra.mxu1 %vm302_vm1, %v1255_v10  ;;  %v284_v59 = vmax.f32 %v220_v57, 0.0  ;;  %v1127_v10 = vmul.f32 %v2086_v39, %v2258_v30  ;;  %v1230_v23 = vadd.f32 %v2093_v42, %v1162_v13 }
  0x65   :  { %1839 = vmatmul.msk.f32.gmra.mxu2 %vm302_vm1, %v280_v58  ;;  %v1193_v58 = vadd.f32 %v2093_v42, %v1125_v56 }
  0x67   :  { %v1257_v63 = vmax.f32 %v1193_v58, 0.0  ;;  %v1229_v58 = vadd.f32 %v2093_v42, %v1161_v53  ;;  %v2623_v53 = vld [vmem:[%s3707_s0 + $0xc8] sm:$0xff] }
  0x68   :  { %1904 = vmatmul.msk.f32.gmra.mxu3 %vm302_vm1, %v1288_v32  ;;  %v1195_v32 = vadd.f32 %v2093_v42, %v1127_v10  ;;  %v2585_v10 = vld [vmem:[%s3707_s0 + $0x1a0] sm:$0xff] }
  0x6a   :  { %1808 = vmatmul.msk.f32.gmra.mxu0 %vm302_vm1, %v249_v19  ;;  %v253_v19 = vmax.f32 %v189_v11, 0.0  ;;  %v1126_v11 = vmul.f32 %v2086_v39, %v2236_v15  ;;  %v2440_v15 = vld [vmem:[%s3707_s0 + $0xa8] sm:$0xff] }
  0x6b   :  { %v126_v25 = vmul.f32 %v2004_v2, %v2440_v15 }
  0x6c   :  { %1872 = vmatmul.msk.f32.gmra.mxu1 %vm302_vm1, %v1256_v46  ;;  %v1194_v4 = vadd.f32 %v2093_v42, %v1126_v11 }
  0x6d   :  { %1840 = vmatmul.msk.f32.gmra.mxu2 %vm302_vm1, %v281_v12  ;;  %v221_v12 = vadd.f32 %v2009_v3, %v153_v8  ;;  %v194_v30 = vadd.f32 %v2009_v3, %v126_v25 }
  0x6f   :  { %v285_v17 = vmax.f32 %v221_v12, 0.0  ;;  %v258_v44 = vmax.f32 %v194_v30, 0.0  ;;  %v2558_v12 = vld [vmem:[%s3707_s0 + $0xc0] sm:$0xff] }
  0x70   :  { %v129_v27 = vmul.f32 %v2004_v2, %v2558_v12 }
  0x72   :  { %1809 = vmatmul.msk.f32.gmra.mxu0 %vm302_vm1, %v250_v33  ;;  %v83_v33 = vld [vmem:[%s3707_s0 + $0x170] sm:$0xff] }
  0x73   :  { %v151_v37 = vmul.f32 %v2004_v2, %v83_v33  ;;  %v1159_v26 = vmul.f32 %v2086_v39, %v83_v33  ;;  %v1160_v33 = vmul.f32 %v2086_v39, %v84_v51 }
  0x74   :  { %1873 = vmatmul.msk.f32.gmra.mxu1 %vm302_vm1, %v1257_v63  ;;  %v1293_v63 = vmax.f32 %v1229_v58, 0.0  ;;  %v1163_v58 = vmul.f32 %v2086_v39, %v2487_v43 }
  0x75   :  { %1841 = vmatmul.msk.f32.gmra.mxu2 %vm302_vm1, %v282_v31  ;;  %v219_v41 = vadd.f32 %v2009_v3, %v151_v37  ;;  %v1227_v20 = vadd.f32 %v2093_v42, %v1159_v26  ;;  %v1259_v37 = vmax.f32 %v1195_v32, 0.0  ;;  %v1228_v40 = vadd.f32 %v2093_v42, %v1160_v33 }
  0x76   :  { %v1294_v33 = vmax.f32 %v1230_v23, 0.0 }
  0x77   :  { %v283_v14 = vmax.f32 %v219_v41, 0.0  ;;  %v1291_v21 = vmax.f32 %v1227_v20, 0.0  ;;  %v1292_v41 = vmax.f32 %v1228_v40, 0.0 }
  0x7a   :  { %1810 = vmatmul.msk.f32.gmra.mxu0 %vm302_vm1, %v251_v50  ;;  %v1289_v50 = vmax.f32 %v1225_v49, 0.0 }
  0x7c   :  { %1905 = vmatmul.msk.f32.gmra.mxu3 %vm302_vm1, %v1289_v50  ;;  %v1128_v50 = vmul.f32 %v2086_v39, %v2280_v47 }
  0x7d   :  { %1842 = vmatmul.msk.f32.gmra.mxu2 %vm302_vm1, %v283_v14  ;;  %v155_v14 = vmul.f32 %v2004_v2, %v2487_v43  ;;  %v1231_v43 = vadd.f32 %v2093_v42, %v1163_v58 }
  0x7f   :  { %v223_v51 = vadd.f32 %v2009_v3, %v155_v14 }
  0x81   :  { %v287_v56 = vmax.f32 %v223_v51, 0.0 }
  0x82   :  { %1811 = vmatmul.msk.f32.gmra.mxu0 %vm302_vm1, %v252_v0  ;;  %v1226_v0 = vadd.f32 %v2093_v42, %v1158_v62  ;;  %v2526_v62 = vld [vmem:[%s3707_s0 + $0x198] sm:$0xff] }
  0x84   :  { %v1290_v1 = vmax.f32 %v1226_v0, 0.0  ;;  %v156_v0 = vmul.f32 %v2004_v2, %v2526_v62 }
  0x85   :  { %1843 = vmatmul.msk.f32.gmra.mxu2 %vm302_vm1, %v284_v59  ;;  %v128_v59 = vmul.f32 %v2004_v2, %v2518_v54 }
  0x86   :  { %1906 = vmatmul.msk.f32.gmra.mxu3 %vm302_vm1, %v1290_v1  ;;  %v224_v8 = vadd.f32 %v2009_v3, %v156_v0 }
  0x87   :  { %v2335_v22 = vpop.f32.mrf.mxu0  ;;  %v196_v11 = vadd.f32 %v2009_v3, %v128_v59 }
  0x88   :  { %708 = vst.msk [vmem:[%s3713_s7] sm:$0xff] %vm302_vm1, %v2335_v22  ;;  %v773_v30 = vsel %vm302_vm1, %v2335_v22, 0.0 }
  0x89   :  { %v260_v32 = vmax.f32 %v196_v11, 0.0 }
  0x8a   :  { %1812 = vmatmul.msk.f32.gmra.mxu0 %vm302_vm1, %v253_v19  ;;  %v1258_v19 = vmax.f32 %v1194_v4, 0.0 }
  0x8c   :  { %1874 = vmatmul.msk.f32.gmra.mxu1 %vm302_vm1, %v1258_v19  ;;  %v288_v19 = vmax.f32 %v224_v8, 0.0 }
  0x8d   :  { %1844 = vmatmul.msk.f32.gmra.mxu2 %vm302_vm1, %v285_v17  ;;  %v910_v17 = vmul.f32 %v2335_v22, %v2335_v22 }
  0x8e   :  { %1907 = vmatmul.msk.f32.gmra.mxu3 %vm302_vm1, %v1291_v21 }
  0x8f   :  { %v2364_v38 = vpop.f32.mrf.mxu0  ;;  %v1522_v4 = vpop.f32.mrf.mxu1 }
  0x90   :  { %709 = vst.msk [vmem:[%s3713_s7 + $0x8] sm:$0xff] %vm302_vm1, %v2364_v38  ;;  %v2456_v31 = vpop.f32.mrf.mxu2  ;;  %v911_v7 = vmul.f32 %v2364_v38, %v2364_v38 }
  0x91   :  { %740 = vst.msk [vmem:[%s3713_s7 + $0x100] sm:$0xff] %vm302_vm1, %v2456_v31 }
  0x92   :  { %1813 = vmatmul.msk.f32.gmra.mxu0 %vm302_vm1, %v254_v35  ;;  %v2479_v35 = vld [vmem:[%s3707_s0 + $0xb0] sm:$0xff]  ;;  %1715 = vst.msk [vmem:[%s3714_s8] sm:$0xff] %vm1714_vm2, %v1522_v4  ;;  %v975_v25 = vsel %vm302_vm1, %v911_v7, 0.0  ;;  %v130_v4 = vmul.f32 %v2004_v2, %v2623_v53 }
  0x93   :  { %v127_v48 = vmul.f32 %v2004_v2, %v2479_v35  ;;  %v1618_v26 = vpop.f32.mrf.mxu3 }
  0x94   :  { %1875 = vmatmul.msk.f32.gmra.mxu1 %vm302_vm1, %v1259_v37  ;;  %1747 = vst.msk [vmem:[%s3714_s8 + $0x100] sm:$0xff] %vm1714_vm2, %v1618_v26 }
  0x95   :  { %1845 = vmatmul.msk.f32.gmra.mxu2 %vm302_vm1, %v286_v36  ;;  %v195_v47 = vadd.f32 %v2009_v3, %v127_v48  ;;  %v974_v36 = vsel %vm302_vm1, %v910_v17, 0.0  ;;  %v1295_v17 = vmax.f32 %v1231_v43, 0.0  ;;  %v1132_v43 = vmul.f32 %v2086_v39, %v2382_v45 }
  0x96   :  { %1908 = vmatmul.msk.f32.gmra.mxu3 %vm302_vm1, %v1292_v41  ;;  %v976_v14 = vadd.f32 %v975_v25, %v974_v36 }
  0x97   :  { %v2393_v55 = vpop.f32.mrf.mxu0  ;;  %v259_v18 = vmax.f32 %v195_v47, 0.0 }
  0x98   :  { %710 = vst.msk [vmem:[%s3713_s7 + $0x10] sm:$0xff] %vm302_vm1, %v2393_v55  ;;  %v2495_v49 = vpop.f32.mrf.mxu2  ;;  %v912_v21 = vmul.f32 %v2393_v55, %v2393_v55  ;;  %v776_v37 = vsel %vm302_vm1, %v2393_v55, 0.0  ;;  %v197_v55 = vadd.f32 %v2009_v3, %v129_v27 }
  0x99   :  { %741 = vst.msk [vmem:[%s3713_s7 + $0x108] sm:$0xff] %vm302_vm1, %v2495_v49 }
  0x9a   :  { %1814 = vmatmul.msk.f32.gmra.mxu0 %vm302_vm1, %v255_v52  ;;  %v1196_v52 = vadd.f32 %v2093_v42, %v1128_v50  ;;  %v977_v50 = vsel %vm302_vm1, %v912_v21, 0.0  ;;  %v261_v11 = vmax.f32 %v197_v55, 0.0 }
  0x9c   :  { %v1260_v57 = vmax.f32 %v1196_v52, 0.0 }
  0x9d   :  { %1846 = vmatmul.msk.f32.gmra.mxu2 %vm302_vm1, %v287_v56  ;;  %v1525_v56 = vpop.f32.mrf.mxu1 }
  0x9e   :  { %1876 = vmatmul.msk.f32.gmra.mxu1 %vm302_vm1, %v1260_v57  ;;  %1909 = vmatmul.msk.f32.gmra.mxu3 %vm302_vm1, %v1293_v63  ;;  %v1621_v57 = vpop.f32.mrf.mxu3  ;;  %1716 = vst.msk [vmem:[%s3714_s8 + $0x8] sm:$0xff] %vm1714_vm2, %v1525_v56  ;;  %v2702_v56 = vld [vmem:[%s3707_s0 + $0x1b0] sm:$0xff] }
  0x9f   :  { %v2422_v9 = vpop.f32.mrf.mxu0  ;;  %1748 = vst.msk [vmem:[%s3714_s8 + $0x108] sm:$0xff] %vm1714_vm2, %v1621_v57 }
  0xa0   :  { %711 = vst.msk [vmem:[%s3713_s7 + $0x18] sm:$0xff] %vm302_vm1, %v2422_v9  ;;  %v2534_v5 = vpop.f32.mrf.mxu2  ;;  %v913_v34 = vmul.f32 %v2422_v9, %v2422_v9  ;;  %v778_v51 = vsel %vm302_vm1, %v2422_v9, 0.0 }
  0xa1   :  { %742 = vst.msk [vmem:[%s3713_s7 + $0x110] sm:$0xff] %vm302_vm1, %v2534_v5 }
  0xa2   :  { %1815 = vmatmul.msk.f32.gmra.mxu0 %vm302_vm1, %v256_v6  ;;  %v1129_v6 = vmul.f32 %v2086_v39, %v2302_v61  ;;  %v979_v47 = vsel %vm302_vm1, %v913_v34, 0.0 }
  0xa4   :  { %v1197_v61 = vadd.f32 %v2093_v42, %v1129_v6 }
  0xa5   :  { %1847 = vmatmul.msk.f32.gmra.mxu2 %vm302_vm1, %v288_v19 }
  0xa6   :  { %v1261_v20 = vmax.f32 %v1197_v61, 0.0  ;;  %1910 = vmatmul.msk.f32.gmra.mxu3 %vm302_vm1, %v1294_v33  ;;  %v198_v33 = vadd.f32 %v2009_v3, %v130_v4  ;;  %v1200_v4 = vadd.f32 %v2093_v42, %v1132_v43 }
  0xa7   :  { %v2454_v28 = vpop.f32.mrf.mxu0 }
  0xa8   :  { %712 = vst.msk [vmem:[%s3713_s7 + $0x20] sm:$0xff] %vm302_vm1, %v2454_v28  ;;  %1877 = vmatmul.msk.f32.gmra.mxu1 %vm302_vm1, %v1261_v20  ;;  %v2596_v41 = vpop.f32.mrf.mxu2  ;;  %v914_v22 = vmul.f32 %v2454_v28, %v2454_v28  ;;  %v780_v6 = vsel %vm302_vm1, %v2454_v28, 0.0  ;;  %v2648_v28 = vld [vmem:[%s3707_s0 + $0x1a8] sm:$0xff] }
  0xa9   :  { %743 = vst.msk [vmem:[%s3713_s7 + $0x118] sm:$0xff] %vm302_vm1, %v2596_v41  ;;  %v158_v19 = vmul.f32 %v2004_v2, %v2648_v28 }
  0xaa   :  { %1816 = vmatmul.msk.f32.gmra.mxu0 %vm302_vm1, %v257_v24  ;;  %v774_v24 = vsel %vm302_vm1, %v2364_v38, 0.0  ;;  %v157_v38 = vmul.f32 %v2004_v2, %v2585_v10  ;;  %v981_v61 = vsel %vm302_vm1, %v914_v22, 0.0 }
  0xab   :  { %v775_v48 = vadd.f32 %v774_v24, %v773_v30  ;;  %v1131_v24 = vmul.f32 %v2086_v39, %v2353_v29  ;;  %v226_v29 = vadd.f32 %v2009_v3, %v158_v19 }
  0xad   :  { %v777_v52 = vadd.f32 %v776_v37, %v775_v48  ;;  %v1528_v37 = vpop.f32.mrf.mxu1  ;;  %v1164_v48 = vmul.f32 %v2086_v39, %v2526_v62 }
  0xae   :  { %1911 = vmatmul.msk.f32.gmra.mxu3 %vm302_vm1, %v1295_v17  ;;  %1717 = vst.msk [vmem:[%s3714_s8 + $0x10] sm:$0xff] %vm1714_vm2, %v1528_v37 }
  0xaf   :  { %v2493_v46 = vpop.f32.mrf.mxu0  ;;  %v779_v0 = vadd.f32 %v778_v51, %v777_v52  ;;  %v2684_v51 = vld [vmem:[%s3707_s0 + $0xd0] sm:$0xff]  ;;  %v1232_v62 = vadd.f32 %v2093_v42, %v1164_v48 }
  0xb0   :  { %713 = vst.msk [vmem:[%s3713_s7 + $0x28] sm:$0xff] %vm302_vm1, %v2493_v46  ;;  %v915_v7 = vmul.f32 %v2493_v46, %v2493_v46  ;;  %v782_v26 = vsel %vm302_vm1, %v2493_v46, 0.0  ;;  %v2656_v23 = vpop.f32.mrf.mxu2  ;;  %v131_v58 = vmul.f32 %v2004_v2, %v2684_v51 }
  0xb1   :  { %v781_v20 = vadd.f32 %v780_v6, %v779_v0  ;;  %744 = vst.msk [vmem:[%s3713_s7 + $0x120] sm:$0xff] %vm302_vm1, %v2656_v23 }
  0xb2   :  { %1817 = vmatmul.msk.f32.gmra.mxu0 %vm302_vm1, %v258_v44  ;;  %v1130_v44 = vmul.f32 %v2086_v39, %v2324_v16  ;;  %v225_v16 = vadd.f32 %v2009_v3, %v157_v38  ;;  %v983_v27 = vsel %vm302_vm1, %v915_v7, 0.0 }
  0xb4   :  { %v1198_v9 = vadd.f32 %v2093_v42, %v1130_v44  ;;  %v289_v59 = vmax.f32 %v225_v16, 0.0  ;;  %v1624_v44 = vpop.f32.mrf.mxu3 }
  0xb5   :  { %1749 = vst.msk [vmem:[%s3714_s8 + $0x110] sm:$0xff] %vm1714_vm2, %v1624_v44  ;;  %v1531_v17 = vpop.f32.mrf.mxu1 }
  0xb6   :  { %v1262_v63 = vmax.f32 %v1198_v9, 0.0  ;;  %1848 = vmatmul.msk.f32.gmra.mxu2 %vm302_vm1, %v289_v59  ;;  %v159_v59 = vmul.f32 %v2004_v2, %v2702_v56  ;;  %1718 = vst.msk [vmem:[%s3714_s8 + $0x18] sm:$0xff] %vm1714_vm2, %v1531_v17 }
  0xb7   :  { %v2532_v1 = vpop.f32.mrf.mxu0 }
  0xb8   :  { %714 = vst.msk [vmem:[%s3713_s7 + $0x30] sm:$0xff] %vm302_vm1, %v2532_v1  ;;  %1878 = vmatmul.msk.f32.gmra.mxu1 %vm302_vm1, %v1262_v63  ;;  %v916_v13 = vmul.f32 %v2532_v1, %v2532_v1  ;;  %v784_v46 = vsel %vm302_vm1, %v2532_v1, 0.0  ;;  %v1199_v1 = vadd.f32 %v2093_v42, %v1131_v24  ;;  %v2709_v7 = vpop.f32.mrf.mxu2  ;;  %v227_v45 = vadd.f32 %v2009_v3, %v159_v59  ;;  %v2734_v24 = vld [vmem:[%s3707_s0 + $0xd8] sm:$0xff] }
  0xb9   :  { %745 = vst.msk [vmem:[%s3713_s7 + $0x128] sm:$0xff] %vm302_vm1, %v2709_v7 }
  0xba   :  { %1818 = vmatmul.msk.f32.gmra.mxu0 %vm302_vm1, %v259_v18  ;;  %v978_v18 = vadd.f32 %v977_v50, %v976_v14  ;;  %v985_v38 = vsel %vm302_vm1, %v916_v13, 0.0  ;;  %v1263_v22 = vmax.f32 %v1199_v1, 0.0  ;;  %v199_v13 = vadd.f32 %v2009_v3, %v131_v58 }
  0xbc   :  { %v980_v8 = vadd.f32 %v979_v47, %v978_v18  ;;  %v262_v47 = vmax.f32 %v198_v33, 0.0  ;;  %v1296_v18 = vmax.f32 %v1232_v62, 0.0  ;;  %v1627_v19 = vpop.f32.mrf.mxu3 }
  0xbd   :  { %1750 = vst.msk [vmem:[%s3714_s8 + $0x118] sm:$0xff] %vm1714_vm2, %v1627_v19 }
  0xbe   :  { %v982_v25 = vadd.f32 %v981_v61, %v980_v8  ;;  %1912 = vmatmul.msk.f32.gmra.mxu3 %vm302_vm1, %v1296_v18 }
  0xbf   :  { %v537_v40 = vpop.f32.mrf.mxu0 }
  0xc0   :  { %715 = vst.msk [vmem:[%s3713_s7 + $0x38] sm:$0xff] %vm302_vm1, %v537_v40  ;;  %v917_v34 = vmul.f32 %v537_v40, %v537_v40  ;;  %v786_v30 = vsel %vm302_vm1, %v537_v40, 0.0  ;;  %v984_v14 = vadd.f32 %v983_v27, %v982_v25  ;;  %v290_v40 = vmax.f32 %v226_v29, 0.0  ;;  %1879 = vmatmul.msk.f32.gmra.mxu1 %vm302_vm1, %v1263_v22  ;;  %v1534_v22 = vpop.f32.mrf.mxu1 }
  0xc1   :  { %v291_v25 = vmax.f32 %v227_v45, 0.0  ;;  %v1264_v27 = vmax.f32 %v1200_v4, 0.0  ;;  %1719 = vst.msk [vmem:[%s3714_s8 + $0x20] sm:$0xff] %vm1714_vm2, %v1534_v22 }
  0xc2   :  { %1819 = vmatmul.msk.f32.gmra.mxu0 %vm302_vm1, %v260_v32  ;;  %v783_v32 = vadd.f32 %v782_v26, %v781_v20  ;;  %v987_v55 = vsel %vm302_vm1, %v917_v34, 0.0  ;;  %v986_v9 = vadd.f32 %v985_v38, %v984_v14  ;;  %1849 = vmatmul.msk.f32.gmra.mxu2 %vm302_vm1, %v290_v40  ;;  %v1165_v20 = vmul.f32 %v2086_v39, %v2585_v10  ;;  %v2750_v10 = vld [vmem:[%s3707_s0 + $0x1b8] sm:$0xff]  ;;  %v2755_v34 = vld [vmem:[%s3708_s1] ss:$0 sm:$0xff]  ;;  %v2761_v38 = vpop.f32.mrf.mxu2 }
  0xc3   :  { %v160_v29 = vmul.f32 %v2755_v34, %v2750_v10  ;;  %746 = vst.msk [vmem:[%s3713_s7 + $0x130] sm:$0xff] %vm302_vm1, %v2761_v38 }
  0xc4   :  { %v785_v50 = vadd.f32 %v784_v46, %v783_v32  ;;  %v988_v0 = vadd.f32 %v987_v55, %v986_v9  ;;  %v1233_v3 = vadd.f32 %v2093_v42, %v1165_v20  ;;  %v263_v46 = vmax.f32 %v199_v13, 0.0  ;;  %v1630_v55 = vpop.f32.mrf.mxu3  ;;  %v2791_v9 = vld [vmem:[%s3707_s0 + $0xe0] sm:$0xff]  ;;  %v2848_v20 = vld [vmem:[%s3707_s0 + $0xe8] sm:$0xff] }
  0xc5   :  { %v132_v32 = vmul.f32 %v2755_v34, %v2734_v24  ;;  %1751 = vst.msk [vmem:[%s3714_s8 + $0x120] sm:$0xff] %vm1714_vm2, %v1630_v55  ;;  %v133_v18 = vmul.f32 %v2755_v34, %v2791_v9  ;;  %v2841_v13 = vld [vmem:[%s3710_s3] ss:$0 sm:$0xff] }
  0xc6   :  { %v787_v52 = vadd.f32 %v786_v30, %v785_v50  ;;  %v1297_v33 = vmax.f32 %v1233_v3, 0.0  ;;  %v1133_v30 = vmul.f32 %v2086_v39, %v2411_v60  ;;  %v2779_v60 = vld [vmem:[%s3709_s2] ss:$0 sm:$0xff]  ;;  %v1167_v17 = vmul.f32 %v2841_v13, %v2702_v56 }
  0xc7   :  { %v540_v21 = vpop.f32.mrf.mxu0  ;;  %v228_v48 = vadd.f32 %v2779_v60, %v160_v29  ;;  %v200_v40 = vadd.f32 %v2779_v60, %v132_v32  ;;  %v201_v45 = vadd.f32 %v2779_v60, %v133_v18 }
  0xc8   :  { %716 = vst.msk [vmem:[%s3713_s7 + $0x40] sm:$0xff] %vm302_vm1, %v540_v21  ;;  %v918_v36 = vmul.f32 %v540_v21, %v540_v21  ;;  %v788_v16 = vsel %vm302_vm1, %v540_v21, 0.0  ;;  %1880 = vmatmul.msk.f32.gmra.mxu1 %vm302_vm1, %v1264_v27  ;;  %1913 = vmatmul.msk.f32.gmra.mxu3 %vm302_vm1, %v1297_v33  ;;  %v1201_v14 = vadd.f32 %v2093_v42, %v1133_v30  ;;  %v1537_v4 = vpop.f32.mrf.mxu1  ;;  %v2864_v27 = vld [vmem:[%s3707_s0 + $0x1c8] sm:$0xff] }
  0xc9   :  { %v789_v63 = vadd.f32 %v788_v16, %v787_v52  ;;  %v1166_v16 = vmul.f32 %v2086_v39, %v2648_v28  ;;  %v292_v52 = vmax.f32 %v228_v48, 0.0  ;;  %v264_v58 = vmax.f32 %v200_v40, 0.0  ;;  %1720 = vst.msk [vmem:[%s3714_s8 + $0x28] sm:$0xff] %vm1714_vm2, %v1537_v4 }
  0xca   :  { %1820 = vmatmul.msk.f32.gmra.mxu0 %vm302_vm1, %v261_v11  ;;  %v989_v57 = vsel %vm302_vm1, %v918_v36, 0.0  ;;  %1850 = vmatmul.msk.f32.gmra.mxu2 %vm302_vm1, %v291_v25  ;;  %v265_v3 = vmax.f32 %v201_v45, 0.0  ;;  %v162_v33 = vmul.f32 %v2755_v34, %v2864_v27  ;;  %v1135_v30 = vmul.f32 %v2841_v13, %v2479_v35 }
  0xcb   :  { %v990_v11 = vadd.f32 %v989_v57, %v988_v0  ;;  %v1234_v28 = vadd.f32 %v2093_v42, %v1166_v16  ;;  %v2807_v57 = vld [vmem:[%s3707_s0 + $0x1c0] sm:$0xff]  ;;  %v1134_v42 = vmul.f32 %v2086_v39, %v2440_v15 }
  0xcc   :  { %v2832_v39 = vld [vmem:[%s3711_s4] ss:$0 sm:$0xff]  ;;  %v230_v48 = vadd.f32 %v2779_v60, %v162_v33 }
  0xcd   :  { %v1298_v59 = vmax.f32 %v1234_v28, 0.0  ;;  %v1202_v15 = vadd.f32 %v2832_v39, %v1134_v42  ;;  %v1235_v56 = vadd.f32 %v2832_v39, %v1167_v17  ;;  %v1203_v35 = vadd.f32 %v2832_v39, %v1135_v30 }
  0xcf   :  { %v543_v6 = vpop.f32.mrf.mxu0  ;;  %v1266_v25 = vmax.f32 %v1202_v15, 0.0  ;;  %v1299_v32 = vmax.f32 %v1235_v56, 0.0 }
  0xd0   :  { %717 = vst.msk [vmem:[%s3713_s7 + $0x48] sm:$0xff] %vm302_vm1, %v543_v6  ;;  %v790_v8 = vsel %vm302_vm1, %v543_v6, 0.0  ;;  %v919_v61 = vmul.f32 %v543_v6, %v543_v6  ;;  %v2813_v6 = vpop.f32.mrf.mxu2  ;;  %1914 = vmatmul.msk.f32.gmra.mxu3 %vm302_vm1, %v1298_v59  ;;  %v1540_v22 = vpop.f32.mrf.mxu1 }
  0xd1   :  { %v791_v2 = vadd.f32 %v790_v8, %v789_v63  ;;  %v161_v63 = vmul.f32 %v2755_v34, %v2807_v57  ;;  %747 = vst.msk [vmem:[%s3713_s7 + $0x138] sm:$0xff] %vm302_vm1, %v2813_v6 }
  0xd2   :  { %v991_v26 = vsel %vm302_vm1, %v919_v61, 0.0  ;;  %1821 = vmatmul.msk.f32.gmra.mxu0 %vm302_vm1, %v262_v47  ;;  %v1265_v47 = vmax.f32 %v1201_v14, 0.0  ;;  %1851 = vmatmul.msk.f32.gmra.mxu2 %vm302_vm1, %v292_v52  ;;  %v1168_v14 = vmul.f32 %v2841_v13, %v2750_v10  ;;  %1721 = vst.msk [vmem:[%s3714_s8 + $0x30] sm:$0xff] %vm1714_vm2, %v1540_v22  ;;  %v294_v10 = vmax.f32 %v230_v48, 0.0 }
  0xd3   :  { %v992_v21 = vadd.f32 %v991_v26, %v990_v11  ;;  %v229_v11 = vadd.f32 %v2779_v60, %v161_v63  ;;  %v1633_v26 = vpop.f32.mrf.mxu3  ;;  %v1267_v52 = vmax.f32 %v1203_v35, 0.0 }
  0xd4   :  { %1881 = vmatmul.msk.f32.gmra.mxu1 %vm302_vm1, %v1265_v47  ;;  %1752 = vst.msk [vmem:[%s3714_s8 + $0x128] sm:$0xff] %vm1714_vm2, %v1633_v26  ;;  %v1236_v47 = vadd.f32 %v2832_v39, %v1168_v14 }
  0xd6   :  { %v1300_v28 = vmax.f32 %v1236_v47, 0.0 }
  0xd7   :  { %v546_v1 = vpop.f32.mrf.mxu0 }
  0xd8   :  { %718 = vst.msk [vmem:[%s3713_s7 + $0x50] sm:$0xff] %vm302_vm1, %v546_v1  ;;  %v792_v36 = vsel %vm302_vm1, %v546_v1, 0.0  ;;  %v920_v37 = vmul.f32 %v546_v1, %v546_v1  ;;  %v2870_v1 = vpop.f32.mrf.mxu2  ;;  %1915 = vmatmul.msk.f32.gmra.mxu3 %vm302_vm1, %v1299_v32  ;;  %v1543_v26 = vpop.f32.mrf.mxu1 }
  0xd9   :  { %v793_v44 = vadd.f32 %v792_v36, %v791_v2  ;;  %748 = vst.msk [vmem:[%s3713_s7 + $0x140] sm:$0xff] %vm302_vm1, %v2870_v1 }
  0xda   :  { %v993_v50 = vsel %vm302_vm1, %v920_v37, 0.0  ;;  %1822 = vmatmul.msk.f32.gmra.mxu0 %vm302_vm1, %v263_v46  ;;  %v134_v46 = vmul.f32 %v2755_v34, %v2848_v20  ;;  %1722 = vst.msk [vmem:[%s3714_s8 + $0x38] sm:$0xff] %vm1714_vm2, %v1543_v26 }
  0xdb   :  { %v994_v62 = vadd.f32 %v993_v50, %v992_v21  ;;  %v293_v21 = vmax.f32 %v229_v11, 0.0  ;;  %v1636_v55 = vpop.f32.mrf.mxu3 }
  0xdc   :  { %1882 = vmatmul.msk.f32.gmra.mxu1 %vm302_vm1, %v1266_v25  ;;  %v202_v40 = vadd.f32 %v2779_v60, %v134_v46  ;;  %1753 = vst.msk [vmem:[%s3714_s8 + $0x130] sm:$0xff] %vm1714_vm2, %v1636_v55  ;;  %v2958_v46 = vld [vmem:[%s3707_s0 + $0x1d8] sm:$0xff] }
  0xdd   :  { %1852 = vmatmul.msk.f32.gmra.mxu2 %vm302_vm1, %v293_v21  ;;  %v2942_v21 = vld [vmem:[%s3707_s0 + $0xf8] sm:$0xff] }
  0xde   :  { %v266_v18 = vmax.f32 %v202_v40, 0.0  ;;  %v136_v33 = vmul.f32 %v2755_v34, %v2942_v21 }
  0xdf   :  { %v549_v0 = vpop.f32.mrf.mxu0 }
  0xe0   :  { %719 = vst.msk [vmem:[%s3713_s7 + $0x58] sm:$0xff] %vm302_vm1, %v549_v0  ;;  %v794_v43 = vsel %vm302_vm1, %v549_v0, 0.0  ;;  %v921_v8 = vmul.f32 %v549_v0, %v549_v0  ;;  %v2917_v42 = vpop.f32.mrf.mxu2  ;;  %1916 = vmatmul.msk.f32.gmra.mxu3 %vm302_vm1, %v1300_v28  ;;  %v204_v22 = vadd.f32 %v2779_v60, %v136_v33  ;;  %v1546_v55 = vpop.f32.mrf.mxu1 }
  0xe1   :  { %v795_v61 = vadd.f32 %v794_v43, %v793_v44  ;;  %v1136_v43 = vmul.f32 %v2841_v13, %v2518_v54  ;;  %749 = vst.msk [vmem:[%s3713_s7 + $0x148] sm:$0xff] %vm302_vm1, %v2917_v42 }
  0xe2   :  { %v995_v2 = vsel %vm302_vm1, %v921_v8, 0.0  ;;  %1823 = vmatmul.msk.f32.gmra.mxu0 %vm302_vm1, %v264_v58  ;;  %v2911_v58 = vld [vmem:[%s3707_s0 + $0x1d0] sm:$0xff]  ;;  %1723 = vst.msk [vmem:[%s3714_s8 + $0x40] sm:$0xff] %vm1714_vm2, %v1546_v55 }
  0xe3   :  { %v996_v19 = vadd.f32 %v995_v2, %v994_v62  ;;  %v2895_v62 = vld [vmem:[%s3707_s0 + $0xf0] sm:$0xff]  ;;  %v163_v63 = vmul.f32 %v2755_v34, %v2911_v58  ;;  %v1204_v54 = vadd.f32 %v2832_v39, %v1136_v43  ;;  %v1169_v2 = vmul.f32 %v2841_v13, %v2807_v57  ;;  %v1639_v17 = vpop.f32.mrf.mxu3 }
  0xe4   :  { %1883 = vmatmul.msk.f32.gmra.mxu1 %vm302_vm1, %v1267_v52  ;;  %v135_v59 = vmul.f32 %v2755_v34, %v2895_v62  ;;  %1754 = vst.msk [vmem:[%s3714_s8 + $0x138] sm:$0xff] %vm1714_vm2, %v1639_v17 }
  0xe5   :  { %1853 = vmatmul.msk.f32.gmra.mxu2 %vm302_vm1, %v294_v10  ;;  %v231_v15 = vadd.f32 %v2779_v60, %v163_v63  ;;  %v1268_v25 = vmax.f32 %v1204_v54, 0.0  ;;  %v1237_v56 = vadd.f32 %v2832_v39, %v1169_v2  ;;  %v1171_v2 = vmul.f32 %v2841_v13, %v2911_v58 }
  0xe6   :  { %v203_v4 = vadd.f32 %v2779_v60, %v135_v59  ;;  %v268_v59 = vmax.f32 %v204_v22, 0.0 }
  0xe7   :  { %v552_v29 = vpop.f32.mrf.mxu0  ;;  %v295_v57 = vmax.f32 %v231_v15, 0.0 }
  0xe8   :  { %720 = vst.msk [vmem:[%s3713_s7 + $0x60] sm:$0xff] %vm302_vm1, %v552_v29  ;;  %v796_v36 = vsel %vm302_vm1, %v552_v29, 0.0  ;;  %v922_v37 = vmul.f32 %v552_v29, %v552_v29  ;;  %v267_v32 = vmax.f32 %v203_v4, 0.0  ;;  %v164_v29 = vmul.f32 %v2755_v34, %v2958_v46  ;;  %v1549_v4 = vpop.f32.mrf.mxu1 }
  0xe9   :  { %v797_v44 = vadd.f32 %v796_v36, %v795_v61  ;;  %v2964_v36 = vpop.f32.mrf.mxu2  ;;  %1724 = vst.msk [vmem:[%s3714_s8 + $0x48] sm:$0xff] %vm1714_vm2, %v1549_v4 }
  0xea   :  { %v997_v50 = vsel %vm302_vm1, %v922_v37, 0.0  ;;  %1824 = vmatmul.msk.f32.gmra.mxu0 %vm302_vm1, %v265_v3  ;;  %v1301_v3 = vmax.f32 %v1237_v56, 0.0  ;;  %v1137_v37 = vmul.f32 %v2841_v13, %v2558_v12  ;;  %750 = vst.msk [vmem:[%s3713_s7 + $0x150] sm:$0xff] %vm302_vm1, %v2964_v36  ;;  %v232_v14 = vadd.f32 %v2779_v60, %v164_v29  ;;  %v3039_v56 = vld [vmem:[%s3707_s0 + $0x1e8] sm:$0xff] }
  0xeb   :  { %v998_v16 = vadd.f32 %v997_v50, %v996_v19  ;;  %v1170_v50 = vmul.f32 %v2841_v13, %v2864_v27  ;;  %v1139_v29 = vmul.f32 %v2841_v13, %v2684_v51 }
  0xec   :  { %1884 = vmatmul.msk.f32.gmra.mxu1 %vm302_vm1, %v1268_v25  ;;  %1917 = vmatmul.msk.f32.gmra.mxu3 %vm302_vm1, %v1301_v3  ;;  %v1205_v12 = vadd.f32 %v2832_v39, %v1137_v37  ;;  %v296_v52 = vmax.f32 %v232_v14, 0.0  ;;  %v1239_v25 = vadd.f32 %v2832_v39, %v1171_v2  ;;  %v166_v3 = vmul.f32 %v2755_v34, %v3039_v56 }
  0xed   :  { %1854 = vmatmul.msk.f32.gmra.mxu2 %vm302_vm1, %v295_v57  ;;  %v1238_v28 = vadd.f32 %v2832_v39, %v1170_v50  ;;  %v1207_v51 = vadd.f32 %v2832_v39, %v1139_v29  ;;  %v1174_v29 = vmul.f32 %v2841_v13, %v3039_v56 }
  0xee   :  { %v1269_v47 = vmax.f32 %v1205_v12, 0.0  ;;  %v1303_v58 = vmax.f32 %v1239_v25, 0.0  ;;  %v1141_v25 = vmul.f32 %v2841_v13, %v2791_v9 }
  0xef   :  { %v555_v0 = vpop.f32.mrf.mxu0  ;;  %v1302_v27 = vmax.f32 %v1238_v28, 0.0  ;;  %v1271_v55 = vmax.f32 %v1207_v51, 0.0 }
  0xf0   :  { %721 = vst.msk [vmem:[%s3713_s7 + $0x68] sm:$0xff] %vm302_vm1, %v555_v0  ;;  %v798_v8 = vsel %vm302_vm1, %v555_v0, 0.0  ;;  %v923_v61 = vmul.f32 %v555_v0, %v555_v0  ;;  %v1552_v12 = vpop.f32.mrf.mxu1  ;;  %v1209_v9 = vadd.f32 %v2832_v39, %v1141_v25  ;;  %v1144_v25 = vmul.f32 %v2841_v13, %v2942_v21 }
  0xf1   :  { %v799_v11 = vadd.f32 %v798_v8, %v797_v44  ;;  %v3004_v43 = vpop.f32.mrf.mxu2  ;;  %v1138_v8 = vmul.f32 %v2841_v13, %v2623_v53  ;;  %1725 = vst.msk [vmem:[%s3714_s8 + $0x50] sm:$0xff] %vm1714_vm2, %v1552_v12 }
  0xf2   :  { %v999_v45 = vsel %vm302_vm1, %v923_v61, 0.0  ;;  %1825 = vmatmul.msk.f32.gmra.mxu0 %vm302_vm1, %v266_v18  ;;  %v3000_v18 = vld [vmem:[%s3707_s0 + $0x1e0] sm:$0xff]  ;;  %751 = vst.msk [vmem:[%s3713_s7 + $0x158] sm:$0xff] %vm302_vm1, %v3004_v43 }
  0xf3   :  { %v1000_v19 = vadd.f32 %v999_v45, %v998_v16  ;;  %v1642_v16 = vpop.f32.mrf.mxu3  ;;  %v165_v63 = vmul.f32 %v2755_v34, %v3000_v18  ;;  %v1206_v53 = vadd.f32 %v2832_v39, %v1138_v8 }
  0xf4   :  { %1755 = vst.msk [vmem:[%s3714_s8 + $0x140] sm:$0xff] %vm1714_vm2, %v1642_v16  ;;  %1885 = vmatmul.msk.f32.gmra.mxu1 %vm302_vm1, %v1269_v47  ;;  %1918 = vmatmul.msk.f32.gmra.mxu3 %vm302_vm1, %v1302_v27  ;;  %v1140_v27 = vmul.f32 %v2841_v13, %v2734_v24 }
  0xf5   :  { %1855 = vmatmul.msk.f32.gmra.mxu2 %vm302_vm1, %v296_v52  ;;  %v233_v54 = vadd.f32 %v2779_v60, %v165_v63  ;;  %v1270_v57 = vmax.f32 %v1206_v53, 0.0 }
  0xf6   :  { %v1208_v24 = vadd.f32 %v2832_v39, %v1140_v27 }
  0xf7   :  { %v558_v30 = vpop.f32.mrf.mxu0 }
  0xf8   :  { %722 = vst.msk [vmem:[%s3713_s7 + $0x70] sm:$0xff] %vm302_vm1, %v558_v30  ;;  %v800_v44 = vsel %vm302_vm1, %v558_v30, 0.0  ;;  %v924_v48 = vmul.f32 %v558_v30, %v558_v30 }
  0xf9   :  { %v801_v35 = vadd.f32 %v800_v44, %v799_v11  ;;  %v3043_v33 = vpop.f32.mrf.mxu2 }
  0xfa   :  { %v1001_v40 = vsel %vm302_vm1, %v924_v48, 0.0  ;;  %1826 = vmatmul.msk.f32.gmra.mxu0 %vm302_vm1, %v267_v32  ;;  %752 = vst.msk [vmem:[%s3713_s7 + $0x160] sm:$0xff] %vm302_vm1, %v3043_v33  ;;  %v234_v48 = vadd.f32 %v2779_v60, %v166_v3 }
  0xfb   :  { %v1002_v10 = vadd.f32 %v1001_v40, %v1000_v19  ;;  %v1645_v26 = vpop.f32.mrf.mxu3  ;;  %v297_v19 = vmax.f32 %v233_v54, 0.0 }
  0xfc   :  { %1756 = vst.msk [vmem:[%s3714_s8 + $0x148] sm:$0xff] %vm1714_vm2, %v1645_v26  ;;  %1886 = vmatmul.msk.f32.gmra.mxu1 %vm302_vm1, %v1270_v57  ;;  %1919 = vmatmul.msk.f32.gmra.mxu3 %vm302_vm1, %v1303_v58  ;;  %v298_v22 = vmax.f32 %v234_v48, 0.0  ;;  %v100_v26 = vld [vmem:[%s3707_s0 + $0x1f8] sm:$0xff] }
  0xfd   :  { %1856 = vmatmul.msk.f32.gmra.mxu2 %vm302_vm1, %v297_v19 }
  0xff   :  { %v561_v0 = vpop.f32.mrf.mxu0 }
 0x100   :  { %723 = vst.msk [vmem:[%s3713_s7 + $0x78] sm:$0xff] %vm302_vm1, %v561_v0  ;;  %v802_v61 = vsel %vm302_vm1, %v561_v0, 0.0  ;;  %v925_v11 = vmul.f32 %v561_v0, %v561_v0 }
 0x101   :  { %v803_v15 = vadd.f32 %v802_v61, %v801_v35  ;;  %v1172_v35 = vmul.f32 %v2841_v13, %v2958_v46  ;;  %v3078_v28 = vpop.f32.mrf.mxu2  ;;  %v1173_v61 = vmul.f32 %v2841_v13, %v3000_v18 }
 0x102   :  { %v1003_v45 = vsel %vm302_vm1, %v925_v11, 0.0  ;;  %1827 = vmatmul.msk.f32.gmra.mxu0 %vm302_vm1, %v268_v59  ;;  %753 = vst.msk [vmem:[%s3713_s7 + $0x168] sm:$0xff] %vm302_vm1, %v3078_v28 }
 0x103   :  { %v1004_v17 = vadd.f32 %v1003_v45, %v1002_v10  ;;  %v1648_v50 = vpop.f32.mrf.mxu3  ;;  %v1240_v16 = vadd.f32 %v2832_v39, %v1172_v35  ;;  %v99_v10 = vld [vmem:[%s3707_s0 + $0x1f0] sm:$0xff]  ;;  %v1272_v45 = vmax.f32 %v1208_v24, 0.0  ;;  %v1241_v4 = vadd.f32 %v2832_v39, %v1173_v61 }
 0x104   :  { %1757 = vst.msk [vmem:[%s3714_s8 + $0x150] sm:$0xff] %vm1714_vm2, %v1648_v50  ;;  %1887 = vmatmul.msk.f32.gmra.mxu1 %vm302_vm1, %v1271_v55  ;;  %v167_v52 = vmul.f32 %v2755_v34, %v99_v10  ;;  %v1273_v35 = vmax.f32 %v1209_v9, 0.0  ;;  %v1142_v50 = vmul.f32 %v2841_v13, %v2848_v20  ;;  %v1175_v20 = vmul.f32 %v2841_v13, %v99_v10 }
 0x105   :  { %1857 = vmatmul.msk.f32.gmra.mxu2 %vm302_vm1, %v298_v22  ;;  %v1304_v46 = vmax.f32 %v1240_v16, 0.0  ;;  %v1305_v18 = vmax.f32 %v1241_v4, 0.0  ;;  %v1143_v24 = vmul.f32 %v2841_v13, %v2895_v62 }
 0x106   :  { %v235_v8 = vadd.f32 %v2779_v60, %v167_v52  ;;  %v1210_v16 = vadd.f32 %v2832_v39, %v1142_v50 }
 0x107   :  { %v564_v32 = vpop.f32.mrf.mxu0  ;;  %1920 = vmatmul.msk.f32.gmra.mxu3 %vm302_vm1, %v1304_v46  ;;  %v1211_v62 = vadd.f32 %v2832_v39, %v1143_v24 }
 0x108   :  { %724 = vst.msk [vmem:[%s3713_s7 + $0x80] sm:$0xff] %vm302_vm1, %v564_v32  ;;  %v804_v30 = vsel %vm302_vm1, %v564_v32, 0.0  ;;  %v926_v37 = vmul.f32 %v564_v32, %v564_v32  ;;  %v299_v2 = vmax.f32 %v235_v8, 0.0 }
 0x109   :  { %v805_v44 = vadd.f32 %v804_v30, %v803_v15  ;;  %v1555_v15 = vpop.f32.mrf.mxu1  ;;  %v3113_v57 = vpop.f32.mrf.mxu2 }
 0x10a   :  { %v1005_v14 = vsel %vm302_vm1, %v926_v37, 0.0  ;;  %1726 = vst.msk [vmem:[%s3714_s8 + $0x58] sm:$0xff] %vm1714_vm2, %v1555_v15 }
 0x10b   :  { %v1006_v40 = vadd.f32 %v1005_v14, %v1004_v17  ;;  %v1651_v54 = vpop.f32.mrf.mxu3  ;;  %v168_v17 = vmul.f32 %v2755_v34, %v100_v26  ;;  %754 = vst.msk [vmem:[%s3713_s7 + $0x170] sm:$0xff] %vm302_vm1, %v3113_v57  ;;  %v1242_v14 = vadd.f32 %v2832_v39, %v1174_v29 }
 0x10c   :  { %1758 = vst.msk [vmem:[%s3714_s8 + $0x158] sm:$0xff] %vm1714_vm2, %v1651_v54  ;;  %1888 = vmatmul.msk.f32.gmra.mxu1 %vm302_vm1, %v1272_v45  ;;  %v1176_v54 = vmul.f32 %v2841_v13, %v100_v26 }
 0x10d   :  { %1858 = vmatmul.msk.f32.gmra.mxu2 %vm302_vm1, %v299_v2  ;;  %v236_v34 = vadd.f32 %v2779_v60, %v168_v17  ;;  %v1306_v60 = vmax.f32 %v1242_v14, 0.0 }
 0x10e   :  { %v1244_v17 = vadd.f32 %v2832_v39, %v1176_v54 }
 0x10f   :  { %v567_v47 = vpop.f32.mrf.mxu0  ;;  %1921 = vmatmul.msk.f32.gmra.mxu3 %vm302_vm1, %v1305_v18  ;;  %v300_v51 = vmax.f32 %v236_v34, 0.0  ;;  %v1275_v18 = vmax.f32 %v1211_v62, 0.0 }
 0x110   :  { %725 = vst.msk [vmem:[%s3713_s7 + $0x88] sm:$0xff] %vm302_vm1, %v567_v47  ;;  %v806_v59 = vsel %vm302_vm1, %v567_v47, 0.0  ;;  %v927_v63 = vmul.f32 %v567_v47, %v567_v47  ;;  %v1308_v26 = vmax.f32 %v1244_v17, 0.0 }
 0x111   :  { %v807_v0 = vadd.f32 %v806_v59, %v805_v44  ;;  %v1558_v37 = vpop.f32.mrf.mxu1  ;;  %v3144_v12 = vpop.f32.mrf.mxu2  ;;  %v1274_v59 = vmax.f32 %v1210_v16, 0.0 }
 0x112   :  { %v1007_v11 = vsel %vm302_vm1, %v927_v63, 0.0  ;;  %1727 = vst.msk [vmem:[%s3714_s8 + $0x60] sm:$0xff] %vm1714_vm2, %v1558_v37  ;;  %v1243_v63 = vadd.f32 %v2832_v39, %v1175_v20 }
 0x113   :  { %v1008_v53 = vadd.f32 %v1007_v11, %v1006_v40  ;;  %v1654_v44 = vpop.f32.mrf.mxu3  ;;  %755 = vst.msk [vmem:[%s3713_s7 + $0x178] sm:$0xff] %vm302_vm1, %v3144_v12 }
 0x114   :  { %1759 = vst.msk [vmem:[%s3714_s8 + $0x160] sm:$0xff] %vm1714_vm2, %v1654_v44  ;;  %1889 = vmatmul.msk.f32.gmra.mxu1 %vm302_vm1, %v1273_v35  ;;  %v1307_v10 = vmax.f32 %v1243_v63, 0.0 }
 0x115   :  { %1859 = vmatmul.msk.f32.gmra.mxu2 %vm302_vm1, %v300_v51 }
 0x117   :  { %v570_v19 = vpop.f32.mrf.mxu0  ;;  %1922 = vmatmul.msk.f32.gmra.mxu3 %vm302_vm1, %v1306_v60 }
 0x118   :  { %726 = vst.msk [vmem:[%s3713_s7 + $0x90] sm:$0xff] %vm302_vm1, %v570_v19  ;;  %v808_v58 = vsel %vm302_vm1, %v570_v19, 0.0  ;;  %v928_v3 = vmul.f32 %v570_v19, %v570_v19 }
 0x119   :  { %v809_v32 = vadd.f32 %v808_v58, %v807_v0  ;;  %v1561_v52 = vpop.f32.mrf.mxu1  ;;  %v3172_v8 = vpop.f32.mrf.mxu2 }
 0x11a   :  { %v1009_v30 = vsel %vm302_vm1, %v928_v3, 0.0  ;;  %1728 = vst.msk [vmem:[%s3714_s8 + $0x68] sm:$0xff] %vm1714_vm2, %v1561_v52  ;;  %v1212_v3 = vadd.f32 %v2832_v39, %v1144_v25 }
 0x11b   :  { %v1010_v48 = vadd.f32 %v1009_v30, %v1008_v53  ;;  %v1657_v47 = vpop.f32.mrf.mxu3  ;;  %756 = vst.msk [vmem:[%s3713_s7 + $0x180] sm:$0xff] %vm302_vm1, %v3172_v8 }
 0x11c   :  { %1760 = vst.msk [vmem:[%s3714_s8 + $0x168] sm:$0xff] %vm1714_vm2, %v1657_v47  ;;  %1890 = vmatmul.msk.f32.gmra.mxu1 %vm302_vm1, %v1274_v59  ;;  %v1276_v21 = vmax.f32 %v1212_v3, 0.0 }
 0x11f   :  { %v573_v56 = vpop.f32.mrf.mxu0  ;;  %1923 = vmatmul.msk.f32.gmra.mxu3 %vm302_vm1, %v1307_v10 }
 0x120   :  { %727 = vst.msk [vmem:[%s3713_s7 + $0x98] sm:$0xff] %vm302_vm1, %v573_v56  ;;  %v810_v40 = vsel %vm302_vm1, %v573_v56, 0.0  ;;  %v929_v22 = vmul.f32 %v573_v56, %v573_v56 }
 0x121   :  { %v811_v55 = vadd.f32 %v810_v40, %v809_v32  ;;  %v1564_v2 = vpop.f32.mrf.mxu1  ;;  %v3213_v58 = vpop.f32.mrf.mxu2 }
 0x122   :  { %v1011_v46 = vsel %vm302_vm1, %v929_v22, 0.0  ;;  %1729 = vst.msk [vmem:[%s3714_s8 + $0x70] sm:$0xff] %vm1714_vm2, %v1564_v2 }
 0x123   :  { %v1012_v27 = vadd.f32 %v1011_v46, %v1010_v48  ;;  %v1660_v45 = vpop.f32.mrf.mxu3  ;;  %757 = vst.msk [vmem:[%s3713_s7 + $0x188] sm:$0xff] %vm302_vm1, %v3213_v58 }
 0x124   :  { %1761 = vst.msk [vmem:[%s3714_s8 + $0x170] sm:$0xff] %vm1714_vm2, %v1660_v45  ;;  %1891 = vmatmul.msk.f32.gmra.mxu1 %vm302_vm1, %v1275_v18 }
 0x127   :  { %v576_v0 = vpop.f32.mrf.mxu0  ;;  %1924 = vmatmul.msk.f32.gmra.mxu3 %vm302_vm1, %v1308_v26 }
 0x128   :  { %728 = vst.msk [vmem:[%s3713_s7 + $0xa0] sm:$0xff] %vm302_vm1, %v576_v0  ;;  %v812_v61 = vsel %vm302_vm1, %v576_v0, 0.0  ;;  %v930_v11 = vmul.f32 %v576_v0, %v576_v0 }
 0x129   :  { %v3182_v15 = vadd.f32 %v812_v61, %v811_v55  ;;  %v1567_v32 = vpop.f32.mrf.mxu1  ;;  %v3235_v39 = vpop.f32.mrf.mxu2 }
 0x12a   :  { %v1013_v53 = vsel %vm302_vm1, %v930_v11, 0.0  ;;  %1730 = vst.msk [vmem:[%s3714_s8 + $0x78] sm:$0xff] %vm1714_vm2, %v1567_v32 }
 0x12b   :  { %v3192_v4 = vadd.f32 %v1013_v53, %v1012_v27  ;;  %v1663_v13 = vpop.f32.mrf.mxu3  ;;  %758 = vst.msk [vmem:[%s3713_s7 + $0x190] sm:$0xff] %vm302_vm1, %v3235_v39 }
 0x12c   :  { %1762 = vst.msk [vmem:[%s3714_s8 + $0x178] sm:$0xff] %vm1714_vm2, %v1663_v13  ;;  %1892 = vmatmul.msk.f32.gmra.mxu1 %vm302_vm1, %v1276_v21 }
 0x12f   :  { %v3204_v19 = vpop.f32.mrf.mxu0 }
 0x130   :  { %729 = vst.msk [vmem:[%s3713_s7 + $0xa8] sm:$0xff] %vm302_vm1, %v3204_v19  ;;  %v931_v10 = vmul.f32 %v3204_v19, %v3204_v19  ;;  %v814_v24 = vsel %vm302_vm1, %v3204_v19, 0.0 }
 0x131   :  { %v1570_v9 = vpop.f32.mrf.mxu1  ;;  %v3254_v37 = vpop.f32.mrf.mxu2  ;;  %v815_v45 = vadd.f32 %v814_v24, %v3182_v15 }
 0x132   :  { %1731 = vst.msk [vmem:[%s3714_s8 + $0x80] sm:$0xff] %vm1714_vm2, %v1570_v9  ;;  %v1015_v54 = vsel %vm302_vm1, %v931_v10, 0.0 }
 0x133   :  { %v1666_v29 = vpop.f32.mrf.mxu3  ;;  %759 = vst.msk [vmem:[%s3713_s7 + $0x198] sm:$0xff] %vm302_vm1, %v3254_v37  ;;  %v1016_v19 = vadd.f32 %v1015_v54, %v3192_v4 }
 0x134   :  { %1763 = vst.msk [vmem:[%s3714_s8 + $0x180] sm:$0xff] %vm1714_vm2, %v1666_v29 }
 0x137   :  { %v582_v34 = vpop.f32.mrf.mxu0 }
 0x138   :  { %730 = vst.msk [vmem:[%s3713_s7 + $0xb0] sm:$0xff] %vm302_vm1, %v582_v34  ;;  %v932_v61 = vmul.f32 %v582_v34, %v582_v34  ;;  %v816_v53 = vsel %vm302_vm1, %v582_v34, 0.0 }
 0x139   :  { %v1573_v44 = vpop.f32.mrf.mxu1  ;;  %v3273_v35 = vpop.f32.mrf.mxu2  ;;  %v817_v25 = vadd.f32 %v816_v53, %v815_v45 }
 0x13a   :  { %1732 = vst.msk [vmem:[%s3714_s8 + $0x88] sm:$0xff] %vm1714_vm2, %v1573_v44  ;;  %v1017_v18 = vsel %vm302_vm1, %v932_v61, 0.0 }
 0x13b   :  { %v1669_v48 = vpop.f32.mrf.mxu3  ;;  %760 = vst.msk [vmem:[%s3713_s7 + $0x1a0] sm:$0xff] %vm302_vm1, %v3273_v35  ;;  %v1018_v34 = vadd.f32 %v1017_v18, %v1016_v19 }
 0x13c   :  { %1764 = vst.msk [vmem:[%s3714_s8 + $0x188] sm:$0xff] %vm1714_vm2, %v1669_v48 }
 0x13f   :  { %v585_v30 = vpop.f32.mrf.mxu0 }
 0x140   :  { %731 = vst.msk [vmem:[%s3713_s7 + $0xb8] sm:$0xff] %vm302_vm1, %v585_v30  ;;  %v933_v2 = vmul.f32 %v585_v30, %v585_v30  ;;  %v818_v17 = vsel %vm302_vm1, %v585_v30, 0.0 }
 0x141   :  { %v1576_v14 = vpop.f32.mrf.mxu1  ;;  %v819_v9 = vadd.f32 %v818_v17, %v817_v25 }
 0x142   :  { %1733 = vst.msk [vmem:[%s3714_s8 + $0x90] sm:$0xff] %vm1714_vm2, %v1576_v14  ;;  %v1019_v32 = vsel %vm302_vm1, %v933_v2, 0.0 }
 0x143   :  { %v1672_v60 = vpop.f32.mrf.mxu3  ;;  %v1020_v48 = vadd.f32 %v1019_v32, %v1018_v34 }
 0x144   :  { %1765 = vst.msk [vmem:[%s3714_s8 + $0x190] sm:$0xff] %vm1714_vm2, %v1672_v60 }
 0x145   :  { %v3292_v50 = vpop.f32.mrf.mxu2 }
 0x146   :  { %761 = vst.msk [vmem:[%s3713_s7 + $0x1a8] sm:$0xff] %vm302_vm1, %v3292_v50 }
 0x147   :  { %v588_v51 = vpop.f32.mrf.mxu0 }
 0x148   :  { %732 = vst.msk [vmem:[%s3713_s7 + $0xc0] sm:$0xff] %vm302_vm1, %v588_v51  ;;  %v934_v26 = vmul.f32 %v588_v51, %v588_v51  ;;  %v820_v13 = vsel %vm302_vm1, %v588_v51, 0.0 }
 0x149   :  { %v1579_v40 = vpop.f32.mrf.mxu1  ;;  %v821_v51 = vadd.f32 %v820_v13, %v819_v9 }
 0x14a   :  { %1734 = vst.msk [vmem:[%s3714_s8 + $0x98] sm:$0xff] %vm1714_vm2, %v1579_v40  ;;  %v1021_v4 = vsel %vm302_vm1, %v934_v26, 0.0 }
 0x14b   :  { %v1675_v22 = vpop.f32.mrf.mxu3 }
 0x14c   :  { %1766 = vst.msk [vmem:[%s3714_s8 + $0x198] sm:$0xff] %vm1714_vm2, %v1675_v22 }
 0x14d   :  { %v3311_v16 = vpop.f32.mrf.mxu2 }
 0x14e   :  { %762 = vst.msk [vmem:[%s3713_s7 + $0x1b0] sm:$0xff] %vm302_vm1, %v3311_v16 }
 0x14f   :  { %v591_v56 = vpop.f32.mrf.mxu0 }
 0x150   :  { %733 = vst.msk [vmem:[%s3713_s7 + $0xc8] sm:$0xff] %vm302_vm1, %v591_v56  ;;  %v935_v21 = vmul.f32 %v591_v56, %v591_v56  ;;  %v822_v29 = vsel %vm302_vm1, %v591_v56, 0.0  ;;  %v1022_v56 = vadd.f32 %v1021_v4, %v1020_v48 }
 0x151   :  { %v1582_v20 = vpop.f32.mrf.mxu1 }
 0x152   :  { %1735 = vst.msk [vmem:[%s3714_s8 + $0xa0] sm:$0xff] %vm1714_vm2, %v1582_v20  ;;  %v1023_v60 = vsel %vm302_vm1, %v935_v21, 0.0  ;;  %v823_v20 = vadd.f32 %v822_v29, %v821_v51  ;;  %v942_v29 = vmul.f32 %v2456_v31, %v2456_v31 }
 0x153   :  { %v1678_v46 = vpop.f32.mrf.mxu3  ;;  %v1024_v10 = vadd.f32 %v1023_v60, %v1022_v56  ;;  %v943_v60 = vmul.f32 %v2495_v49, %v2495_v49 }
 0x154   :  { %1767 = vst.msk [vmem:[%s3714_s8 + $0x1a0] sm:$0xff] %vm1714_vm2, %v1678_v46 }
 0x155   :  { %v3330_v47 = vpop.f32.mrf.mxu2 }
 0x156   :  { %763 = vst.msk [vmem:[%s3713_s7 + $0x1b8] sm:$0xff] %vm302_vm1, %v3330_v47 }
 0x157   :  { %v594_v55 = vpop.f32.mrf.mxu0 }
 0x158   :  { %734 = vst.msk [vmem:[%s3713_s7 + $0xd0] sm:$0xff] %vm302_vm1, %v594_v55  ;;  %v936_v30 = vmul.f32 %v594_v55, %v594_v55  ;;  %v824_v40 = vsel %vm302_vm1, %v594_v55, 0.0 }
 0x159   :  { %v1585_v27 = vpop.f32.mrf.mxu1  ;;  %v825_v24 = vadd.f32 %v824_v40, %v823_v20  ;;  %v836_v40 = vsel %vm302_vm1, %v2456_v31, 0.0 }
 0x15a   :  { %1736 = vst.msk [vmem:[%s3714_s8 + $0xa8] sm:$0xff] %vm1714_vm2, %v1585_v27  ;;  %v1025_v46 = vsel %vm302_vm1, %v936_v30, 0.0 }
 0x15b   :  { %v1681_v59 = vpop.f32.mrf.mxu3  ;;  %v1026_v53 = vadd.f32 %v1025_v46, %v1024_v10  ;;  %v944_v10 = vmul.f32 %v2534_v5, %v2534_v5 }
 0x15c   :  { %1768 = vst.msk [vmem:[%s3714_s8 + $0x1a8] sm:$0xff] %vm1714_vm2, %v1681_v59 }
 0x15f   :  { %v597_v52 = vpop.f32.mrf.mxu0 }
 0x160   :  { %735 = vst.msk [vmem:[%s3713_s7 + $0xd8] sm:$0xff] %vm302_vm1, %v597_v52  ;;  %v3351_v0 = vpop.f32.mrf.mxu2  ;;  %v937_v22 = vmul.f32 %v597_v52, %v597_v52  ;;  %v826_v27 = vsel %vm302_vm1, %v597_v52, 0.0 }
 0x161   :  { %764 = vst.msk [vmem:[%s3713_s7 + $0x1c0] sm:$0xff] %vm302_vm1, %v3351_v0  ;;  %v1588_v11 = vpop.f32.mrf.mxu1  ;;  %v827_v2 = vadd.f32 %v826_v27, %v825_v24  ;;  %v1037_v24 = vsel %vm302_vm1, %v942_v29, 0.0  ;;  %v848_v29 = vsel %vm302_vm1, %v2761_v38, 0.0 }
 0x162   :  { %1737 = vst.msk [vmem:[%s3714_s8 + $0xb0] sm:$0xff] %vm1714_vm2, %v1588_v11  ;;  %v1027_v11 = vsel %vm302_vm1, %v937_v22, 0.0 }
 0x163   :  { %v1684_v62 = vpop.f32.mrf.mxu3  ;;  %v1028_v17 = vadd.f32 %v1027_v11, %v1026_v53  ;;  %v1039_v11 = vsel %vm302_vm1, %v943_v60, 0.0  ;;  %v950_v60 = vmul.f32 %v2870_v1, %v2870_v1 }
 0x164   :  { %1769 = vst.msk [vmem:[%s3714_s8 + $0x1b0] sm:$0xff] %vm1714_vm2, %v1684_v62 }
 0x167   :  { %v600_v63 = vpop.f32.mrf.mxu0 }
 0x168   :  { %736 = vst.msk [vmem:[%s3713_s7 + $0xe0] sm:$0xff] %vm302_vm1, %v600_v63  ;;  %v3380_v15 = vpop.f32.mrf.mxu2  ;;  %v938_v59 = vmul.f32 %v600_v63, %v600_v63  ;;  %v828_v55 = vsel %vm302_vm1, %v600_v63, 0.0 }
 0x169   :  { %765 = vst.msk [vmem:[%s3713_s7 + $0x1c8] sm:$0xff] %vm302_vm1, %v3380_v15  ;;  %v1591_v44 = vpop.f32.mrf.mxu1  ;;  %v829_v26 = vadd.f32 %v828_v55, %v827_v2  ;;  %v840_v55 = vsel %vm302_vm1, %v2534_v5, 0.0  ;;  %v1041_v2 = vsel %vm302_vm1, %v944_v10, 0.0 }
 0x16a   :  { %1738 = vst.msk [vmem:[%s3714_s8 + $0xb8] sm:$0xff] %vm1714_vm2, %v1591_v44  ;;  %v1029_v52 = vsel %vm302_vm1, %v938_v59, 0.0  ;;  %v838_v59 = vsel %vm302_vm1, %v2495_v49, 0.0  ;;  %v945_v49 = vmul.f32 %v2596_v41, %v2596_v41 }
 0x16b   :  { %v1687_v14 = vpop.f32.mrf.mxu3 }
 0x16c   :  { %1770 = vst.msk [vmem:[%s3714_s8 + $0x1b8] sm:$0xff] %vm1714_vm2, %v1687_v14  ;;  %v1043_v5 = vsel %vm302_vm1, %v945_v49, 0.0  ;;  %v856_v49 = vsel %vm302_vm1, %v2964_v36, 0.0 }
 0x16f   :  { %v603_v3 = vpop.f32.mrf.mxu0 }
 0x170   :  { %737 = vst.msk [vmem:[%s3713_s7 + $0xe8] sm:$0xff] %vm302_vm1, %v603_v3  ;;  %v939_v62 = vmul.f32 %v603_v3, %v603_v3  ;;  %v3407_v54 = vpop.f32.mrf.mxu2  ;;  %v830_v63 = vsel %vm302_vm1, %v603_v3, 0.0  ;;  %v1030_v3 = vadd.f32 %v1029_v52, %v1028_v17  ;;  %v842_v52 = vsel %vm302_vm1, %v2596_v41, 0.0 }
 0x171   :  { %766 = vst.msk [vmem:[%s3713_s7 + $0x1d0] sm:$0xff] %vm302_vm1, %v3407_v54  ;;  %v1594_v18 = vpop.f32.mrf.mxu1  ;;  %v831_v13 = vadd.f32 %v830_v63, %v829_v26  ;;  %v946_v63 = vmul.f32 %v2656_v23, %v2656_v23  ;;  %v844_v26 = vsel %vm302_vm1, %v2656_v23, 0.0  ;;  %v947_v41 = vmul.f32 %v2709_v7, %v2709_v7 }
 0x172   :  { %1739 = vst.msk [vmem:[%s3714_s8 + $0xc0] sm:$0xff] %vm1714_vm2, %v1594_v18  ;;  %v1031_v25 = vsel %vm302_vm1, %v939_v62, 0.0  ;;  %v948_v23 = vmul.f32 %v2761_v38, %v2761_v38 }
 0x173   :  { %v1690_v19 = vpop.f32.mrf.mxu3  ;;  %v1032_v34 = vadd.f32 %v1031_v25, %v1030_v3 }
 0x174   :  { %1771 = vst.msk [vmem:[%s3714_s8 + $0x1c0] sm:$0xff] %vm1714_vm2, %v1690_v19 }
 0x177   :  { %v606_v61 = vpop.f32.mrf.mxu0 }
 0x178   :  { %738 = vst.msk [vmem:[%s3713_s7 + $0xf0] sm:$0xff] %vm302_vm1, %v606_v61  ;;  %v940_v45 = vmul.f32 %v606_v61, %v606_v61  ;;  %v832_v32 = vsel %vm302_vm1, %v606_v61, 0.0  ;;  %v3434_v48 = vpop.f32.mrf.mxu2 }
 0x179   :  { %v833_v9 = vadd.f32 %v832_v32, %v831_v13  ;;  %767 = vst.msk [vmem:[%s3713_s7 + $0x1d8] sm:$0xff] %vm302_vm1, %v3434_v48  ;;  %v1597_v56 = vpop.f32.mrf.mxu1  ;;  %v1045_v13 = vsel %vm302_vm1, %v946_v63, 0.0  ;;  %v954_v63 = vmul.f32 %v3043_v33, %v3043_v33 }
 0x17a   :  { %v1033_v21 = vsel %vm302_vm1, %v940_v45, 0.0  ;;  %1740 = vst.msk [vmem:[%s3714_s8 + $0xc8] sm:$0xff] %vm1714_vm2, %v1597_v56 }
 0x17b   :  { %v1034_v51 = vadd.f32 %v1033_v21, %v1032_v34  ;;  %v1693_v27 = vpop.f32.mrf.mxu3  ;;  %v846_v21 = vsel %vm302_vm1, %v2709_v7, 0.0 }
 0x17c   :  { %1772 = vst.msk [vmem:[%s3714_s8 + $0x1c8] sm:$0xff] %vm1714_vm2, %v1693_v27 }
 0x17f   :  { %v609_v4 = vpop.f32.mrf.mxu0 }
 0x180   :  { %739 = vst.msk [vmem:[%s3713_s7 + $0xf8] sm:$0xff] %vm302_vm1, %v609_v4  ;;  %v834_v30 = vsel %vm302_vm1, %v609_v4, 0.0  ;;  %v941_v44 = vmul.f32 %v609_v4, %v609_v4  ;;  %v3469_v45 = vpop.f32.mrf.mxu2  ;;  %v1047_v4 = vsel %vm302_vm1, %v947_v41, 0.0 }
 0x181   :  { %v835_v14 = vadd.f32 %v834_v30, %v833_v9  ;;  %768 = vst.msk [vmem:[%s3713_s7 + $0x1e0] sm:$0xff] %vm302_vm1, %v3469_v45  ;;  %v1600_v19 = vpop.f32.mrf.mxu1  ;;  %v949_v30 = vmul.f32 %v2813_v6, %v2813_v6 }
 0x182   :  { %v1035_v22 = vsel %vm302_vm1, %v941_v44, 0.0  ;;  %1741 = vst.msk [vmem:[%s3714_s8 + $0xd0] sm:$0xff] %vm1714_vm2, %v1600_v19 }
 0x183   :  { %v837_v20 = vadd.f32 %v836_v40, %v835_v14  ;;  %v1036_v46 = vadd.f32 %v1035_v22, %v1034_v51  ;;  %v1696_v3 = vpop.f32.mrf.mxu3  ;;  %v1049_v51 = vsel %vm302_vm1, %v948_v23, 0.0  ;;  %v850_v14 = vsel %vm302_vm1, %v2813_v6, 0.0 }
 0x184   :  { %1773 = vst.msk [vmem:[%s3714_s8 + $0x1d0] sm:$0xff] %vm1714_vm2, %v1696_v3  ;;  %v1051_v38 = vsel %vm302_vm1, %v949_v30, 0.0  ;;  %v951_v6 = vmul.f32 %v2917_v42, %v2917_v42  ;;  %v1061_v3 = vsel %vm302_vm1, %v954_v63, 0.0 }
 0x185   :  { %v839_v31 = vadd.f32 %v838_v59, %v837_v20  ;;  %v1038_v61 = vadd.f32 %v1037_v24, %v1036_v46  ;;  %v852_v20 = vsel %vm302_vm1, %v2870_v1, 0.0  ;;  %v1053_v24 = vsel %vm302_vm1, %v950_v60, 0.0 }
 0x186   :  { %v952_v1 = vmul.f32 %v2964_v36, %v2964_v36 }
 0x187   :  { %v841_v62 = vadd.f32 %v840_v55, %v839_v31  ;;  %v1040_v53 = vadd.f32 %v1039_v11, %v1038_v61  ;;  %v854_v31 = vsel %vm302_vm1, %v2917_v42, 0.0  ;;  %v1055_v55 = vsel %vm302_vm1, %v951_v6, 0.0 }
 0x188   :  { %v3504_v40 = vpop.f32.mrf.mxu2 }
 0x189   :  { %v843_v18 = vadd.f32 %v842_v52, %v841_v62  ;;  %v1042_v17 = vadd.f32 %v1041_v2, %v1040_v53  ;;  %769 = vst.msk [vmem:[%s3713_s7 + $0x1e8] sm:$0xff] %vm302_vm1, %v3504_v40  ;;  %v1603_v46 = vpop.f32.mrf.mxu1  ;;  %v953_v62 = vmul.f32 %v3004_v43, %v3004_v43  ;;  %v1057_v2 = vsel %vm302_vm1, %v952_v1, 0.0 }
 0x18a   :  { %1742 = vst.msk [vmem:[%s3714_s8 + $0xd8] sm:$0xff] %vm1714_vm2, %v1603_v46  ;;  %v858_v52 = vsel %vm302_vm1, %v3004_v43, 0.0  ;;  %v955_v43 = vmul.f32 %v3078_v28, %v3078_v28  ;;  %v961_v1 = vmul.f32 %v3254_v37, %v3254_v37 }
 0x18b   :  { %v845_v25 = vadd.f32 %v844_v26, %v843_v18  ;;  %v1044_v32 = vadd.f32 %v1043_v5, %v1042_v17  ;;  %v1699_v10 = vpop.f32.mrf.mxu3  ;;  %v1059_v36 = vsel %vm302_vm1, %v953_v62, 0.0  ;;  %v860_v26 = vsel %vm302_vm1, %v3043_v33, 0.0 }
 0x18c   :  { %1774 = vst.msk [vmem:[%s3714_s8 + $0x1d8] sm:$0xff] %vm1714_vm2, %v1699_v10  ;;  %v956_v33 = vmul.f32 %v3113_v57, %v3113_v57  ;;  %v962_v62 = vmul.f32 %v3273_v35, %v3273_v35 }
 0x18d   :  { %v847_v34 = vadd.f32 %v846_v21, %v845_v25  ;;  %v1046_v9 = vadd.f32 %v1045_v13, %v1044_v32  ;;  %v862_v13 = vsel %vm302_vm1, %v3078_v28, 0.0 }
 0x18e   :  { %v1065_v30 = vsel %vm302_vm1, %v956_v33, 0.0  ;;  %v882_v33 = vsel %vm302_vm1, %v3330_v47, 0.0 }
 0x18f   :  { %v849_v44 = vadd.f32 %v848_v29, %v847_v34  ;;  %v1048_v7 = vadd.f32 %v1047_v4, %v1046_v9  ;;  %v1063_v34 = vsel %vm302_vm1, %v955_v43, 0.0  ;;  %v864_v9 = vsel %vm302_vm1, %v3113_v57, 0.0 }
 0x190   :  { %v3539_v18 = vpop.f32.mrf.mxu2  ;;  %v957_v4 = vmul.f32 %v3144_v12, %v3144_v12 }
 0x191   :  { %v851_v22 = vadd.f32 %v850_v14, %v849_v44  ;;  %v1050_v56 = vadd.f32 %v1049_v51, %v1048_v7  ;;  %770 = vst.msk [vmem:[%s3713_s7 + $0x1f0] sm:$0xff] %vm302_vm1, %v3539_v18  ;;  %v1606_v41 = vpop.f32.mrf.mxu1  ;;  %v866_v44 = vsel %vm302_vm1, %v3144_v12, 0.0  ;;  %v958_v7 = vmul.f32 %v3172_v8, %v3172_v8 }
 0x192   :  { %1743 = vst.msk [vmem:[%s3714_s8 + $0xe0] sm:$0xff] %vm1714_vm2, %v1606_v41  ;;  %v1067_v57 = vsel %vm302_vm1, %v957_v4, 0.0  ;;  %v959_v12 = vmul.f32 %v3213_v58, %v3213_v58  ;;  %v967_v4 = vmul.f32 %v3380_v15, %v3380_v15 }
 0x193   :  { %v853_v27 = vadd.f32 %v852_v20, %v851_v22  ;;  %v1052_v59 = vadd.f32 %v1051_v38, %v1050_v56  ;;  %v1702_v32 = vpop.f32.mrf.mxu3  ;;  %v868_v22 = vsel %vm302_vm1, %v3172_v8, 0.0  ;;  %v1936_v56 = vmov 0.0  }
 0x194   :  { %1775 = vst.msk [vmem:[%s3714_s8 + $0x1e0] sm:$0xff] %vm1714_vm2, %v1702_v32  ;;  %v1069_v8 = vsel %vm302_vm1, %v958_v7, 0.0  ;;  %v965_v32 = vmul.f32 %v3330_v47, %v3330_v47  ;;  %v886_v7 = vsel %vm302_vm1, %v3380_v15, 0.0 }
 0x195   :  { %v855_v61 = vadd.f32 %v854_v31, %v853_v27  ;;  %v1054_v11 = vadd.f32 %v1053_v24, %v1052_v59  ;;  %35 = vst.msk [vmem:[%s3715_s9] sm:$0x1] %vm34_vm3, %v1936_v56  ;;  %v870_v27 = vsel %vm302_vm1, %v3213_v58, 0.0  ;;  %v960_v59 = vmul.f32 %v3235_v39, %v3235_v39 }
 0x196   :  { %36 = vst.msk [vmem:[%s3716_s10] sm:$0x1] %vm34_vm3, %v1936_v56  ;;  %v1071_v31 = vsel %vm302_vm1, %v959_v12, 0.0  ;;  %v872_v58 = vsel %vm302_vm1, %v3235_v39, 0.0  ;;  %v876_v39 = vsel %vm302_vm1, %v3273_v35, 0.0  ;;  %v964_v35 = vmul.f32 %v3311_v16, %v3311_v16 }
 0x197   :  { %v857_v53 = vadd.f32 %v856_v49, %v855_v61  ;;  %v1056_v42 = vadd.f32 %v1055_v55, %v1054_v11  ;;  %v1073_v55 = vsel %vm302_vm1, %v960_v59, 0.0  ;;  %v874_v49 = vsel %vm302_vm1, %v3254_v37, 0.0 }
 0x198   :  { %v3574_v51 = vpop.f32.mrf.mxu2  ;;  %v969_v12 = vmul.f32 %v3434_v48, %v3434_v48  ;;  %v971_v59 = vmul.f32 %v3504_v40, %v3504_v40 }
 0x199   :  { %v859_v17 = vadd.f32 %v858_v52, %v857_v53  ;;  %v1058_v5 = vadd.f32 %v1057_v2, %v1056_v42  ;;  %771 = vst.msk [vmem:[%s3713_s7 + $0x1f8] sm:$0xff] %vm302_vm1, %v3574_v51  ;;  %v1609_v38 = vpop.f32.mrf.mxu1  ;;  %v1075_v2 = vsel %vm302_vm1, %v961_v1, 0.0  ;;  %v963_v52 = vmul.f32 %v3292_v50, %v3292_v50 }
 0x19a   :  { %1744 = vst.msk [vmem:[%s3714_s8 + $0xe8] sm:$0xff] %vm1714_vm2, %v1609_v38  ;;  %v973_v1 = vmul.f32 %v3574_v51, %v3574_v51 }
 0x19b   :  { %v1060_v19 = vadd.f32 %v1059_v36, %v1058_v5  ;;  %v861_v25 = vadd.f32 %v860_v26, %v859_v17  ;;  %v1705_v46 = vpop.f32.mrf.mxu3  ;;  %v1077_v36 = vsel %vm302_vm1, %v962_v62, 0.0  ;;  %v878_v26 = vsel %vm302_vm1, %v3292_v50, 0.0 }
 0x19c   :  { %1776 = vst.msk [vmem:[%s3714_s8 + $0x1e8] sm:$0xff] %vm1714_vm2, %v1705_v46 }
 0x19d   :  { %v863_v21 = vadd.f32 %v862_v13, %v861_v25  ;;  %v1062_v23 = vadd.f32 %v1061_v3, %v1060_v19  ;;  %v1079_v19 = vsel %vm302_vm1, %v963_v52, 0.0  ;;  %v880_v25 = vsel %vm302_vm1, %v3311_v16, 0.0 }
 0x19e   :  { %v1081_v13 = vsel %vm302_vm1, %v964_v35, 0.0  ;;  %v884_v16 = vsel %vm302_vm1, %v3351_v0, 0.0 }
 0x19f   :  { %v865_v29 = vadd.f32 %v864_v9, %v863_v21  ;;  %v1064_v28 = vadd.f32 %v1063_v34, %v1062_v23  ;;  %v966_v21 = vmul.f32 %v3351_v0, %v3351_v0  ;;  %v1083_v9 = vsel %vm302_vm1, %v965_v32, 0.0 }
 0x1a0   :  { %v968_v0 = vmul.f32 %v3407_v54, %v3407_v54 }
 0x1a1   :  { %v867_v14 = vadd.f32 %v866_v44, %v865_v29  ;;  %v1066_v60 = vadd.f32 %v1065_v30, %v1064_v28  ;;  %v1612_v63 = vpop.f32.mrf.mxu1  ;;  %v1085_v44 = vsel %vm302_vm1, %v966_v21, 0.0 }
 0x1a2   :  { %1745 = vst.msk [vmem:[%s3714_s8 + $0xf0] sm:$0xff] %vm1714_vm2, %v1612_v63  ;;  %v1089_v38 = vsel %vm302_vm1, %v968_v0, 0.0 }
 0x1a3   :  { %v869_v20 = vadd.f32 %v868_v22, %v867_v14  ;;  %v1068_v6 = vadd.f32 %v1067_v57, %v1066_v60  ;;  %v1708_v37 = vpop.f32.mrf.mxu3  ;;  %v1087_v57 = vsel %vm302_vm1, %v967_v4, 0.0  ;;  %v888_v22 = vsel %vm302_vm1, %v3407_v54, 0.0 }
 0x1a4   :  { %1777 = vst.msk [vmem:[%s3714_s8 + $0x1f0] sm:$0xff] %vm1714_vm2, %v1708_v37  ;;  %v892_v54 = vsel %vm302_vm1, %v3469_v45, 0.0 }
 0x1a5   :  { %v871_v10 = vadd.f32 %v870_v27, %v869_v20  ;;  %v1070_v24 = vadd.f32 %v1069_v8, %v1068_v6  ;;  %v890_v20 = vsel %vm302_vm1, %v3434_v48, 0.0  ;;  %v970_v6 = vmul.f32 %v3469_v45, %v3469_v45 }
 0x1a6   :  { %v1091_v27 = vsel %vm302_vm1, %v969_v12, 0.0  ;;  %v894_v48 = vsel %vm302_vm1, %v3504_v40, 0.0  ;;  %v1095_v45 = vsel %vm302_vm1, %v971_v59, 0.0 }
 0x1a7   :  { %v873_v61 = vadd.f32 %v872_v58, %v871_v10  ;;  %v1072_v11 = vadd.f32 %v1071_v31, %v1070_v24  ;;  %v1093_v31 = vsel %vm302_vm1, %v970_v6, 0.0  ;;  %v972_v58 = vmul.f32 %v3539_v18, %v3539_v18 }
 0x1a9   :  { %v875_v53 = vadd.f32 %v874_v49, %v873_v61  ;;  %v1074_v42 = vadd.f32 %v1073_v55, %v1072_v11  ;;  %v1615_v29 = vpop.f32.mrf.mxu1  ;;  %v896_v55 = vsel %vm302_vm1, %v3539_v18, 0.0  ;;  %v898_v49 = vsel %vm302_vm1, %v3574_v51, 0.0  ;;  %v772_v51 = vld [vmem:[%s3715_s9] sm:$0x1] }
 0x1aa   :  { %1746 = vst.msk [vmem:[%s3714_s8 + $0xf8] sm:$0xff] %vm1714_vm2, %v1615_v29  ;;  %v1097_v40 = vsel %vm302_vm1, %v972_v58, 0.0 }
 0x1ab   :  { %v877_v17 = vadd.f32 %v876_v39, %v875_v53  ;;  %v1076_v5 = vadd.f32 %v1075_v2, %v1074_v42  ;;  %v1711_v47 = vpop.f32.mrf.mxu3  ;;  %v1099_v42 = vsel %vm302_vm1, %v973_v1, 0.0 }
 0x1ac   :  { %1778 = vst.msk [vmem:[%s3714_s8 + $0x1f8] sm:$0xff] %vm1714_vm2, %v1711_v47 }
 0x1ad   :  { %v879_v43 = vadd.f32 %v878_v26, %v877_v17  ;;  %v1078_v41 = vadd.f32 %v1077_v36, %v1076_v5 }
 0x1af   :  { %v881_v3 = vadd.f32 %v880_v25, %v879_v43  ;;  %v1080_v50 = vadd.f32 %v1079_v19, %v1078_v41  ;;  %v909_v25 = vld [vmem:[%s3716_s10] sm:$0x1] }
 0x1b1   :  { %v883_v23 = vadd.f32 %v882_v33, %v881_v3  ;;  %v1082_v34 = vadd.f32 %v1081_v13, %v1080_v50 }
 0x1b3   :  { %v1084_v28 = vadd.f32 %v1083_v9, %v1082_v34  ;;  %v885_v30 = vadd.f32 %v884_v16, %v883_v23 }
 0x1b5   :  { %v1086_v14 = vadd.f32 %v1085_v44, %v1084_v28  ;;  %v887_v60 = vadd.f32 %v886_v7, %v885_v30 }
 0x1b7   :  { %v1088_v56 = vadd.f32 %v1087_v57, %v1086_v14  ;;  %v889_v15 = vadd.f32 %v888_v22, %v887_v60 }
 0x1b9   :  { %v1090_v46 = vadd.f32 %v1089_v38, %v1088_v56  ;;  %v891_v8 = vadd.f32 %v890_v20, %v889_v15 }
 0x1bb   :  { %v1092_v10 = vadd.f32 %v1091_v27, %v1090_v46  ;;  %v893_v24 = vadd.f32 %v892_v54, %v891_v8 }
 0x1bd   :  { %v1094_v61 = vadd.f32 %v1093_v31, %v1092_v10  ;;  %v895_v11 = vadd.f32 %v894_v48, %v893_v24 }
 0x1bf   :  { %v1096_v62 = vadd.f32 %v1095_v45, %v1094_v61  ;;  %v897_v53 = vadd.f32 %v896_v55, %v895_v11 }
 0x1c1   :  { %v1098_v2 = vadd.f32 %v1097_v40, %v1096_v62  ;;  %v899_v39 = vadd.f32 %v898_v49, %v897_v53 }
 0x1c3   :  { %v900_v52 = vrot.slane %v899_v39, 4  ;;  %v1100_v63 = vadd.f32 %v1099_v42, %v1098_v2 }
 0x1c5   :  { %v901_v17 = vadd.f32 %v900_v52, %v899_v39  ;;  %v1101_v5 = vrot.slane %v1100_v63, 4 }
 0x1c7   :  { %v902_v37 = vrot.slane %v901_v17, 2  ;;  %v1102_v36 = vadd.f32 %v1101_v5, %v1100_v63 }
 0x1c9   :  { %v903_v26 = vadd.f32 %v902_v37, %v901_v17  ;;  %v1103_v35 = vrot.slane %v1102_v36, 2 }
 0x1cb   :  { %v904_v18 = vrot.slane %v903_v26, 1  ;;  %v1104_v43 = vadd.f32 %v1103_v35, %v1102_v36 }
 0x1cd   :  { %v905_v41 = vadd.f32 %v904_v18, %v903_v26  ;;  %v1105_v19 = vrot.slane %v1104_v43, 1 }
 0x1cf   :  { %v906_v32 = vadd.f32 %v905_v41, %v772_v51  ;;  %v1106_v3 = vadd.f32 %v1105_v19, %v1104_v43 }
 0x1d1   :  { %908 = vst.msk [vmem:[%s3715_s9] sm:$0x1] %vm34_vm3, %v906_v32  ;;  %v1107_v50 = vadd.f32 %v1106_v3, %v909_v25 }
 0x1d3   :  { %1108 = vst.msk [vmem:[%s3716_s10] sm:$0x1] %vm34_vm3, %v1107_v50 }

// kernel: bottleneck_forward.6
= control target key start
LH: loop header
LB: loop body
LE: loop exit
PB: predicated region body
PF: predicated region fallthrough
CT: control target
= control target key end

     0   :  { %s2403_s21 = smov 0   ;;  %s2405_s22 = smov 0   ;;  %s3489_s0 = inlined_call_operand.vmem [shape: f32[512,4], index: 0, kind: input, shape index: {}]   ;;  %s3490_s1 = inlined_call_operand.vmem [shape: f32[1,4], index: 1, kind: input, shape index: {}]   ;;  %s3491_s2 = inlined_call_operand.vmem [shape: f32[1,4], index: 2, kind: input, shape index: {}]   ;;  %s3492_s3 = inlined_call_operand.vmem [shape: f32[36,4], index: 3, kind: input, shape index: {}]   ;;  %s3493_s4 = inlined_call_operand.vmem [shape: f32[512,4], index: 4, kind: output, shape index: {0}]   ;;  %s3494_s5 = inlined_call_operand.vmem [shape: f32[1,4], index: 5, kind: output, shape index: {1}]   ;;  %s3495_s6 = inlined_call_operand.vmem [shape: f32[1,4], index: 6, kind: output, shape index: {2}]  }
   0x1   :  { %s2407_s23 = smov 0   ;;  %s2409_s24 = smov 0  }
   0x2   :  { %s2411_s25 = smov 0  }
   0x3 LB: > { %s26_s26 = sadd.s32 1, %s2349_s23  ;;  %s29_s27 = sadd.s32 1, %s2353_s24  ;;  %s2357_s25 = sphi %s2411_s25, %s17_s25   ;;  %s2353_s24 = sphi %s2409_s24, %s3603_s24   ;;  %s2349_s23 = sphi %s2407_s23, %s3602_s23   ;;  %s2345_s22 = sphi %s2405_s22, %s3601_s22   ;;  %s2341_s21 = sphi %s2403_s21, %s3600_s21  }
   0x4   : > { %p27_p0 = scmp.ge.s32.totalorder %s26_s26, 2  ;;  %p2090_p1 = scmp.ge.s32.totalorder %s2357_s25, 1 }
   0x5   : > { %p224_p2 = scmp.lt.s32.totalorder %s2357_s25, 5 }
   0x6   : > { %s3605_s26 = smov (%p27_p0, %s26_s26), 0  ;;  %s3607_s27 = smov (!%p27_p0, %s29_s27), %s2353_s24 }
   0x7   : > { %p225_p3 = pnand %p2090_p1, %p224_p2  ;;  %p31_p4 = scmp.ge.s32.totalorder %s3607_s27, 2 }
   0x8   : > { %s2091_s28 = sshll.u32 (!%p225_p3), %s2345_s22, 5  ;;  %s2093_s29 = sshll.u32 (!%p225_p3), %s2345_s22, 1 }
   0x9   : > { %s3609_s27 = smov (%p31_p4, %s3607_s27), 0  ;;  %228 = sbr.rel (%p225_p3) target bundleno = 728 (0x2d8), region = 36 }
   0xa   : > { %p257_p5 = scmp.lt.s32.totalorder (!%p225_p3), %s2091_s28, 63  ;;  %s263_s30 = sadd.s32 (!%p225_p3), %s2341_s21, %s2093_s29 }
   0xb   : > { %s2094_s7 = sshll.u32 (!%p225_p3), %s263_s30, 4  ;;  %p272_p6 = scmp.eq.s32.totalorder (!%p225_p3), %s2345_s22, 0 }
   0xc   : > { %p265_p7 = scmp.lt.s32.totalorder (!%p225_p3), %s2094_s7, 63  ;;  %p273_p8 = scmp.eq.s32.totalorder (!%p225_p3), %s2341_s21, 0 }
   0xe   : > { %s3611_s28 = smov (!%p257_p5, %s2091_s28), 63  ;;  %p274_p9 = pnand %p273_p8, %p272_p6 }
   0xf   : > { %s2092_s8 = sshll.u32 %s3611_s28, 3  ;;  %s3613_s7 = smov (!%p265_p7, %s2094_s7), 63 }
  0x10   : > { %s2440_s11 = scalar_lea.vmem %s3489_s0, %s2092_s8  ;;  %s2095_s12 = sshll.u32 %s3613_s7, 3 }
  0x11   : > { %s2445_s15 = scalar_lea.vmem %s3493_s4, %s2095_s12  ;;  %277 = sbr.rel (%p274_p9) target bundleno = 62 (0x3e), region = 40 }
  0x16   : > { %vm278_vm0 = vcmask 31744   ;;  %v2359_v0 = vmov 0.0   ;;  %vm315_vm1 = vcmask 25600   ;;  %vm317_vm2 = vcmask 24576  }
  0x17   : > { %279 = vst.msk [vmem:[#allocation2] sm:$0xff] %vm278_vm0, %v2359_v0 }
  0x18   : > { %280 = vst.msk [vmem:[#allocation2 + $0x8] sm:$0xff] %vm278_vm0, %v2359_v0 }
  0x19   : > { %281 = vst.msk [vmem:[#allocation2 + $0x10] sm:$0xff] %vm278_vm0, %v2359_v0 }
  0x1a   : > { %282 = vst.msk [vmem:[#allocation2 + $0x18] sm:$0xff] %vm278_vm0, %v2359_v0 }
  0x1b   : > { %283 = vst.msk [vmem:[#allocation2 + $0x20] sm:$0xff] %vm278_vm0, %v2359_v0 }
  0x1c   : > { %284 = vst.msk [vmem:[#allocation2 + $0x28] sm:$0xff] %vm278_vm0, %v2359_v0 }
  0x1d   : > { %285 = vst.msk [vmem:[#allocation2 + $0x30] sm:$0xff] %vm278_vm0, %v2359_v0 }
  0x1e   : > { %286 = vst.msk [vmem:[#allocation2 + $0x38] sm:$0xff] %vm278_vm0, %v2359_v0 }
  0x1f   : > { %287 = vst.msk [vmem:[#allocation2 + $0x40] sm:$0xff] %vm278_vm0, %v2359_v0 }
  0x20   : > { %288 = vst.msk [vmem:[#allocation2 + $0x48] sm:$0xff] %vm278_vm0, %v2359_v0 }
  0x21   : > { %289 = vst.msk [vmem:[#allocation2 + $0x50] sm:$0xff] %vm278_vm0, %v2359_v0 }
  0x22   : > { %290 = vst.msk [vmem:[#allocation2 + $0x58] sm:$0xff] %vm278_vm0, %v2359_v0 }
  0x23   : > { %291 = vst.msk [vmem:[#allocation2 + $0x60] sm:$0xff] %vm278_vm0, %v2359_v0 }
  0x24   : > { %292 = vst.msk [vmem:[#allocation2 + $0x68] sm:$0xff] %vm278_vm0, %v2359_v0 }
  0x25   : > { %293 = vst.msk [vmem:[#allocation2 + $0x70] sm:$0xff] %vm278_vm0, %v2359_v0 }
  0x26   : > { %294 = vst.msk [vmem:[#allocation2 + $0x78] sm:$0xff] %vm278_vm0, %v2359_v0 }
  0x27   : > { %295 = vst.msk [vmem:[#allocation2 + $0x80] sm:$0xff] %vm278_vm0, %v2359_v0 }
  0x28   : > { %296 = vst.msk [vmem:[#allocation2 + $0x88] sm:$0xff] %vm278_vm0, %v2359_v0 }
  0x29   : > { %297 = vst.msk [vmem:[#allocation2 + $0x90] sm:$0xff] %vm278_vm0, %v2359_v0 }
  0x2a   : > { %298 = vst.msk [vmem:[#allocation2 + $0x98] sm:$0xff] %vm278_vm0, %v2359_v0 }
  0x2b   : > { %299 = vst.msk [vmem:[#allocation2 + $0xa0] sm:$0xff] %vm278_vm0, %v2359_v0 }
  0x2c   : > { %300 = vst.msk [vmem:[#allocation2 + $0xa8] sm:$0xff] %vm278_vm0, %v2359_v0 }
  0x2d   : > { %301 = vst.msk [vmem:[#allocation2 + $0xb0] sm:$0xff] %vm278_vm0, %v2359_v0 }
  0x2e   : > { %302 = vst.msk [vmem:[#allocation2 + $0xb8] sm:$0xff] %vm278_vm0, %v2359_v0 }
  0x2f   : > { %303 = vst.msk [vmem:[#allocation2 + $0xc0] sm:$0xff] %vm278_vm0, %v2359_v0 }
  0x30   : > { %304 = vst.msk [vmem:[#allocation2 + $0xc8] sm:$0xff] %vm278_vm0, %v2359_v0 }
  0x31   : > { %305 = vst.msk [vmem:[#allocation2 + $0xd0] sm:$0xff] %vm278_vm0, %v2359_v0 }
  0x32   : > { %306 = vst.msk [vmem:[#allocation2 + $0xd8] sm:$0xff] %vm278_vm0, %v2359_v0 }
  0x33   : > { %307 = vst.msk [vmem:[#allocation2 + $0xe0] sm:$0xff] %vm278_vm0, %v2359_v0 }
  0x34   : > { %308 = vst.msk [vmem:[#allocation2 + $0xe8] sm:$0xff] %vm278_vm0, %v2359_v0 }
  0x35   : > { %309 = vst.msk [vmem:[#allocation2 + $0xf0] sm:$0xff] %vm278_vm0, %v2359_v0 }
  0x36   : > { %310 = vst.msk [vmem:[#allocation2 + $0xf8] sm:$0xff] %vm278_vm0, %v2359_v0 }
  0x37   : > { %311 = vst.msk [vmem:[#allocation2 + $0x100] sm:$0xff] %vm278_vm0, %v2359_v0 }
  0x38   : > { %312 = vst.msk [vmem:[#allocation2 + $0x108] sm:$0xff] %vm278_vm0, %v2359_v0 }
  0x39   : > { %313 = vst.msk [vmem:[#allocation2 + $0x110] sm:$0xff] %vm278_vm0, %v2359_v0 }
  0x3a   : > { %314 = vst.msk [vmem:[#allocation2 + $0x118] sm:$0xff] %vm278_vm0, %v2359_v0 }
  0x3b   : > { %316 = vst.msk [vmem:[#allocation2 + $0x120] sm:$0x3] %vm315_vm1, %v2359_v0 }
  0x3c   : > { %318 = vst.msk [vmem:[%s3494_s5] sm:$0x1] %vm317_vm2, %v2359_v0 }
  0x3d   : > { %319 = vst.msk [vmem:[%s3495_s6] sm:$0x1] %vm317_vm2, %v2359_v0 }
  0x3e PF: > { %p2096_p10 = scmp.ne.s32.totalorder %s2341_s21, 0 }
  0x40   : > { %322 = sbr.rel (%p2096_p10) target bundleno = 109 (0x6d), region = 44 }
  0x45   : > { %v323_v1 = vld [vmem:[%s2440_s11] sm:$0xff]  ;;  %v324_v4 = vld [vmem:[%s2440_s11 + $0x8] sm:$0xff]  ;;  %v325_v7 = vld [vmem:[%s2440_s11 + $0x10] sm:$0xff]  ;;  %vm459_vm3 = vcmask 31744  }
  0x46   : > { %v2494_v2 = vld [vmem:[%s3490_s1] ss:$0 sm:$0xff]  ;;  %v326_v8 = vld [vmem:[%s2440_s11 + $0x18] sm:$0xff]  ;;  %v328_v13 = vld [vmem:[%s2440_s11 + $0x28] sm:$0xff] }
  0x47   : > { %v2499_v3 = vld [vmem:[%s3491_s2] ss:$0 sm:$0xff]  ;;  %v359_v5 = vmul.f32 %v2494_v2, %v323_v1  ;;  %v360_v6 = vmul.f32 %v2494_v2, %v324_v4  ;;  %v361_v10 = vmul.f32 %v2494_v2, %v325_v7  ;;  %v362_v11 = vmul.f32 %v2494_v2, %v326_v8  ;;  %v329_v14 = vld [vmem:[%s2440_s11 + $0x30] sm:$0xff]  ;;  %v330_v15 = vld [vmem:[%s2440_s11 + $0x38] sm:$0xff] }
  0x48   : > { %v327_v9 = vld [vmem:[%s2440_s11 + $0x20] sm:$0xff]  ;;  %v364_v18 = vmul.f32 %v2494_v2, %v328_v13  ;;  %v365_v19 = vmul.f32 %v2494_v2, %v329_v14  ;;  %v366_v23 = vmul.f32 %v2494_v2, %v330_v15  ;;  %v332_v25 = vld [vmem:[%s2440_s11 + $0x48] sm:$0xff]  ;;  %v333_v30 = vld [vmem:[%s2440_s11 + $0x50] sm:$0xff] }
  0x49   : > { %v363_v12 = vmul.f32 %v2494_v2, %v327_v9  ;;  %v395_v16 = vadd.f32 %v2499_v3, %v359_v5  ;;  %v396_v17 = vadd.f32 %v2499_v3, %v360_v6  ;;  %v397_v20 = vadd.f32 %v2499_v3, %v361_v10  ;;  %v331_v24 = vld [vmem:[%s2440_s11 + $0x40] sm:$0xff]  ;;  %v334_v31 = vld [vmem:[%s2440_s11 + $0x58] sm:$0xff]  ;;  %v336_v36 = vld [vmem:[%s2440_s11 + $0x68] sm:$0xff] }
  0x4a   : > { %v398_v21 = vadd.f32 %v2499_v3, %v362_v11  ;;  %v400_v28 = vadd.f32 %v2499_v3, %v364_v18  ;;  %v401_v29 = vadd.f32 %v2499_v3, %v365_v19  ;;  %v335_v32 = vld [vmem:[%s2440_s11 + $0x60] sm:$0xff]  ;;  %v402_v35 = vadd.f32 %v2499_v3, %v366_v23  ;;  %v337_v37 = vld [vmem:[%s2440_s11 + $0x70] sm:$0xff]  ;;  %v338_v42 = vld [vmem:[%s2440_s11 + $0x78] sm:$0xff] }
  0x4b   : > { %v399_v22 = vadd.f32 %v2499_v3, %v363_v12  ;;  %v427_v26 = vmax.f32 %v395_v16, 0.0  ;;  %v428_v27 = vmax.f32 %v396_v17, 0.0  ;;  %v429_v33 = vmax.f32 %v397_v20, 0.0  ;;  %v339_v55 = vld [vmem:[%s2440_s11 + $0x80] sm:$0xff]  ;;  %v340_v56 = vld [vmem:[%s2440_s11 + $0x88] sm:$0xff]  ;;  %v341_v59 = vld [vmem:[%s2440_s11 + $0x90] sm:$0xff] }
  0x4c   : > { %v430_v34 = vmax.f32 %v398_v21, 0.0  ;;  %v432_v39 = vmax.f32 %v400_v28, 0.0  ;;  %v367_v40 = vmul.f32 %v2494_v2, %v331_v24  ;;  %v368_v41 = vmul.f32 %v2494_v2, %v332_v25  ;;  %v342_v60 = vld [vmem:[%s2440_s11 + $0x98] sm:$0xff]  ;;  %v343_v63 = vld [vmem:[%s2440_s11 + $0xa0] sm:$0xff]  ;;  %v344_v6 = vld [vmem:[%s2440_s11 + $0xa8] sm:$0xff] }
  0x4d   : > { %460 = vst.msk [vmem:[#allocation2 + $0x11] sm:$0xff] %vm459_vm3, %v427_v26  ;;  %v431_v38 = vmax.f32 %v399_v22, 0.0  ;;  %v433_v43 = vmax.f32 %v401_v29, 0.0  ;;  %v369_v44 = vmul.f32 %v2494_v2, %v333_v30  ;;  %v370_v45 = vmul.f32 %v2494_v2, %v334_v31  ;;  %v345_v11 = vld [vmem:[%s2440_s11 + $0xb0] sm:$0xff]  ;;  %v346_v15 = vld [vmem:[%s2440_s11 + $0xb8] sm:$0xff]  ;;  %v347_v19 = vld [vmem:[%s2440_s11 + $0xc0] sm:$0xff] }
  0x4e   : > { %461 = vst.msk [vmem:[#allocation2 + $0x19] sm:$0xff] %vm459_vm3, %v428_v27  ;;  %v371_v46 = vmul.f32 %v2494_v2, %v335_v32  ;;  %v403_v47 = vadd.f32 %v2499_v3, %v367_v40  ;;  %v404_v48 = vadd.f32 %v2499_v3, %v368_v41  ;;  %v372_v49 = vmul.f32 %v2494_v2, %v336_v36  ;;  %v348_v23 = vld [vmem:[%s2440_s11 + $0xc8] sm:$0xff]  ;;  %v349_v27 = vld [vmem:[%s2440_s11 + $0xd0] sm:$0xff]  ;;  %v350_v31 = vld [vmem:[%s2440_s11 + $0xd8] sm:$0xff] }
  0x4f   : > { %462 = vst.msk [vmem:[#allocation2 + $0x21] sm:$0xff] %vm459_vm3, %v429_v33  ;;  %v373_v50 = vmul.f32 %v2494_v2, %v337_v37  ;;  %v434_v51 = vmax.f32 %v402_v35, 0.0  ;;  %v405_v52 = vadd.f32 %v2499_v3, %v369_v44  ;;  %v406_v53 = vadd.f32 %v2499_v3, %v370_v45  ;;  %v351_v35 = vld [vmem:[%s2440_s11 + $0xe0] sm:$0xff] }
  0x50   : > { %463 = vst.msk [vmem:[#allocation2 + $0x29] sm:$0xff] %vm459_vm3, %v430_v34  ;;  %v374_v54 = vmul.f32 %v2494_v2, %v338_v42  ;;  %v435_v57 = vmax.f32 %v403_v47, 0.0  ;;  %v407_v58 = vadd.f32 %v2499_v3, %v371_v46  ;;  %v436_v61 = vmax.f32 %v404_v48, 0.0  ;;  %v354_v47 = vld [vmem:[%s2440_s11 + $0xf8] sm:$0xff] }
  0x51   : > { %464 = vst.msk [vmem:[#allocation2 + $0x31] sm:$0xff] %vm459_vm3, %v431_v38  ;;  %v408_v62 = vadd.f32 %v2499_v3, %v372_v49  ;;  %v437_v0 = vmax.f32 %v405_v52, 0.0  ;;  %v409_v1 = vadd.f32 %v2499_v3, %v373_v50  ;;  %v375_v4 = vmul.f32 %v2494_v2, %v339_v55 }
  0x52   : > { %465 = vst.msk [vmem:[#allocation2 + $0x39] sm:$0xff] %vm459_vm3, %v432_v39  ;;  %v376_v5 = vmul.f32 %v2494_v2, %v340_v56  ;;  %v438_v7 = vmax.f32 %v406_v53, 0.0  ;;  %v410_v8 = vadd.f32 %v2499_v3, %v374_v54  ;;  %v377_v9 = vmul.f32 %v2494_v2, %v341_v59  ;;  %v352_v39 = vld [vmem:[%s2440_s11 + $0xe8] sm:$0xff] }
  0x53   : > { %466 = vst.msk [vmem:[#allocation2 + $0x41] sm:$0xff] %vm459_vm3, %v433_v43  ;;  %v378_v10 = vmul.f32 %v2494_v2, %v342_v60  ;;  %v439_v12 = vmax.f32 %v407_v58, 0.0  ;;  %v411_v13 = vadd.f32 %v2499_v3, %v375_v4  ;;  %v379_v14 = vmul.f32 %v2494_v2, %v343_v63  ;;  %v353_v43 = vld [vmem:[%s2440_s11 + $0xf0] sm:$0xff] }
  0x54   : > { %467 = vst.msk [vmem:[#allocation2 + $0x49] sm:$0xff] %vm459_vm3, %v434_v51  ;;  %v440_v16 = vmax.f32 %v408_v62, 0.0  ;;  %v412_v17 = vadd.f32 %v2499_v3, %v376_v5  ;;  %v380_v18 = vmul.f32 %v2494_v2, %v344_v6  ;;  %v441_v20 = vmax.f32 %v409_v1, 0.0 }
  0x55   : > { %468 = vst.msk [vmem:[#allocation2 + $0x51] sm:$0xff] %vm459_vm3, %v435_v57  ;;  %v413_v21 = vadd.f32 %v2499_v3, %v377_v9  ;;  %v381_v22 = vmul.f32 %v2494_v2, %v345_v11  ;;  %v442_v24 = vmax.f32 %v410_v8, 0.0  ;;  %v414_v25 = vadd.f32 %v2499_v3, %v378_v10 }
  0x56   : > { %469 = vst.msk [vmem:[#allocation2 + $0x59] sm:$0xff] %vm459_vm3, %v436_v61  ;;  %v382_v26 = vmul.f32 %v2494_v2, %v346_v15  ;;  %v443_v28 = vmax.f32 %v411_v13, 0.0  ;;  %v415_v29 = vadd.f32 %v2499_v3, %v379_v14  ;;  %v383_v30 = vmul.f32 %v2494_v2, %v347_v19 }
  0x57   : > { %470 = vst.msk [vmem:[#allocation2 + $0x61] sm:$0xff] %vm459_vm3, %v437_v0  ;;  %v444_v32 = vmax.f32 %v412_v17, 0.0  ;;  %v416_v33 = vadd.f32 %v2499_v3, %v380_v18  ;;  %v384_v34 = vmul.f32 %v2494_v2, %v348_v23  ;;  %v445_v36 = vmax.f32 %v413_v21, 0.0 }
  0x58   : > { %471 = vst.msk [vmem:[#allocation2 + $0x69] sm:$0xff] %vm459_vm3, %v438_v7  ;;  %v417_v37 = vadd.f32 %v2499_v3, %v381_v22  ;;  %v385_v38 = vmul.f32 %v2494_v2, %v349_v27  ;;  %v446_v40 = vmax.f32 %v414_v25, 0.0  ;;  %v418_v41 = vadd.f32 %v2499_v3, %v382_v26 }
  0x59   : > { %472 = vst.msk [vmem:[#allocation2 + $0x71] sm:$0xff] %vm459_vm3, %v439_v12  ;;  %v386_v42 = vmul.f32 %v2494_v2, %v350_v31  ;;  %v447_v44 = vmax.f32 %v415_v29, 0.0  ;;  %v419_v45 = vadd.f32 %v2499_v3, %v383_v30  ;;  %v387_v46 = vmul.f32 %v2494_v2, %v351_v35 }
  0x5a   : > { %473 = vst.msk [vmem:[#allocation2 + $0x79] sm:$0xff] %vm459_vm3, %v440_v16  ;;  %v448_v48 = vmax.f32 %v416_v33, 0.0  ;;  %v420_v49 = vadd.f32 %v2499_v3, %v384_v34  ;;  %v388_v50 = vmul.f32 %v2494_v2, %v352_v39  ;;  %v449_v51 = vmax.f32 %v417_v37, 0.0 }
  0x5b   : > { %474 = vst.msk [vmem:[#allocation2 + $0x81] sm:$0xff] %vm459_vm3, %v441_v20  ;;  %v421_v52 = vadd.f32 %v2499_v3, %v385_v38  ;;  %v389_v53 = vmul.f32 %v2494_v2, %v353_v43  ;;  %v450_v54 = vmax.f32 %v418_v41, 0.0  ;;  %v422_v55 = vadd.f32 %v2499_v3, %v386_v42 }
  0x5c   : > { %475 = vst.msk [vmem:[#allocation2 + $0x89] sm:$0xff] %vm459_vm3, %v442_v24  ;;  %v390_v56 = vmul.f32 %v2494_v2, %v354_v47  ;;  %v451_v57 = vmax.f32 %v419_v45, 0.0  ;;  %v423_v58 = vadd.f32 %v2499_v3, %v387_v46  ;;  %v452_v59 = vmax.f32 %v420_v49, 0.0 }
  0x5d   : > { %476 = vst.msk [vmem:[#allocation2 + $0x91] sm:$0xff] %vm459_vm3, %v443_v28  ;;  %v424_v60 = vadd.f32 %v2499_v3, %v388_v50  ;;  %v453_v61 = vmax.f32 %v421_v52, 0.0  ;;  %v425_v62 = vadd.f32 %v2499_v3, %v389_v53  ;;  %v454_v63 = vmax.f32 %v422_v55, 0.0 }
  0x5e   : > { %477 = vst.msk [vmem:[#allocation2 + $0x99] sm:$0xff] %vm459_vm3, %v444_v32  ;;  %v426_v2 = vadd.f32 %v2499_v3, %v390_v56  ;;  %v455_v0 = vmax.f32 %v423_v58, 0.0 }
  0x5f   : > { %478 = vst.msk [vmem:[#allocation2 + $0xa1] sm:$0xff] %vm459_vm3, %v445_v36  ;;  %v456_v1 = vmax.f32 %v424_v60, 0.0  ;;  %v457_v4 = vmax.f32 %v425_v62, 0.0 }
  0x60   : > { %479 = vst.msk [vmem:[#allocation2 + $0xa9] sm:$0xff] %vm459_vm3, %v446_v40  ;;  %v458_v5 = vmax.f32 %v426_v2, 0.0 }
  0x61   : > { %480 = vst.msk [vmem:[#allocation2 + $0xb1] sm:$0xff] %vm459_vm3, %v447_v44 }
  0x62   : > { %481 = vst.msk [vmem:[#allocation2 + $0xb9] sm:$0xff] %vm459_vm3, %v448_v48 }
  0x63   : > { %482 = vst.msk [vmem:[#allocation2 + $0xc1] sm:$0xff] %vm459_vm3, %v449_v51 }
  0x64   : > { %483 = vst.msk [vmem:[#allocation2 + $0xc9] sm:$0xff] %vm459_vm3, %v450_v54 }
  0x65   : > { %484 = vst.msk [vmem:[#allocation2 + $0xd1] sm:$0xff] %vm459_vm3, %v451_v57 }
  0x66   : > { %485 = vst.msk [vmem:[#allocation2 + $0xd9] sm:$0xff] %vm459_vm3, %v452_v59 }
  0x67   : > { %486 = vst.msk [vmem:[#allocation2 + $0xe1] sm:$0xff] %vm459_vm3, %v453_v61 }
  0x68   : > { %487 = vst.msk [vmem:[#allocation2 + $0xe9] sm:$0xff] %vm459_vm3, %v454_v63 }
  0x69   : > { %488 = vst.msk [vmem:[#allocation2 + $0xf1] sm:$0xff] %vm459_vm3, %v455_v0 }
  0x6a   : > { %489 = vst.msk [vmem:[#allocation2 + $0xf9] sm:$0xff] %vm459_vm3, %v456_v1 }
  0x6b   : > { %490 = vst.msk [vmem:[#allocation2 + $0x101] sm:$0xff] %vm459_vm3, %v457_v4 }
  0x6c   : > { %491 = vst.msk [vmem:[#allocation2 + $0x109] sm:$0xff] %vm459_vm3, %v458_v5 }
  0x6d PF: > { %s2097_s30 = sshll.u32 %s2341_s21, 7  ;;  %s2360_s8 = smov 4   ;;  %v492_v16 = vlaneseq  ;;  %v3511_v43 = vmov 0  ;;  %v3515_v59 = vmov 0  ;;  %vm3503_vm12 = vcmask 31744   ;;  %v1736_v49 = vld [vmem:[%s3492_s3] sm:$0xff] }
  0x6e   : > { %s2629_s7 = scalar_lea.vmem [#allocation2], %s2097_s30  ;;  %s2361_s21 = smov 8   ;;  %vm3496_vm1 = vcmask 64544  }
  0x6f   : > { %v2685_v18 = vshrl.u32 %v492_v16, 7  ;;  %s2362_s9 = smov 12   ;;  %s2363_s10 = smov 16  }
  0x70   : > { %s2364_s11 = smov 20   ;;  %s2365_s12 = smov 24  }
  0x71   : > { %v494_v19 = vadd.s32 8, %v2685_v18  ;;  %v496_v24 = vadd.s32 24, %v2685_v18  ;;  %v498_v33 = vadd.s32 40, %v2685_v18  ;;  %v500_v34 = vadd.s32 56, %v2685_v18  ;;  %s2366_s13 = smov 28   ;;  %s2367_s14 = smov 32  }
  0x72   : > { %v502_v42 = vadd.s32 72, %v2685_v18  ;;  %v504_v51 = vadd.s32 88, %v2685_v18  ;;  %v506_v52 = vadd.s32 104, %v2685_v18  ;;  %v497_v57 = vadd.s32 32, %v2685_v18 }
  0x73   : > { %v2632_v3 = vld [vmem:[%s2629_s7 + $0x11] sm:$0xff]  ;;  %v2099_v6 = vld [vmem:[%s2629_s7 + $0x1] sm:$0xff]  ;;  %v2644_v8 = vld [vmem:[%s2629_s7 + $0x19] sm:$0xff]  ;;  %v520_v23 = vand.u32 15, %v494_v19  ;;  %v534_v29 = vand.u32 15, %v496_v24  ;;  %v548_v37 = vand.u32 15, %v498_v33 }
  0x74   : > { %854 = vrot.lane.b32.xlu1 %v2632_v3, %s2360_s8  ;;  %850 = vrot.lane.b32.xlu0 %v2099_v6, %s2360_s8  ;;  %v2639_v7 = vld [vmem:[%s2629_s7 + $0x21] sm:$0xff]  ;;  %v2100_v9 = vld [vmem:[%s2629_s7 + $0x9] sm:$0xff]  ;;  %v562_v39 = vand.u32 15, %v500_v34  ;;  %v576_v47 = vand.u32 15, %v502_v42  ;;  %v590_v55 = vand.u32 15, %v504_v51  ;;  %v604_v58 = vand.u32 15, %v506_v52 }
  0x75   : > { %858 = vrot.lane.b32.xlu2 %v2639_v7, %s2360_s8  ;;  %v2648_v10 = vld [vmem:[%s2629_s7 + $0x29] sm:$0xff]  ;;  %v2656_v11 = vld [vmem:[%s2629_s7 + $0x39] sm:$0xff]  ;;  %v2659_v12 = vld [vmem:[%s2629_s7 + $0x31] sm:$0xff]  ;;  %vm2704_vm4 = vcmp.lt.s32.totalorder %v520_v23, 15  ;;  %vm2718_vm5 = vcmp.lt.s32.totalorder %v534_v29, 15  ;;  %vm2740_vm6 = vcmp.lt.s32.totalorder %v548_v37, 15 }
  0x76   : > { %v2662_v13 = vld [vmem:[%s2629_s7 + $0x41] sm:$0xff]  ;;  %v2671_v14 = vld [vmem:[%s2629_s7 + $0x51] sm:$0xff]  ;;  %v2674_v15 = vld [vmem:[%s2629_s7 + $0x49] sm:$0xff]  ;;  %vm2750_vm7 = vcmp.lt.s32.totalorder %v562_v39, 15  ;;  %vm2769_vm8 = vcmp.lt.s32.totalorder %v576_v47, 15  ;;  %vm2792_vm9 = vcmp.lt.s32.totalorder %v590_v55, 15 }
  0x77   : > { %v2677_v17 = vld [vmem:[%s2629_s7 + $0x59] sm:$0xff]  ;;  %v2689_v20 = vld [vmem:[%s2629_s7 + $0x69] sm:$0xff]  ;;  %v2692_v21 = vld [vmem:[%s2629_s7 + $0x61] sm:$0xff]  ;;  %v3512_v43 = vsel %vm2750_vm7, 4294967295, %v3511_v43  ;;  %v3516_v59 = vsel %vm2792_vm9, 4294967295, %v3515_v59  ;;  %v508_v61 = vadd.s32 120, %v2685_v18 }
  0x78   : > { %v2695_v22 = vld [vmem:[%s2629_s7 + $0x71] sm:$0xff]  ;;  %v2116_v27 = vld [vmem:[%s2629_s7 + $0x2] sm:$0xff]  ;;  %v2711_v28 = vld [vmem:[%s2629_s7 + $0x79] sm:$0xff]  ;;  %v541_v62 = vand.u32 15, %v497_v57  ;;  %vm2802_vm10 = vcmp.lt.s32.totalorder %v604_v58, 15  ;;  %v513_v16 = vand.u32 15, %v2685_v18 }
  0x79   : > { %v2117_v26 = vld [vmem:[%s2629_s7 + $0xa] sm:$0xff]  ;;  %v2723_v32 = vld [vmem:[%s2629_s7 + $0x1a] sm:$0xff]  ;;  %v2729_v35 = vld [vmem:[%s2629_s7 + $0x12] sm:$0xff]  ;;  %v618_v4 = vand.u32 15, %v508_v61  ;;  %v495_v23 = vadd.s32 16, %v2685_v18  ;;  %v501_v55 = vadd.s32 64, %v2685_v18 }
  0x7a   : > { %v966_v30 = vsel %vm2704_vm4, %v2117_v26, 0.0  ;;  %v968_v36 = vsel %vm2718_vm5, %v2723_v32, 0.0  ;;  %v2735_v38 = vld [vmem:[%s2629_s7 + $0x22] sm:$0xff]  ;;  %v2745_v41 = vld [vmem:[%s2629_s7 + $0x2a] sm:$0xff]  ;;  %v2755_v44 = vld [vmem:[%s2629_s7 + $0x3a] sm:$0xff]  ;;  %vm2821_vm11 = vcmp.gt.s32.totalorder %v541_v62, 0 }
  0x7b   : > { %v970_v45 = vsel %vm2740_vm6, %v2745_v41, 0.0  ;;  %v2761_v46 = vld [vmem:[%s2629_s7 + $0x32] sm:$0xff]  ;;  %v972_v48 = vsel %vm2750_vm7, %v2755_v44, 0.0  ;;  %v2774_v50 = vld [vmem:[%s2629_s7 + $0x4a] sm:$0xff]  ;;  %v2780_v53 = vld [vmem:[%s2629_s7 + $0x42] sm:$0xff]  ;;  %vm2837_vm13 = vcmp.lt.s32.totalorder %v618_v4, 15 }
  0x7c   : > { %856 = vrot.lane.b32.xlu1 %v2644_v8, %s2360_s8  ;;  %852 = vrot.lane.b32.xlu0 %v2100_v9, %s2360_s8  ;;  %v974_v54 = vsel %vm2769_vm8, %v2774_v50, 0.0  ;;  %v2786_v56 = vld [vmem:[%s2629_s7 + $0x52] sm:$0xff]  ;;  %v2797_v60 = vld [vmem:[%s2629_s7 + $0x5a] sm:$0xff]  ;;  %v3521_v26 = vmov 0  ;;  %vm2852_vm14 = vcmp.gt.s32.totalorder %v513_v16, 0  ;;  %v527_v42 = vand.u32 15, %v495_v23 }
  0x7d   : > { %860 = vrot.lane.b32.xlu2 %v2648_v10, %s2360_s8  ;;  %v2807_v2 = vld [vmem:[%s2629_s7 + $0x6a] sm:$0xff]  ;;  %v976_v0 = vsel %vm2792_vm9, %v2797_v60, 0.0  ;;  %v2813_v1 = vld [vmem:[%s2629_s7 + $0x62] sm:$0xff]  ;;  %v3522_v26 = vsel %vm2837_vm13, 4294967295, %v3521_v26  ;;  %v2134_v29 = vld [vmem:[%s2629_s7 + $0x18] sm:$0xff]  ;;  %v499_v57 = vadd.s32 48, %v2685_v18 }
  0x7e   : > { %v2816_v5 = vld [vmem:[%s2629_s7 + $0x20] sm:$0xff]  ;;  %v978_v6 = vsel %vm2802_vm10, %v2807_v2, 0.0  ;;  %v2834_v24 = vld [vmem:[%s2629_s7 + $0x28] sm:$0xff]  ;;  %803 = vst.msk [vmem:[#allocation3 + $0x18] sm:$0xff] %vm3503_vm12, %v2134_v29  ;;  %v2133_v34 = vld [vmem:[%s2629_s7 + $0x10] sm:$0xff]  ;;  %vm2881_vm15 = vcmp.gt.s32.totalorder %v527_v42, 0 }
  0x7f   : > { %v787_v19 = vsel %vm2821_vm11, %v2816_v5, 0.0  ;;  %805 = vst.msk [vmem:[#allocation3 + $0x28] sm:$0xff] %vm3503_vm12, %v2834_v24  ;;  %v2863_v37 = vld [vmem:[%s2629_s7 + $0x72] sm:$0xff]  ;;  %v2873_v47 = vld [vmem:[%s2629_s7 + $0x68] sm:$0xff]  ;;  %v1082_v61 = vsel %vm2881_vm15, %v2816_v5, 0.0  ;;  %v569_v62 = vand.u32 15, %v501_v55 }
  0x80   : > { %804 = vst.msk [vmem:[#allocation3 + $0x20] sm:$0xff] %vm3503_vm12, %v787_v19  ;;  %v2895_v58 = vld [vmem:[%s2629_s7 + $0x78] sm:$0xff]  ;;  %v736_v16 = vld [vmem:[%s2629_s7 + $0x8] sm:$0xff]  ;;  %v2920_v23 = vld [vmem:[%s2629_s7 + $0x40] sm:$0xff]  ;;  %v507_v55 = vadd.s32 112, %v2685_v18  ;;  %vm3537_vm9 = vcmask 64544  }
  0x81   : > { %813 = vst.msk [vmem:[#allocation3 + $0x68] sm:$0xff] %vm3503_vm12, %v2873_v47  ;;  %v2905_v4 = vld [vmem:[%s2629_s7 + $0x58] sm:$0xff]  ;;  %vm2915_vm0 = vcmp.gt.s32.totalorder %v569_v62, 0  ;;  %vm3538_vm7 = vmmov %vm3537_vm9  ;;  %v1624_v19 = vsel %vm2704_vm4, %v2745_v41, 0.0  ;;  %v1303_v51 = vsel %vm2769_vm8, %v2797_v60, 0.0  ;;  %v3239_v31 = vld [vmem:[%s2629_s7 + $0x89] sm:$0xff] }
  0x82   : > { %815 = vst.msk [vmem:[#allocation3 + $0x78] sm:$0xff] %vm3503_vm12, %v2895_v58 }
  0x83   : > { %811 = vst.msk [vmem:[#allocation3 + $0x58] sm:$0xff] %vm3503_vm12, %v2905_v4 }
  0x84   : > { %864 = vrot.lane.b32.xlu1 %v2656_v11, %s2360_s8  ;;  %862 = vrot.lane.b32.xlu0 %v2659_v12, %s2360_s8  ;;  %801 = vst.msk [vmem:[#allocation3 + $0x8] sm:$0xff] %vm3503_vm12, %v736_v16  ;;  %v611_v16 = vand.u32 15, %v507_v55  ;;  %v1628_v55 = vsel %vm2740_vm6, %v2774_v50, 0.0 }
  0x85   : > { %866 = vrot.lane.b32.xlu2 %v2662_v13, %s2360_s8 }
  0x8c   : > { %870 = vrot.lane.b32.xlu1 %v2671_v14, %s2360_s8  ;;  %868 = vrot.lane.b32.xlu0 %v2674_v15, %s2360_s8 }
  0x8d   : > { %872 = vrot.lane.b32.xlu2 %v2677_v17, %s2360_s8 }
  0x94   : > { %876 = vrot.lane.b32.xlu1 %v2689_v20, %s2360_s8  ;;  %874 = vrot.lane.b32.xlu0 %v2692_v21, %s2360_s8 }
  0x95   : > { %878 = vrot.lane.b32.xlu2 %v2695_v22, %s2360_s8 }
  0x9c   : > { %997 = vrot.lane.b32.xlu1 %v2116_v27, %s2361_s21  ;;  %880 = vrot.lane.b32.xlu0 %v2711_v28, %s2360_s8  ;;  %v2842_v27 = vld [vmem:[%s2629_s7 + $0x7a] sm:$0xff] }
  0x9d   : > { %999 = vrot.lane.b32.xlu2 %v966_v30, %s2361_s21  ;;  %v2849_v30 = vld [vmem:[%s2629_s7 + $0x38] sm:$0xff]  ;;  %v980_v39 = vsel %vm2837_vm13, %v2842_v27, 0.0 }
  0x9e   : > { %807 = vst.msk [vmem:[#allocation3 + $0x38] sm:$0xff] %vm3503_vm12, %v2849_v30 }
  0xa4   : > { %1001 = vrot.lane.b32.xlu0 %v2729_v35, %s2361_s21  ;;  %1003 = vrot.lane.b32.xlu1 %v968_v36, %s2361_s21  ;;  %v2858_v36 = vld [vmem:[%s2629_s7 + $0x48] sm:$0xff] }
  0xa5   : > { %1005 = vrot.lane.b32.xlu2 %v2735_v38, %s2361_s21  ;;  %809 = vst.msk [vmem:[#allocation3 + $0x48] sm:$0xff] %vm3503_vm12, %v2858_v36 }
  0xac   : > { %1007 = vrot.lane.b32.xlu0 %v970_v45, %s2361_s21  ;;  %1009 = vrot.lane.b32.xlu1 %v2761_v46, %s2361_s21  ;;  %v1080_v45 = vsel %vm2852_vm14, %v2133_v34, 0.0 }
  0xad   : > { %1011 = vrot.lane.b32.xlu2 %v972_v48, %s2361_s21  ;;  %v735_v48 = vld [vmem:[%s2629_s7] sm:$0xff] }
  0xae   : > { %v783_v52 = vsel %vm2852_vm14, %v735_v48, 0.0  ;;  %v503_v48 = vadd.s32 80, %v2685_v18 }
  0xaf   : > { %800 = vst.msk [vmem:[#allocation3] sm:$0xff] %vm3503_vm12, %v783_v52  ;;  %v2943_v52 = vld [vmem:[%s2629_s7 + $0x50] sm:$0xff] }
  0xb0   : > { %v1088_v62 = vsel %vm2915_vm0, %v2943_v52, 0.0 }
  0xb4   : > { %1013 = vrot.lane.b32.xlu0 %v2780_v53, %s2361_s21  ;;  %1015 = vrot.lane.b32.xlu1 %v974_v54, %s2361_s21  ;;  %v785_v54 = vsel %vm2881_vm15, %v2133_v34, 0.0 }
  0xb5   : > { %1017 = vrot.lane.b32.xlu2 %v2786_v56, %s2361_s21  ;;  %802 = vst.msk [vmem:[#allocation3 + $0x10] sm:$0xff] %vm3503_vm12, %v785_v54 }
  0xbc   : > { %1019 = vrot.lane.b32.xlu0 %v976_v0, %s2361_s21  ;;  %1021 = vrot.lane.b32.xlu1 %v2813_v1, %s2361_s21  ;;  %v555_v0 = vand.u32 15, %v499_v57 }
  0xbd   : > { %1023 = vrot.lane.b32.xlu2 %v978_v6, %s2361_s21  ;;  %v2910_v6 = vld [vmem:[%s2629_s7 + $0x30] sm:$0xff] }
  0xbe   : > { %vm2923_vm2 = vcmp.gt.s32.totalorder %v555_v0, 0  ;;  %v1084_v42 = vsel %vm2821_vm11, %v2910_v6, 0.0  ;;  %v583_v0 = vand.u32 15, %v503_v48  ;;  %v2976_v48 = vld [vmem:[%s2629_s7 + $0x70] sm:$0xff] }
  0xbf   : > { %v789_v54 = vsel %vm2923_vm2, %v2910_v6, 0.0 }
  0xc0   : > { %806 = vst.msk [vmem:[#allocation3 + $0x30] sm:$0xff] %vm3503_vm12, %v789_v54  ;;  %vm2959_vm3 = vcmp.gt.s32.totalorder %v583_v0, 0 }
  0xc4   : > { %1025 = vrot.lane.b32.xlu0 %v2863_v37, %s2361_s21  ;;  %1027 = vrot.lane.b32.xlu1 %v980_v39, %s2361_s21  ;;  %v791_v39 = vsel %vm2915_vm0, %v2920_v23, 0.0 }
  0xc5   : > { %1112 = vrot.lane.b32.xlu2 %v1080_v45, %s2362_s9  ;;  %808 = vst.msk [vmem:[#allocation3 + $0x40] sm:$0xff] %vm3503_vm12, %v791_v39  ;;  %v1086_v45 = vsel %vm2923_vm2, %v2920_v23, 0.0  ;;  %v3531_v39 = vmov 0 }
  0xc6   : > { %v3532_v39 = vsel %vm2959_vm3, 4294967295, %v3531_v39 }
  0xcc   : > { %1114 = vrot.lane.b32.xlu0 %v2134_v29, %s2362_s9  ;;  %1116 = vrot.lane.b32.xlu1 %v1082_v61, %s2362_s9  ;;  %v505_v61 = vadd.s32 96, %v2685_v18  ;;  %v793_v18 = vsel %vm2959_vm3, %v2943_v52, 0.0 }
  0xcd   : > { %1118 = vrot.lane.b32.xlu2 %v2834_v24, %s2362_s9  ;;  %810 = vst.msk [vmem:[#allocation3 + $0x50] sm:$0xff] %vm3503_vm12, %v793_v18 }
  0xcf   : > { %v859_v29 = vpop.permute.xlu2 %858 }
  0xd0   : > { %903 = vst.msk [vmem:[#allocation3 + $0x20] sm:$0xff] %vm3496_vm1, %v859_v29  ;;  %v597_v29 = vand.u32 15, %v505_v61 }
  0xd2   : > { %vm2979_vm13 = vcmp.gt.s32.totalorder %v597_v29, 0  ;;  %v2998_v29 = vld [vmem:[%s2629_s7 + $0x80] sm:$0xff] }
  0xd4   : > { %1120 = vrot.lane.b32.xlu0 %v1084_v42, %s2362_s9  ;;  %1122 = vrot.lane.b32.xlu1 %v2849_v30, %s2362_s9  ;;  %v2964_v42 = vld [vmem:[%s2629_s7 + $0x60] sm:$0xff] }
  0xd5   : > { %1124 = vrot.lane.b32.xlu2 %v1086_v45, %s2362_s9  ;;  %v1090_v61 = vsel %vm2959_vm3, %v2964_v42, 0.0  ;;  %v795_v18 = vsel %vm2979_vm13, %v2964_v42, 0.0  ;;  %vm3541_vm3 = vcmask 31744   ;;  %v1417_v9 = vsel %vm2915_vm0, %v2964_v42, 0.0 }
  0xd6   : > { %812 = vst.msk [vmem:[#allocation3 + $0x60] sm:$0xff] %vm3541_vm3, %v795_v18  ;;  %vm3544_vm3 = vmmov %vm3538_vm7  ;;  %vm1703_vm0 = vcmask 294144  }
  0xd7   : > { %v861_v57 = vpop.permute.xlu2 %860 }
  0xd8   : > { %904 = vst.msk [vmem:[#allocation3 + $0x28] sm:$0xff] %vm3496_vm1, %v861_v57  ;;  %vm2971_vm1 = vcmp.gt.s32.totalorder %v611_v16, 0 }
  0xd9   : > { %v797_v57 = vsel %vm2971_vm1, %v2976_v48, 0.0 }
  0xda   : > { %814 = vst.msk [vmem:[#allocation3 + $0x70] sm:$0xff] %vm3503_vm12, %v797_v57  ;;  %v1094_v57 = vsel %vm2971_vm1, %v2998_v29, 0.0  ;;  %vm3540_vm12 = vmmov %vm3538_vm7 }
  0xdc   : > { %1126 = vrot.lane.b32.xlu0 %v2858_v36, %s2362_s9  ;;  %1128 = vrot.lane.b32.xlu1 %v1088_v62, %s2362_s9  ;;  %v1092_v62 = vsel %vm2979_vm13, %v2976_v48, 0.0 }
  0xdd   : > { %1130 = vrot.lane.b32.xlu2 %v2905_v4, %s2362_s9 }
  0xdf   : > { %v867_v54 = vpop.permute.xlu2 %866 }
  0xe0   : > { %907 = vst.msk [vmem:[#allocation3 + $0x40] sm:$0xff] %vm3537_vm9, %v867_v54  ;;  %vm3539_vm9 = vmmov %vm3538_vm7 }
  0xe4   : > { %1132 = vrot.lane.b32.xlu0 %v1090_v61, %s2362_s9  ;;  %1134 = vrot.lane.b32.xlu1 %v2873_v47, %s2362_s9 }
  0xe5   : > { %1136 = vrot.lane.b32.xlu2 %v1092_v62, %s2362_s9 }
  0xe6   : > { %v855_v0 = vpop.permute.xlu1 %854  ;;  %v851_v16 = vpop.permute.xlu0 %850 }
  0xe7   : > { %901 = vst.msk [vmem:[#allocation3 + $0x10] sm:$0xff] %vm3538_vm7, %v855_v0  ;;  %v873_v54 = vpop.permute.xlu2 %872 }
  0xe8   : > { %899 = vst.msk [vmem:[#allocation3] sm:$0xff] %vm3539_vm9, %v851_v16  ;;  %vm3542_vm9 = vmmov %vm3538_vm7  ;;  %v1409_v16 = vsel %vm2852_vm14, %v2816_v5, 0.0  ;;  %vm1045_vm14 = vcmask 97344  }
  0xe9   : > { %910 = vst.msk [vmem:[#allocation3 + $0x58] sm:$0xff] %vm3540_vm12, %v873_v54  ;;  %vm3543_vm12 = vmmov %vm3538_vm7 }
  0xec   : > { %1138 = vrot.lane.b32.xlu0 %v2895_v58, %s2362_s9  ;;  %1140 = vrot.lane.b32.xlu1 %v1094_v57, %s2362_s9  ;;  %v1295_v57 = vsel %vm2704_vm4, %v2723_v32, 0.0  ;;  %v1413_v32 = vsel %vm2821_vm11, %v2920_v23, 0.0  ;;  %vm1160_vm11 = vcmask 130144   ;;  %vm1259_vm4 = vcmask 162944  }
  0xed   : > { %1211 = vrot.lane.b32.xlu2 %v2632_v3, %s2363_s10 }
  0xee   : > { %v857_v61 = vpop.permute.xlu1 %856  ;;  %v853_v62 = vpop.permute.xlu0 %852 }
  0xef   : > { %902 = vst.msk [vmem:[#allocation3 + $0x18] sm:$0xff] %vm3538_vm7, %v857_v61  ;;  %v879_v0 = vpop.permute.xlu2 %878  ;;  %vm3545_vm7 = vmmov %vm3544_vm3 }
  0xf0   : > { %900 = vst.msk [vmem:[#allocation3 + $0x8] sm:$0xff] %vm3542_vm9, %v853_v62  ;;  %vm3546_vm9 = vmmov %vm3544_vm3 }
  0xf1   : > { %913 = vst.msk [vmem:[#allocation3 + $0x70] sm:$0xff] %vm3543_vm12, %v879_v0  ;;  %vm3547_vm12 = vmmov %vm3544_vm3 }
  0xf4   : > { %1326 = vrot.lane.b32.xlu0 %v2729_v35, %s2364_s11  ;;  %1441 = vrot.lane.b32.xlu1 %v1409_v16, %s2365_s12 }
  0xf5   : > { %1540 = vrot.lane.b32.xlu2 %v2639_v7, %s2366_s13 }
  0xf6   : > { %v865_v18 = vpop.permute.xlu1 %864  ;;  %v863_v3 = vpop.permute.xlu0 %862 }
  0xf7   : > { %906 = vst.msk [vmem:[#allocation3 + $0x38] sm:$0xff] %vm3544_vm3, %v865_v18  ;;  %v1000_v5 = vpop.permute.xlu2 %999 }
  0xf8   : > { %905 = vst.msk [vmem:[#allocation3 + $0x30] sm:$0xff] %vm3545_vm7, %v863_v3  ;;  %vm3548_vm7 = vmmov %vm3544_vm3 }
  0xf9   : > { %1047 = vst.msk [vmem:[#allocation3 + $0x8] sm:$0xff] %vm1045_vm14, %v1000_v5 }
  0xfc   : > { %1655 = vrot.lane.b32.xlu0 %v2735_v38, %s2367_s14  ;;  %1213 = vrot.lane.b32.xlu1 %v2644_v8, %s2363_s10 }
  0xfd   : > { %1219 = vrot.lane.b32.xlu2 %v2659_v12, %s2363_s10 }
  0xfe   : > { %v871_v35 = vpop.permute.xlu1 %870  ;;  %v869_v33 = vpop.permute.xlu0 %868 }
  0xff   : > { %909 = vst.msk [vmem:[#allocation3 + $0x50] sm:$0xff] %vm3546_vm9, %v871_v35  ;;  %v1006_v54 = vpop.permute.xlu2 %1005  ;;  %vm3549_vm9 = vmmov %vm3544_vm3 }
 0x100   : > { %908 = vst.msk [vmem:[#allocation3 + $0x48] sm:$0xff] %vm3547_vm12, %v869_v33  ;;  %vm3554_vm12 = vcmask 31744  }
 0x101   : > { %1050 = vst.msk [vmem:[#allocation3 + $0x20] sm:$0xff] %vm1045_vm14, %v1006_v54 }
 0x104   : > { %1334 = vrot.lane.b32.xlu1 %v2761_v46, %s2364_s11  ;;  %1328 = vrot.lane.b32.xlu0 %v1295_v57, %s2364_s11  ;;  %v1299_v57 = vsel %vm2740_vm6, %v2755_v44, 0.0  ;;  %vm1374_vm6 = vcmask 195744  }
 0x105   : > { %1227 = vrot.lane.b32.xlu2 %v2671_v14, %s2363_s10 }
 0x106   : > { %v877_v8 = vpop.permute.xlu1 %876  ;;  %v875_v61 = vpop.permute.xlu0 %874 }
 0x107   : > { %912 = vst.msk [vmem:[#allocation3 + $0x68] sm:$0xff] %vm3544_vm3, %v877_v8  ;;  %v1012_v62 = vpop.permute.xlu2 %1011  ;;  %vm3555_vm3 = vmmov %vm3554_vm12 }
 0x108   : > { %911 = vst.msk [vmem:[#allocation3 + $0x60] sm:$0xff] %vm3548_vm7, %v875_v61  ;;  %vm3556_vm7 = vmmov %vm3555_vm3 }
 0x109   : > { %1053 = vst.msk [vmem:[#allocation3 + $0x38] sm:$0xff] %vm1045_vm14, %v1012_v62  ;;  %v1411_v62 = vsel %vm2881_vm15, %v2910_v6, 0.0  ;;  %vm1588_vm15 = vcmask 261344  }
 0x10c   : > { %1449 = vrot.lane.b32.xlu1 %v1413_v32, %s2365_s12  ;;  %1443 = vrot.lane.b32.xlu0 %v2834_v24, %s2365_s12 }
 0x10d   : > { %1342 = vrot.lane.b32.xlu2 %v2786_v56, %s2364_s11 }
 0x10e   : > { %v998_v0 = vpop.permute.xlu1 %997  ;;  %v881_v16 = vpop.permute.xlu0 %880 }
 0x10f   : > { %1046 = vst.msk [vmem:[#allocation3] sm:$0xff] %vm1045_vm14, %v998_v0  ;;  %v1018_v18 = vpop.permute.xlu2 %1017 }
 0x110   : > { %914 = vst.msk [vmem:[#allocation3 + $0x78] sm:$0xff] %vm3549_vm9, %v881_v16  ;;  %vm3557_vm9 = vmmov %vm3555_vm3 }
 0x111   : > { %1056 = vst.msk [vmem:[#allocation3 + $0x50] sm:$0xff] %vm1045_vm14, %v1018_v18  ;;  %v1421_v18 = vsel %vm2979_vm13, %v2998_v29, 0.0  ;;  %vm1790_vm13 = vcmask 1043456  }
 0x114   : > { %1548 = vrot.lane.b32.xlu1 %v2662_v13, %s2366_s13  ;;  %1542 = vrot.lane.b32.xlu0 %v2648_v10, %s2366_s13 }
 0x115   : > { %1457 = vrot.lane.b32.xlu2 %v1417_v9, %s2365_s12 }
 0x116   : > { %v1002_v24 = vpop.permute.xlu0 %1001  ;;  %v1004_v23 = vpop.permute.xlu1 %1003 }
 0x117   : > { %1048 = vst.msk [vmem:[#allocation3 + $0x10] sm:$0xff] %vm1045_vm14, %v1002_v24  ;;  %v1024_v3 = vpop.permute.xlu2 %1023 }
 0x118   : > { %1049 = vst.msk [vmem:[#allocation3 + $0x18] sm:$0xff] %vm1045_vm14, %v1004_v23  ;;  %v1738_v23 = vld [vmem:[%s3492_s3 + $0x10] sm:$0xff] }
 0x119   : > { %1059 = vst.msk [vmem:[#allocation3 + $0x68] sm:$0xff] %vm1045_vm14, %v1024_v3  ;;  %v1632_v3 = vsel %vm2769_vm8, %v2807_v2, 0.0  ;;  %vm1489_vm8 = vcmask 228544  }
 0x11c   : > { %1663 = vrot.lane.b32.xlu1 %v2780_v53, %s2367_s14  ;;  %1657 = vrot.lane.b32.xlu0 %v1624_v19, %s2367_s14  ;;  %v3159_v19 = vld [vmem:[%s2629_s7 + $0x81] sm:$0xff] }
 0x11d   : > { %1556 = vrot.lane.b32.xlu2 %v2692_v21, %s2366_s13 }
 0x11e   : > { %v1008_v42 = vpop.permute.xlu0 %1007  ;;  %v1010_v5 = vpop.permute.xlu1 %1009 }
 0x11f   : > { %1051 = vst.msk [vmem:[#allocation3 + $0x28] sm:$0xff] %vm1045_vm14, %v1008_v42  ;;  %v1113_v35 = vpop.permute.xlu2 %1112  ;;  %v1737_v42 = vld [vmem:[%s3492_s3 + $0x8] sm:$0xff] }
 0x120   : > { %1052 = vst.msk [vmem:[#allocation3 + $0x30] sm:$0xff] %vm1045_vm14, %v1010_v5  ;;  %v3165_v5 = vld [vmem:[%s2629_s7 + $0x82] sm:$0xff] }
 0x121   : > { %1161 = vst.msk [vmem:[#allocation3] sm:$0xff] %vm1160_vm11, %v1113_v35 }
 0x124   : > { %1215 = vrot.lane.b32.xlu1 %v2639_v7, %s2363_s10  ;;  %1671 = vrot.lane.b32.xlu0 %v2813_v1, %s2367_s14 }
 0x125   : > { %1221 = vrot.lane.b32.xlu2 %v2656_v11, %s2363_s10 }
 0x126   : > { %v1014_v25 = vpop.permute.xlu0 %1013  ;;  %v1016_v33 = vpop.permute.xlu1 %1015 }
 0x127   : > { %1054 = vst.msk [vmem:[#allocation3 + $0x40] sm:$0xff] %vm1045_vm14, %v1014_v25  ;;  %v1119_v54 = vpop.permute.xlu2 %1118 }
 0x128   : > { %1055 = vst.msk [vmem:[#allocation3 + $0x48] sm:$0xff] %vm1045_vm14, %v1016_v33 }
 0x129   : > { %1164 = vst.msk [vmem:[#allocation3 + $0x18] sm:$0xff] %vm1160_vm11, %v1119_v54  ;;  %v1297_v54 = vsel %vm2718_vm5, %v2745_v41, 0.0 }
 0x12c   : > { %1336 = vrot.lane.b32.xlu1 %v1299_v57, %s2364_s11  ;;  %1330 = vrot.lane.b32.xlu0 %v2735_v38, %s2364_s11 }
 0x12d   : > { %1229 = vrot.lane.b32.xlu2 %v2677_v17, %s2363_s10 }
 0x12e   : > { %v1020_v7 = vpop.permute.xlu0 %1019  ;;  %v1022_v8 = vpop.permute.xlu1 %1021 }
 0x12f   : > { %1057 = vst.msk [vmem:[#allocation3 + $0x58] sm:$0xff] %vm1045_vm14, %v1020_v7  ;;  %v1125_v61 = vpop.permute.xlu2 %1124 }
 0x130   : > { %1058 = vst.msk [vmem:[#allocation3 + $0x60] sm:$0xff] %vm1045_vm14, %v1022_v8 }
 0x131   : > { %1167 = vst.msk [vmem:[#allocation3 + $0x30] sm:$0xff] %vm1160_vm11, %v1125_v61 }
 0x134   : > { %1445 = vrot.lane.b32.xlu1 %v1411_v62, %s2365_s12  ;;  %1235 = vrot.lane.b32.xlu0 %v2695_v22, %s2363_s10 }
 0x135   : > { %1451 = vrot.lane.b32.xlu2 %v2858_v36, %s2365_s12 }
 0x136   : > { %v1026_v38 = vpop.permute.xlu0 %1025  ;;  %v1028_v32 = vpop.permute.xlu1 %1027 }
 0x137   : > { %1060 = vst.msk [vmem:[#allocation3 + $0x70] sm:$0xff] %vm1045_vm14, %v1026_v38  ;;  %v1131_v0 = vpop.permute.xlu2 %1130  ;;  %v3225_v38 = vld [vmem:[%s2629_s7 + $0x88] sm:$0xff] }
 0x138   : > { %1061 = vst.msk [vmem:[#allocation3 + $0x78] sm:$0xff] %vm1045_vm14, %v1028_v32  ;;  %vm3550_vm14 = vnez %v3532_v39 }
 0x139   : > { %1170 = vst.msk [vmem:[#allocation3 + $0x48] sm:$0xff] %vm1160_vm11, %v1131_v0 }
 0x13c   : > { %1350 = vrot.lane.b32.xlu1 %v2863_v37, %s2364_s11  ;;  %1344 = vrot.lane.b32.xlu0 %v1303_v51, %s2364_s11  ;;  %v3246_v51 = vld [vmem:[%s2629_s7 + $0x8a] sm:$0xff] }
 0x13d   : > { %1544 = vrot.lane.b32.xlu2 %v2659_v12, %s2366_s13 }
 0x13e   : > { %v1115_v6 = vpop.permute.xlu0 %1114  ;;  %v1117_v16 = vpop.permute.xlu1 %1116 }
 0x13f   : > { %1162 = vst.msk [vmem:[#allocation3 + $0x8] sm:$0xff] %vm1160_vm11, %v1115_v6  ;;  %v1137_v36 = vpop.permute.xlu2 %1136 }
 0x140   : > { %1163 = vst.msk [vmem:[#allocation3 + $0x10] sm:$0xff] %vm1160_vm11, %v1117_v16  ;;  %v1636_v16 = vsel %vm2802_vm10, %v3246_v51, 0.0 }
 0x141   : > { %1173 = vst.msk [vmem:[#allocation3 + $0x60] sm:$0xff] %vm1160_vm11, %v1137_v36 }
 0x144   : > { %1459 = vrot.lane.b32.xlu1 %v2873_v47, %s2365_s12  ;;  %1550 = vrot.lane.b32.xlu0 %v2674_v15, %s2366_s13  ;;  %v1740_v15 = vld [vmem:[%s3492_s3 + $0x20] sm:$0xf] }
 0x145   : > { %1465 = vrot.lane.b32.xlu2 %v1421_v18, %s2365_s12  ;;  %2234 = vmatpush.msk.msra.mxu0 %vm1790_vm13, %v1740_v15 }
 0x146   : > { %v1121_v9 = vpop.permute.xlu0 %1120  ;;  %v1123_v24 = vpop.permute.xlu1 %1122  ;;  %2253 = vmatpush.msk.msra.mxu1 %vm1790_vm13, %v1740_v15  ;;  %2254 = vmatpush.msk.msra.mxu2 %vm1790_vm13, %v1740_v15 }
 0x147   : > { %1165 = vst.msk [vmem:[#allocation3 + $0x20] sm:$0xff] %vm1160_vm11, %v1121_v9  ;;  %v1212_v12 = vpop.permute.xlu2 %1211  ;;  %2255 = vmatpush.msk.msra.mxu3 %vm1790_vm13, %v1740_v15  ;;  %vm3558_vm13 = vmmov %vm3555_vm3 }
 0x148   : > { %1166 = vst.msk [vmem:[#allocation3 + $0x28] sm:$0xff] %vm1160_vm11, %v1123_v24 }
 0x149   : > { %1260 = vst.msk [vmem:[#allocation3] sm:$0xff] %vm1259_vm4, %v1212_v12 }
 0x14c   : > { %1665 = vrot.lane.b32.xlu1 %v1628_v55, %s2367_s14  ;;  %1659 = vrot.lane.b32.xlu0 %v2761_v46, %s2367_s14  ;;  %v1739_v46 = vld [vmem:[%s3492_s3 + $0x18] sm:$0xff] }
 0x14d   : > { %1558 = vrot.lane.b32.xlu2 %v2689_v20, %s2366_s13  ;;  %1806 = vmatpush.msra.mxu0 %v1739_v46 }
 0x14e   : > { %v1127_v47 = vpop.permute.xlu0 %1126  ;;  %v1129_v29 = vpop.permute.xlu1 %1128  ;;  %2256 = vmatpush.msra.mxu1 %v1739_v46  ;;  %2257 = vmatpush.msra.mxu2 %v1739_v46 }
 0x14f   : > { %1168 = vst.msk [vmem:[#allocation3 + $0x38] sm:$0xff] %vm1160_vm11, %v1127_v47  ;;  %v1541_v40 = vpop.permute.xlu2 %1540  ;;  %2258 = vmatpush.msra.mxu3 %v1739_v46  ;;  %1807 = vmatpush.msra.mxu0 %v1738_v23 }
 0x150   : > { %1169 = vst.msk [vmem:[#allocation3 + $0x40] sm:$0xff] %vm1160_vm11, %v1129_v29  ;;  %2259 = vmatpush.msra.mxu1 %v1738_v23  ;;  %2260 = vmatpush.msra.mxu2 %v1738_v23  ;;  %v2198_v29 = vld [vmem:[%s2629_s7 + $0x90] sm:$0xff] }
 0x151   : > { %1808 = vmatpush.msra.mxu0 %v1737_v42  ;;  %2261 = vmatpush.msra.mxu3 %v1738_v23 }
 0x152   : > { %2262 = vmatpush.msra.mxu1 %v1737_v42  ;;  %2263 = vmatpush.msra.mxu2 %v1737_v42 }
 0x153   : > { %1809 = vmatpush.msra.mxu0 %v1736_v49  ;;  %2264 = vmatpush.msra.mxu3 %v1737_v42 }
 0x154   : > { %1673 = vrot.lane.b32.xlu1 %v1632_v3, %s2367_s14  ;;  %1564 = vrot.lane.b32.xlu0 %v3159_v19, %s2366_s13  ;;  %v2215_v3 = vld [vmem:[%s2629_s7 + $0x91] sm:$0xff] }
 0x155   : > { %1679 = vrot.lane.b32.xlu2 %v3165_v5, %s2367_s14  ;;  %2265 = vmatpush.msra.mxu1 %v1736_v49 }
 0x156   : > { %v1133_v35 = vpop.permute.xlu0 %1132  ;;  %v1135_v25 = vpop.permute.xlu1 %1134  ;;  %2266 = vmatpush.msra.mxu2 %v1736_v49  ;;  %2267 = vmatpush.msra.mxu3 %v1736_v49 }
 0x157   : > { %1171 = vst.msk [vmem:[#allocation3 + $0x50] sm:$0xff] %vm1160_vm11, %v1133_v35  ;;  %v1220_v33 = vpop.permute.xlu2 %1219 }
 0x158   : > { %1172 = vst.msk [vmem:[#allocation3 + $0x58] sm:$0xff] %vm1160_vm11, %v1135_v25 }
 0x159   : > { %1264 = vst.msk [vmem:[#allocation3 + $0x20] sm:$0xff] %vm1259_vm4, %v1220_v33 }
 0x15c   : > { %1223 = vrot.lane.b32.xlu1 %v2662_v13, %s2363_s10  ;;  %1217 = vrot.lane.b32.xlu0 %v2648_v10, %s2363_s10 }
 0x15d   : > { %1332 = vrot.lane.b32.xlu2 %v1297_v54, %s2364_s11  ;;  %v2233_v54 = vld [vmem:[%s2629_s7 + $0x9a] sm:$0xff] }
 0x15e   : > { %v1139_v57 = vpop.permute.xlu0 %1138  ;;  %v1141_v7 = vpop.permute.xlu1 %1140 }
 0x15f   : > { %1174 = vst.msk [vmem:[#allocation3 + $0x68] sm:$0xff] %vm1160_vm11, %v1139_v57  ;;  %v1228_v8 = vpop.permute.xlu2 %1227 }
 0x160   : > { %1175 = vst.msk [vmem:[#allocation3 + $0x70] sm:$0xff] %vm1160_vm11, %v1141_v7  ;;  %v2216_v7 = vld [vmem:[%s2629_s7 + $0x99] sm:$0xff] }
 0x161   : > { %1268 = vst.msk [vmem:[#allocation3 + $0x40] sm:$0xff] %vm1259_vm4, %v1228_v8 }
 0x164   : > { %1231 = vrot.lane.b32.xlu1 %v2692_v21, %s2363_s10  ;;  %1338 = vrot.lane.b32.xlu0 %v2780_v53, %s2364_s11  ;;  %v1415_v21 = vsel %vm2923_vm2, %v2943_v52, 0.0  ;;  %v1307_v52 = vsel %vm2802_vm10, %v2842_v27, 0.0  ;;  %vm1741_vm2 = vcmask 293888   ;;  %vm3552_vm10 = vnez %v3516_v59 }
 0x165   : > { %1237 = vrot.lane.b32.xlu2 %v2711_v28, %s2363_s10 }
 0x166   : > { %v1327_v10 = vpop.permute.xlu0 %1326  ;;  %v1442_v13 = vpop.permute.xlu1 %1441 }
 0x167   : > { %1375 = vst.msk [vmem:[#allocation3] sm:$0xff] %vm1374_vm6, %v1327_v10  ;;  %v1343_v41 = vpop.permute.xlu2 %1342 }
 0x168   : > { %1490 = vst.msk [vmem:[#allocation3] sm:$0xff] %vm1489_vm8, %v1442_v13 }
 0x169   : > { %1589 = vst.msk [vmem:[#allocation3] sm:$0xff] %vm1588_vm15, %v1541_v40 }
 0x16a   : > { %1383 = vst.msk [vmem:[#allocation3 + $0x40] sm:$0xff] %vm1374_vm6, %v1343_v41 }
 0x16c   : > { %1453 = vrot.lane.b32.xlu1 %v1415_v21, %s2365_s12  ;;  %1447 = vrot.lane.b32.xlu0 %v2849_v30, %s2365_s12 }
 0x16d   : > { %1346 = vrot.lane.b32.xlu2 %v2813_v1, %s2364_s11 }
 0x16e   : > { %v1656_v28 = vpop.permute.xlu0 %1655  ;;  %v1214_v53 = vpop.permute.xlu1 %1213 }
 0x16f   : > { %1704 = vst.msk [vmem:[#allocation3] sm:$0xff] %vm1703_vm0, %v1656_v28  ;;  %v1458_v34 = vpop.permute.xlu2 %1457 }
 0x170   : > { %1261 = vst.msk [vmem:[#allocation3 + $0x8] sm:$0xff] %vm1259_vm4, %v1214_v53 }
 0x171   : > { %1498 = vst.msk [vmem:[#allocation3 + $0x40] sm:$0xff] %vm1489_vm8, %v1458_v34 }
 0x174   : > { %1546 = vrot.lane.b32.xlu1 %v2656_v11, %s2366_s13  ;;  %1352 = vrot.lane.b32.xlu0 %v1307_v52, %s2364_s11  ;;  %v1419_v11 = vsel %vm3550_vm14, %v2976_v48, 0.0  ;;  %vm3559_vm14 = vmmov %vm3555_vm3 }
 0x175   : > { %1552 = vrot.lane.b32.xlu2 %v2671_v14, %s2366_s13  ;;  %v1626_v14 = vsel %vm2718_vm5, %v2755_v44, 0.0  ;;  %vm3551_vm5 = vnez %v3512_v43  ;;  %v1634_v43 = vsel %vm3552_vm10, %v2842_v27, 0.0  ;;  %v2199_v27 = vld [vmem:[%s2629_s7 + $0x98] sm:$0xff] }
 0x176   : > { %v1335_v30 = vpop.permute.xlu1 %1334  ;;  %v1329_v1 = vpop.permute.xlu0 %1328  ;;  %v1720_v61 = vld [vmem:[#allocation3] sm:$0xff]  ;;  %v1301_v63 = vsel %vm3551_vm5, %v2774_v50, 0.0  ;;  %v1630_v45 = vsel %vm3551_vm5, %v2797_v60, 0.0  ;;  %v2232_v60 = vld [vmem:[%s2629_s7 + $0x92] sm:$0xff]  ;;  %vm3561_vm5 = vmmov %vm3555_vm3 }
 0x177   : > { %1379 = vst.msk [vmem:[#allocation3 + $0x20] sm:$0xff] %vm1374_vm6, %v1335_v30  ;;  %2235 = vmatmul.msk.f32.vlgmr.msra.gmra.mxu0 %vm1741_vm2, %v1720_v61  ;;  %v1557_v62 = vpop.permute.xlu2 %1556 }
 0x178   : > { %1376 = vst.msk [vmem:[#allocation3 + $0x8] sm:$0xff] %vm1374_vm6, %v1329_v1 }
 0x179   : > { %1597 = vst.msk [vmem:[#allocation3 + $0x40] sm:$0xff] %vm1588_vm15, %v1557_v62 }
 0x17c   : > { %1461 = vrot.lane.b32.xlu0 %v1419_v11, %s2365_s12  ;;  %1467 = vrot.lane.b32.xlu1 %v3225_v38, %s2365_s12 }
 0x17d   : > { %1661 = vrot.lane.b32.xlu2 %v1626_v14, %s2367_s14 }
 0x17e   : > { %v1450_v32 = vpop.permute.xlu1 %1449  ;;  %v1444_v0 = vpop.permute.xlu0 %1443 }
 0x17f   : > { %1494 = vst.msk [vmem:[#allocation3 + $0x20] sm:$0xff] %vm1489_vm8, %v1450_v32  ;;  %v1222_v39 = vpop.permute.xlu2 %1221 }
 0x180   : > { %1491 = vst.msk [vmem:[#allocation3 + $0x8] sm:$0xff] %vm1489_vm8, %v1444_v0 }
 0x181   : > { %1265 = vst.msk [vmem:[#allocation3 + $0x28] sm:$0xff] %vm1259_vm4, %v1222_v39 }
 0x184   : > { %1667 = vrot.lane.b32.xlu0 %v2786_v56, %s2367_s14  ;;  %1560 = vrot.lane.b32.xlu1 %v2695_v22, %s2366_s13  ;;  %v2157_v56 = vld [vmem:[%s2629_s7 + $0x49] sm:$0xff] }
 0x185   : > { %1566 = vrot.lane.b32.xlu2 %v3239_v31, %s2366_s13 }
 0x186   : > { %v1549_v44 = vpop.permute.xlu1 %1548  ;;  %v1543_v48 = vpop.permute.xlu0 %1542 }
 0x187   : > { %1593 = vst.msk [vmem:[#allocation3 + $0x20] sm:$0xff] %vm1588_vm15, %v1549_v44  ;;  %v1230_v6 = vpop.permute.xlu2 %1229 }
 0x188   : > { %1590 = vst.msk [vmem:[#allocation3 + $0x8] sm:$0xff] %vm1588_vm15, %v1543_v48 }
 0x189   : > { %1269 = vst.msk [vmem:[#allocation3 + $0x48] sm:$0xff] %vm1259_vm4, %v1230_v6 }
 0x18c   : > { %1675 = vrot.lane.b32.xlu0 %v2863_v37, %s2367_s14  ;;  %1681 = vrot.lane.b32.xlu1 %v1636_v16, %s2367_s14 }
 0x18d   : > { %1225 = vrot.lane.b32.xlu2 %v2157_v56, %s2363_s10 }
 0x18e   : > { %v1664_v22 = vpop.permute.xlu1 %1663  ;;  %v1658_v36 = vpop.permute.xlu0 %1657 }
 0x18f   : > { %1708 = vst.msk [vmem:[#allocation3 + $0x20] sm:$0xff] %vm1703_vm0, %v1664_v22  ;;  %v1452_v18 = vpop.permute.xlu2 %1451 }
 0x190   : > { %1705 = vst.msk [vmem:[#allocation3 + $0x8] sm:$0xff] %vm1703_vm0, %v1658_v36 }
 0x194   : > { %1340 = vrot.lane.b32.xlu0 %v1301_v63, %s2364_s11  ;;  %1233 = vrot.lane.b32.xlu1 %v2689_v20, %s2363_s10  ;;  %v1305_v20 = vsel %vm3552_vm10, %v2807_v2, 0.0  ;;  %vm3564_vm10 = vmmov %vm3555_vm3 }
 0x195   : > { %1239 = vrot.lane.b32.xlu2 %v3159_v19, %s2363_s10 }
 0x196   : > { %v1216_v37 = vpop.permute.xlu1 %1215  ;;  %v1672_v9 = vpop.permute.xlu0 %1671  ;;  %v1724_v24 = vld [vmem:[#allocation3 + $0x20] sm:$0xff] }
 0x197   : > { %1262 = vst.msk [vmem:[#allocation3 + $0x10] sm:$0xff] %vm1259_vm4, %v1216_v37  ;;  %v1721_v12 = vld [vmem:[#allocation3 + $0x8] sm:$0xff]  ;;  %2239 = vmatmul.msk.f32.vlgmr.msra.gmra.mxu1 %vm1741_vm2, %v1724_v24  ;;  %v1545_v50 = vpop.permute.xlu2 %1544 }
 0x198   : > { %1712 = vst.msk [vmem:[#allocation3 + $0x40] sm:$0xff] %vm1703_vm0, %v1672_v9  ;;  %2236 = vmatmul.msk.f32.gmra.mxu0 %vm1741_vm2, %v1721_v12 }
 0x19c   : > { %1455 = vrot.lane.b32.xlu0 %v2905_v4, %s2365_s12  ;;  %1348 = vrot.lane.b32.xlu1 %v1305_v20, %s2364_s11  ;;  %v1423_v4 = vsel %vm2971_vm1, %v2198_v29, 0.0  ;;  %vm3553_vm1 = vnez %v3522_v26 }
 0x19d   : > { %1354 = vrot.lane.b32.xlu2 %v3165_v5, %s2364_s11  ;;  %v1309_v59 = vsel %vm3553_vm1, %v3246_v51, 0.0  ;;  %v1638_v8 = vsel %vm3553_vm1, %v2233_v54, 0.0 }
 0x19e   : > { %v1337_v55 = vpop.permute.xlu1 %1336  ;;  %v1331_v15 = vpop.permute.xlu0 %1330 }
 0x19f   : > { %1380 = vst.msk [vmem:[#allocation3 + $0x28] sm:$0xff] %vm1374_vm6, %v1337_v55  ;;  %v1728_v47 = vld [vmem:[#allocation3 + $0x40] sm:$0xff]  ;;  %v1466_v2 = vpop.permute.xlu2 %1465 }
 0x1a0   : > { %1377 = vst.msk [vmem:[#allocation3 + $0x10] sm:$0xff] %vm1374_vm6, %v1331_v15  ;;  %2243 = vmatmul.msk.f32.vlgmr.msra.gmra.mxu2 %vm1741_vm2, %v1728_v47 }
 0x1a1   : > { %1495 = vst.msk [vmem:[#allocation3 + $0x28] sm:$0xff] %vm1489_vm8, %v1452_v18 }
 0x1a4   : > { %1554 = vrot.lane.b32.xlu0 %v2677_v17, %s2366_s13  ;;  %1463 = vrot.lane.b32.xlu1 %v2895_v58, %s2365_s12  ;;  %v2212_v17 = vld [vmem:[%s2629_s7 + $0x79] sm:$0xff] }
 0x1a5   : > { %1469 = vrot.lane.b32.xlu2 %v1423_v4, %s2365_s12 }
 0x1a6   : > { %v1446_v40 = vpop.permute.xlu1 %1445  ;;  %v1236_v46 = vpop.permute.xlu0 %1235 }
 0x1a7   : > { %1492 = vst.msk [vmem:[#allocation3 + $0x10] sm:$0xff] %vm1489_vm8, %v1446_v40  ;;  %v1559_v23 = vpop.permute.xlu2 %1558 }
 0x1a8   : > { %1272 = vst.msk [vmem:[#allocation3 + $0x60] sm:$0xff] %vm1259_vm4, %v1236_v46 }
 0x1a9   : > { %1591 = vst.msk [vmem:[#allocation3 + $0x10] sm:$0xff] %vm1588_vm15, %v1545_v50 }
 0x1ac   : > { %1669 = vrot.lane.b32.xlu0 %v1630_v45, %s2367_s14  ;;  %1562 = vrot.lane.b32.xlu1 %v2212_v17, %s2366_s13 }
 0x1ad   : > { %1568 = vrot.lane.b32.xlu2 %v2215_v3, %s2366_s13 }
 0x1ae   : > { %v1351_v58 = vpop.permute.xlu1 %1350  ;;  %v1345_v19 = vpop.permute.xlu0 %1344 }
 0x1af   : > { %1387 = vst.msk [vmem:[#allocation3 + $0x60] sm:$0xff] %vm1374_vm6, %v1351_v58  ;;  %v1680_v42 = vpop.permute.xlu2 %1679 }
 0x1b0   : > { %1384 = vst.msk [vmem:[#allocation3 + $0x48] sm:$0xff] %vm1374_vm6, %v1345_v19 }
 0x1b1   : > { %1502 = vst.msk [vmem:[#allocation3 + $0x60] sm:$0xff] %vm1489_vm8, %v1466_v2 }
 0x1b4   : > { %1677 = vrot.lane.b32.xlu0 %v1634_v43, %s2367_s14  ;;  %1683 = vrot.lane.b32.xlu1 %v2232_v60, %s2367_s14 }
 0x1b5   : > { %1142 = vrot.lane.b32.xlu2 %v3225_v38, %s2362_s9 }
 0x1b6   : > { %v1460_v5 = vpop.permute.xlu1 %1459  ;;  %v1551_v49 = vpop.permute.xlu0 %1550 }
 0x1b7   : > { %1499 = vst.msk [vmem:[#allocation3 + $0x48] sm:$0xff] %vm1489_vm8, %v1460_v5  ;;  %v1333_v35 = vpop.permute.xlu2 %1332 }
 0x1b8   : > { %1594 = vst.msk [vmem:[#allocation3 + $0x28] sm:$0xff] %vm1588_vm15, %v1551_v49 }
 0x1b9   : > { %1598 = vst.msk [vmem:[#allocation3 + $0x48] sm:$0xff] %vm1588_vm15, %v1559_v23 }
 0x1bc   : > { %1241 = vrot.lane.b32.xlu0 %v3239_v31, %s2363_s10  ;;  %1356 = vrot.lane.b32.xlu1 %v1309_v59, %s2364_s11 }
 0x1bd   : > { %1471 = vrot.lane.b32.xlu2 %v2199_v27, %s2365_s12 }
 0x1be   : > { %v1666_v25 = vpop.permute.xlu1 %1665  ;;  %v1660_v33 = vpop.permute.xlu0 %1659 }
 0x1bf   : > { %1709 = vst.msk [vmem:[#allocation3 + $0x28] sm:$0xff] %vm1703_vm0, %v1666_v25  ;;  %v1238_v57 = vpop.permute.xlu2 %1237 }
 0x1c0   : > { %1706 = vst.msk [vmem:[#allocation3 + $0x10] sm:$0xff] %vm1703_vm0, %v1660_v33 }
 0x1c1   : > { %1273 = vst.msk [vmem:[#allocation3 + $0x68] sm:$0xff] %vm1259_vm4, %v1238_v57 }
 0x1c4   : > { %1570 = vrot.lane.b32.xlu0 %v2216_v7, %s2366_s13  ;;  %1685 = vrot.lane.b32.xlu1 %v1638_v8, %s2367_s14 }
 0x1c6   : > { %v1674_v10 = vpop.permute.xlu1 %1673  ;;  %v1565_v13 = vpop.permute.xlu0 %1564  ;;  %v1725_v41 = vld [vmem:[#allocation3 + $0x28] sm:$0xff] }
 0x1c7   : > { %1713 = vst.msk [vmem:[#allocation3 + $0x48] sm:$0xff] %vm1703_vm0, %v1674_v10  ;;  %v1722_v21 = vld [vmem:[#allocation3 + $0x10] sm:$0xff]  ;;  %2240 = vmatmul.msk.f32.gmra.mxu1 %vm1741_vm2, %v1725_v41  ;;  %v1347_v26 = vpop.permute.xlu2 %1346 }
 0x1c8   : > { %1601 = vst.msk [vmem:[#allocation3 + $0x60] sm:$0xff] %vm1588_vm15, %v1565_v13  ;;  %2237 = vmatmul.msk.f32.gmra.mxu0 %vm1741_vm2, %v1722_v21 }
 0x1c9   : > { %1716 = vst.msk [vmem:[#allocation3 + $0x60] sm:$0xff] %vm1703_vm0, %v1680_v42 }
 0x1ce   : > { %v1224_v28 = vpop.permute.xlu1 %1223  ;;  %v1218_v53 = vpop.permute.xlu0 %1217  ;;  %v1729_v34 = vld [vmem:[#allocation3 + $0x48] sm:$0xff] }
 0x1cf   : > { %1266 = vst.msk [vmem:[#allocation3 + $0x30] sm:$0xff] %vm1259_vm4, %v1224_v28  ;;  %2244 = vmatmul.msk.f32.gmra.mxu2 %vm1741_vm2, %v1729_v34  ;;  %v1553_v30 = vpop.permute.xlu2 %1552 }
 0x1d0   : > { %1263 = vst.msk [vmem:[#allocation3 + $0x18] sm:$0xff] %vm1259_vm4, %v1218_v53  ;;  %v1732_v52 = vld [vmem:[#allocation3 + $0x60] sm:$0xff] }
 0x1d1   : > { %1378 = vst.msk [vmem:[#allocation3 + $0x18] sm:$0xff] %vm1374_vm6, %v1333_v35  ;;  %2247 = vmatmul.msk.f32.vlgmr.msra.gmra.mxu3 %vm1741_vm2, %v1732_v52 }
 0x1d6   : > { %v1232_v1 = vpop.permute.xlu1 %1231  ;;  %v1339_v61 = vpop.permute.xlu0 %1338 }
 0x1d7   : > { %1270 = vst.msk [vmem:[#allocation3 + $0x50] sm:$0xff] %vm1259_vm4, %v1232_v1  ;;  %v1662_v62 = vpop.permute.xlu2 %1661 }
 0x1d8   : > { %1381 = vst.msk [vmem:[#allocation3 + $0x30] sm:$0xff] %vm1374_vm6, %v1339_v61 }
 0x1d9   : > { %1385 = vst.msk [vmem:[#allocation3 + $0x50] sm:$0xff] %vm1374_vm6, %v1347_v26 }
 0x1de   : > { %v1454_v11 = vpop.permute.xlu1 %1453  ;;  %v1448_v38 = vpop.permute.xlu0 %1447 }
 0x1df   : > { %1496 = vst.msk [vmem:[#allocation3 + $0x30] sm:$0xff] %vm1489_vm8, %v1454_v11  ;;  %v1567_v14 = vpop.permute.xlu2 %1566 }
 0x1e0   : > { %1493 = vst.msk [vmem:[#allocation3 + $0x18] sm:$0xff] %vm1489_vm8, %v1448_v38 }
 0x1e1   : > { %1595 = vst.msk [vmem:[#allocation3 + $0x30] sm:$0xff] %vm1588_vm15, %v1553_v30 }
 0x1e6   : > { %v1547_v32 = vpop.permute.xlu1 %1546  ;;  %v1353_v0 = vpop.permute.xlu0 %1352 }
 0x1e7   : > { %1592 = vst.msk [vmem:[#allocation3 + $0x18] sm:$0xff] %vm1588_vm15, %v1547_v32  ;;  %v1226_v39 = vpop.permute.xlu2 %1225 }
 0x1e8   : > { %1388 = vst.msk [vmem:[#allocation3 + $0x68] sm:$0xff] %vm1374_vm6, %v1353_v0 }
 0x1e9   : > { %1707 = vst.msk [vmem:[#allocation3 + $0x18] sm:$0xff] %vm1703_vm0, %v1662_v62 }
 0x1ea   : > { %1267 = vst.msk [vmem:[#allocation3 + $0x38] sm:$0xff] %vm1259_vm4, %v1226_v39 }
 0x1ee   : > { %v1462_v31 = vpop.permute.xlu0 %1461  ;;  %v1468_v44 = vpop.permute.xlu1 %1467 }
 0x1ef   : > { %1500 = vst.msk [vmem:[#allocation3 + $0x50] sm:$0xff] %vm1489_vm8, %v1462_v31  ;;  %v1240_v51 = vpop.permute.xlu2 %1239 }
 0x1f0   : > { %1503 = vst.msk [vmem:[#allocation3 + $0x68] sm:$0xff] %vm1489_vm8, %v1468_v44  ;;  %v1723_v48 = vld [vmem:[#allocation3 + $0x18] sm:$0xff] }
 0x1f1   : > { %2238 = vmatmul.msk.f32.gmra.mxu0 %vm1741_vm2, %v1723_v48  ;;  %1602 = vst.msk [vmem:[#allocation3 + $0x68] sm:$0xff] %vm1588_vm15, %v1567_v14 }
 0x1f2   : > { %1274 = vst.msk [vmem:[#allocation3 + $0x70] sm:$0xff] %vm1259_vm4, %v1240_v51 }
 0x1f4   : > { %v1811_v6 = vpop.f32.mrf.mxu0 }
 0x1f5   : > { %1859 = vst.msk [vmem:[%s2445_s15] sm:$0xff] %vm3554_vm12, %v1811_v6  ;;  %v1917_v2 = vmul.f32 %v1811_v6, %v1811_v6  ;;  %v1876_v40 = vsel %vm3556_vm7, %v1811_v6, 0.0 }
 0x1f6   : > { %v1668_v16 = vpop.permute.xlu0 %1667  ;;  %v1561_v56 = vpop.permute.xlu1 %1560 }
 0x1f7   : > { %1710 = vst.msk [vmem:[#allocation3 + $0x30] sm:$0xff] %vm1703_vm0, %v1668_v16  ;;  %v1355_v22 = vpop.permute.xlu2 %1354  ;;  %v1933_v58 = vsel %vm3559_vm14, %v1917_v2, 0.0 }
 0x1f8   : > { %1599 = vst.msk [vmem:[#allocation3 + $0x50] sm:$0xff] %vm1588_vm15, %v1561_v56 }
 0x1f9   : > { %1389 = vst.msk [vmem:[#allocation3 + $0x70] sm:$0xff] %vm1374_vm6, %v1355_v22 }
 0x1fe   : > { %v1676_v36 = vpop.permute.xlu0 %1675  ;;  %v1682_v18 = vpop.permute.xlu1 %1681  ;;  %v1726_v63 = vld [vmem:[#allocation3 + $0x30] sm:$0xff] }
 0x1ff   : > { %1714 = vst.msk [vmem:[#allocation3 + $0x50] sm:$0xff] %vm1703_vm0, %v1676_v36  ;;  %2241 = vmatmul.msk.f32.gmra.mxu1 %vm1741_vm2, %v1726_v63  ;;  %v1470_v37 = vpop.permute.xlu2 %1469 }
 0x200   : > { %1717 = vst.msk [vmem:[#allocation3 + $0x68] sm:$0xff] %vm1703_vm0, %v1682_v18 }
 0x201   : > { %1504 = vst.msk [vmem:[#allocation3 + $0x70] sm:$0xff] %vm1489_vm8, %v1470_v37 }
 0x206   : > { %v1341_v9 = vpop.permute.xlu0 %1340  ;;  %v1234_v24 = vpop.permute.xlu1 %1233  ;;  %v1730_v12 = vld [vmem:[#allocation3 + $0x50] sm:$0xff] }
 0x207   : > { %1382 = vst.msk [vmem:[#allocation3 + $0x38] sm:$0xff] %vm1374_vm6, %v1341_v9  ;;  %2245 = vmatmul.msk.f32.gmra.mxu2 %vm1741_vm2, %v1730_v12  ;;  %v1733_v50 = vld [vmem:[#allocation3 + $0x68] sm:$0xff]  ;;  %v1569_v20 = vpop.permute.xlu2 %1568 }
 0x208   : > { %1271 = vst.msk [vmem:[#allocation3 + $0x58] sm:$0xff] %vm1259_vm4, %v1234_v24  ;;  %2248 = vmatmul.msk.f32.gmra.mxu3 %vm1741_vm2, %v1733_v50 }
 0x209   : > { %1603 = vst.msk [vmem:[#allocation3 + $0x70] sm:$0xff] %vm1588_vm15, %v1569_v20 }
 0x20e   : > { %v1456_v55 = vpop.permute.xlu0 %1455  ;;  %v1349_v15 = vpop.permute.xlu1 %1348 }
 0x20f   : > { %1497 = vst.msk [vmem:[#allocation3 + $0x38] sm:$0xff] %vm1489_vm8, %v1456_v55  ;;  %v1143_v47 = vpop.permute.xlu2 %1142 }
 0x210   : > { %1386 = vst.msk [vmem:[#allocation3 + $0x58] sm:$0xff] %vm1374_vm6, %v1349_v15 }
 0x211   : > { %1176 = vst.msk [vmem:[#allocation3 + $0x78] sm:$0xff] %vm1160_vm11, %v1143_v47  ;;  %vm3560_vm11 = vmmov %vm3555_vm3 }
 0x214   : > { %v1823_v29 = vpop.f32.mrf.mxu1 }
 0x215   : > { %v1814_v4 = vpop.f32.mrf.mxu0  ;;  %1863 = vst.msk [vmem:[%s2445_s15 + $0x20] sm:$0xff] %vm3555_vm3, %v1823_v29  ;;  %v1921_v61 = vmul.f32 %v1823_v29, %v1823_v29 }
 0x216   : > { %1860 = vst.msk [vmem:[%s2445_s15 + $0x8] sm:$0xff] %vm3557_vm9, %v1814_v4  ;;  %v1877_v46 = vsel %vm3558_vm13, %v1814_v4, 0.0  ;;  %v1918_v23 = vmul.f32 %v1814_v4, %v1814_v4  ;;  %v1555_v45 = vpop.permute.xlu0 %1554  ;;  %v1464_v17 = vpop.permute.xlu1 %1463 }
 0x217   : > { %v1878_v3 = vadd.f32 %v1877_v46, %v1876_v40  ;;  %1596 = vst.msk [vmem:[#allocation3 + $0x38] sm:$0xff] %vm1588_vm15, %v1555_v45  ;;  %v1472_v27 = vpop.permute.xlu2 %1471 }
 0x218   : > { %v1934_v19 = vsel %vm3560_vm11, %v1918_v23, 0.0  ;;  %1501 = vst.msk [vmem:[#allocation3 + $0x58] sm:$0xff] %vm1489_vm8, %v1464_v17 }
 0x219   : > { %v1935_v42 = vadd.f32 %v1934_v19, %v1933_v58 }
 0x21e   : > { %v1670_v43 = vpop.permute.xlu0 %1669  ;;  %v1563_v60 = vpop.permute.xlu1 %1562 }
 0x21f   : > { %1711 = vst.msk [vmem:[#allocation3 + $0x38] sm:$0xff] %vm1703_vm0, %v1670_v43 }
 0x220   : > { %1600 = vst.msk [vmem:[#allocation3 + $0x58] sm:$0xff] %vm1588_vm15, %v1563_v60 }
 0x223   : > { %v3391_v5 = vpop.f32.mrf.mxu2 }
 0x224   : > { %1867 = vst.msk [vmem:[%s2445_s15 + $0x40] sm:$0xff] %vm3561_vm5, %v3391_v5  ;;  %v1925_v50 = vmul.f32 %v3391_v5, %v3391_v5 }
 0x226   : > { %v1678_v49 = vpop.permute.xlu0 %1677  ;;  %v1684_v35 = vpop.permute.xlu1 %1683  ;;  %v1727_v59 = vld [vmem:[#allocation3 + $0x38] sm:$0xff] }
 0x227   : > { %1715 = vst.msk [vmem:[#allocation3 + $0x58] sm:$0xff] %vm1703_vm0, %v1678_v49  ;;  %2242 = vmatmul.msk.f32.gmra.mxu1 %vm1741_vm2, %v1727_v59 }
 0x228   : > { %1718 = vst.msk [vmem:[#allocation3 + $0x70] sm:$0xff] %vm1703_vm0, %v1684_v35 }
 0x22e   : > { %v1242_v25 = vpop.permute.xlu0 %1241  ;;  %v1357_v33 = vpop.permute.xlu1 %1356  ;;  %v1731_v54 = vld [vmem:[#allocation3 + $0x58] sm:$0xff] }
 0x22f   : > { %1275 = vst.msk [vmem:[#allocation3 + $0x78] sm:$0xff] %vm1259_vm4, %v1242_v25  ;;  %2246 = vmatmul.msk.f32.gmra.mxu2 %vm1741_vm2, %v1731_v54  ;;  %v1734_v57 = vld [vmem:[#allocation3 + $0x70] sm:$0xff]  ;;  %vm3562_vm4 = vmmov %vm3555_vm3 }
 0x230   : > { %1390 = vst.msk [vmem:[#allocation3 + $0x78] sm:$0xff] %vm1374_vm6, %v1357_v33  ;;  %2249 = vmatmul.msk.f32.gmra.mxu3 %vm1741_vm2, %v1734_v57  ;;  %vm3563_vm6 = vmmov %vm3555_vm3 }
 0x231   : > { %1505 = vst.msk [vmem:[#allocation3 + $0x78] sm:$0xff] %vm1489_vm8, %v1472_v27  ;;  %vm3565_vm8 = vmmov %vm3555_vm3 }
 0x236   : > { %v1571_v7 = vpop.permute.xlu0 %1570  ;;  %v1686_v8 = vpop.permute.xlu1 %1685 }
 0x237   : > { %1604 = vst.msk [vmem:[#allocation3 + $0x78] sm:$0xff] %vm1588_vm15, %v1571_v7  ;;  %vm3566_vm15 = vmmov %vm3555_vm3 }
 0x238   : > { %1719 = vst.msk [vmem:[#allocation3 + $0x78] sm:$0xff] %vm1703_vm0, %v1686_v8  ;;  %vm3567_vm0 = vmmov %vm3555_vm3 }
 0x239   : > { %vm3569_vm1 = vmmov %vm3567_vm0 }
 0x23a   : > { %vm3570_vm12 = vmmov %vm3567_vm0 }
 0x23b   : > { %v1883_v14 = vsel %vm3570_vm12, %v1823_v29, 0.0  ;;  %vm3571_vm3 = vmmov %vm3567_vm0 }
 0x23c   : > { %vm3572_vm7 = vmmov %vm3567_vm0 }
 0x23d   : > { %v1940_v44 = vsel %vm3572_vm7, %v1921_v61, 0.0  ;;  %vm3573_vm9 = vmmov %vm3567_vm0 }
 0x23e   : > { %vm3574_vm13 = vmmov %vm3567_vm0 }
 0x23f   : > { %v1735_v10 = vld [vmem:[#allocation3 + $0x78] sm:$0xff]  ;;  %vm3575_vm14 = vmmov %vm3567_vm0 }
 0x240   : > { %2250 = vmatmul.msk.f32.gmra.mxu3 %vm1741_vm2, %v1735_v10  ;;  %vm3568_vm2 = vmmov %vm3567_vm0 }
 0x241   : > { %vm3576_vm11 = vmmov %vm3567_vm0 }
 0x242   : > { %vm3577_vm5 = vmmov %vm3567_vm0 }
 0x243   : > { %vm3585_vm12 = vmmov %vm3567_vm0 }
 0x244   : > { %v1826_v13 = vpop.f32.mrf.mxu1  ;;  %vm3587_vm7 = vmmov %vm3567_vm0 }
 0x245   : > { %v1817_v41 = vpop.f32.mrf.mxu0  ;;  %1864 = vst.msk [vmem:[%s2445_s15 + $0x28] sm:$0xff] %vm3562_vm4, %v1826_v13  ;;  %v1922_v32 = vmul.f32 %v1826_v13, %v1826_v13  ;;  %v1885_v48 = vsel %vm3573_vm9, %v1826_v13, 0.0  ;;  %vm3578_vm4 = vmmov %vm3567_vm0 }
 0x246   : > { %1861 = vst.msk [vmem:[%s2445_s15 + $0x10] sm:$0xff] %vm3563_vm6, %v1817_v41  ;;  %v1879_v21 = vsel %vm3564_vm10, %v1817_v41, 0.0  ;;  %v1919_v26 = vmul.f32 %v1817_v41, %v1817_v41  ;;  %vm3579_vm6 = vmmov %vm3567_vm0 }
 0x247   : > { %v1880_v28 = vadd.f32 %v1879_v21, %v1878_v3  ;;  %v1942_v16 = vsel %vm3574_vm13, %v1922_v32, 0.0  ;;  %vm3580_vm10 = vmmov %vm3567_vm0 }
 0x248   : > { %v1936_v53 = vsel %vm3565_vm8, %v1919_v26, 0.0  ;;  %vm3581_vm8 = vmmov %vm3567_vm0 }
 0x249   : > { %v1937_v34 = vadd.f32 %v1936_v53, %v1935_v42  ;;  %vm3588_vm9 = vmmov %vm3567_vm0 }
 0x24a   : > { %vm3589_vm13 = vmmov %vm3567_vm0 }
 0x252   : > { %v1838_v52 = vpop.f32.mrf.mxu2 }
 0x253   : > { %1868 = vst.msk [vmem:[%s2445_s15 + $0x48] sm:$0xff] %vm3566_vm15, %v1838_v52  ;;  %vm3582_vm15 = vmmov %vm3567_vm0  ;;  %v1926_v29 = vmul.f32 %v1838_v52, %v1838_v52 }
 0x254   : > { %v1847_v30 = vpop.f32.mrf.mxu3  ;;  %v1891_v2 = vsel %vm3582_vm15, %v3391_v5, 0.0  ;;  %vm3597_vm15 = vmmov %vm3567_vm0 }
 0x255   : > { %1871 = vst.msk [vmem:[%s2445_s15 + $0x60] sm:$0xff] %vm3567_vm0, %v1847_v30  ;;  %v1950_v58 = vsel %vm3585_vm12, %v1926_v29, 0.0  ;;  %v1929_v49 = vmul.f32 %v1847_v30, %v1847_v30  ;;  %vm1914_vm12 = vcmask 24576  }
 0x26e   : > { %v1820_v1 = vpop.f32.mrf.mxu0 }
 0x26f   : > { %1862 = vst.msk [vmem:[%s2445_s15 + $0x18] sm:$0xff] %vm3568_vm2, %v1820_v1  ;;  %v1881_v62 = vsel %vm3569_vm1, %v1820_v1, 0.0  ;;  %v1920_v11 = vmul.f32 %v1820_v1, %v1820_v1  ;;  %vm3583_vm2 = vmmov %vm3567_vm0 }
 0x270   : > { %v1882_v38 = vadd.f32 %v1881_v62, %v1880_v28  ;;  %v1948_v23 = vsel %vm3583_vm2, %v1925_v50, 0.0  ;;  %vm3584_vm1 = vmmov %vm3567_vm0 }
 0x271   : > { %v1938_v0 = vsel %vm3571_vm3, %v1920_v11, 0.0  ;;  %v1893_v45 = vsel %vm3584_vm1, %v1838_v52, 0.0  ;;  %vm3586_vm3 = vmmov %vm3567_vm0 }
 0x272   : > { %v1884_v39 = vadd.f32 %v1883_v14, %v1882_v38  ;;  %v1939_v31 = vadd.f32 %v1938_v0, %v1937_v34  ;;  %vm3598_vm2 = vmmov %vm3567_vm0 }
 0x273   : > { %vm3599_vm1 = vmmov %vm3567_vm0 }
 0x274   : > { %v1941_v51 = vadd.f32 %v1940_v44, %v1939_v31  ;;  %v1886_v6 = vadd.f32 %v1885_v48, %v1884_v39 }
 0x276   : > { %v1943_v56 = vadd.f32 %v1942_v16, %v1941_v51 }
 0x27c   : > { %v1829_v22 = vpop.f32.mrf.mxu1 }
 0x27d   : > { %1865 = vst.msk [vmem:[%s2445_s15 + $0x30] sm:$0xff] %vm3575_vm14, %v1829_v22  ;;  %v1923_v63 = vmul.f32 %v1829_v22, %v1829_v22  ;;  %v1887_v37 = vsel %vm3578_vm4, %v1829_v22, 0.0  ;;  %vm3590_vm14 = vmmov %vm3567_vm0 }
 0x27e   : > { %v1888_v24 = vadd.f32 %v1887_v37, %v1886_v6  ;;  %vm3593_vm4 = vmmov %vm3567_vm0 }
 0x27f   : > { %v1944_v9 = vsel %vm3579_vm6, %v1923_v63, 0.0  ;;  %v1956_v13 = vsel %vm3593_vm4, %v1929_v49, 0.0  ;;  %vm3594_vm6 = vmmov %vm3567_vm0 }
 0x280   : > { %v1945_v15 = vadd.f32 %v1944_v9, %v1943_v56  ;;  %v1916_v9 = vld [vmem:[%s3495_s6] sm:$0x1] }
 0x28a   : > { %v1841_v36 = vpop.f32.mrf.mxu2 }
 0x28b   : > { %1869 = vst.msk [vmem:[%s2445_s15 + $0x50] sm:$0xff] %vm3576_vm11, %v1841_v36  ;;  %v1850_v18 = vpop.f32.mrf.mxu3  ;;  %v1927_v42 = vmul.f32 %v1841_v36, %v1841_v36  ;;  %v1895_v43 = vsel %vm3586_vm3, %v1841_v36, 0.0  ;;  %vm3591_vm11 = vmmov %vm3567_vm0 }
 0x28c   : > { %1872 = vst.msk [vmem:[%s2445_s15 + $0x68] sm:$0xff] %vm3577_vm5, %v1850_v18  ;;  %v1899_v57 = vsel %vm3591_vm11, %v1847_v30, 0.0  ;;  %vm3592_vm5 = vmmov %vm3567_vm0  ;;  %v1930_v21 = vmul.f32 %v1850_v18, %v1850_v18  ;;  %v1901_v26 = vsel %vm3594_vm6, %v1850_v18, 0.0  ;;  %v1875_v18 = vld [vmem:[%s3494_s5] sm:$0x1] }
 0x28d   : > { %v1952_v35 = vsel %vm3587_vm7, %v1927_v42, 0.0 }
 0x2a4   : > { %v1832_v12 = vpop.f32.mrf.mxu1 }
 0x2a5   : > { %1866 = vst.msk [vmem:[%s2445_s15 + $0x38] sm:$0xff] %vm3580_vm10, %v1832_v12  ;;  %v1889_v20 = vsel %vm3581_vm8, %v1832_v12, 0.0  ;;  %v1924_v55 = vmul.f32 %v1832_v12, %v1832_v12  ;;  %vm3595_vm10 = vmmov %vm3567_vm0 }
 0x2a6   : > { %v1890_v47 = vadd.f32 %v1889_v20, %v1888_v24  ;;  %v1958_v53 = vsel %vm3595_vm10, %v1930_v21, 0.0  ;;  %vm3596_vm8 = vmmov %vm3567_vm0 }
 0x2a7   : > { %v1946_v4 = vsel %vm3567_vm0, %v1924_v55, 0.0 }
 0x2a8   : > { %v1892_v40 = vadd.f32 %v1891_v2, %v1890_v47  ;;  %v1947_v46 = vadd.f32 %v1946_v4, %v1945_v15 }
 0x2aa   : > { %v1949_v17 = vadd.f32 %v1948_v23, %v1947_v46  ;;  %v1894_v3 = vadd.f32 %v1893_v45, %v1892_v40 }
 0x2ac   : > { %v1951_v19 = vadd.f32 %v1950_v58, %v1949_v17  ;;  %v1896_v5 = vadd.f32 %v1895_v43, %v1894_v3 }
 0x2ae   : > { %v1953_v54 = vadd.f32 %v1952_v35, %v1951_v19 }
 0x2b2   : > { %v1844_v60 = vpop.f32.mrf.mxu2 }
 0x2b3   : > { %1870 = vst.msk [vmem:[%s2445_s15 + $0x58] sm:$0xff] %vm3588_vm9, %v1844_v60  ;;  %v1897_v59 = vsel %vm3589_vm13, %v1844_v60, 0.0  ;;  %v1928_v27 = vmul.f32 %v1844_v60, %v1844_v60  ;;  %v1853_v25 = vpop.f32.mrf.mxu3 }
 0x2b4   : > { %v1898_v33 = vadd.f32 %v1897_v59, %v1896_v5  ;;  %1873 = vst.msk [vmem:[%s2445_s15 + $0x70] sm:$0xff] %vm3590_vm14, %v1853_v25  ;;  %v1931_v34 = vmul.f32 %v1853_v25, %v1853_v25  ;;  %v1903_v1 = vsel %vm3596_vm8, %v1853_v25, 0.0 }
 0x2b5   : > { %v1954_v7 = vsel %vm3592_vm5, %v1928_v27, 0.0 }
 0x2b6   : > { %v1900_v8 = vadd.f32 %v1899_v57, %v1898_v33  ;;  %v1955_v10 = vadd.f32 %v1954_v7, %v1953_v54  ;;  %v1960_v62 = vsel %vm3597_vm15, %v1931_v34, 0.0 }
 0x2b8   : > { %v1957_v41 = vadd.f32 %v1956_v13, %v1955_v10  ;;  %v1902_v28 = vadd.f32 %v1901_v26, %v1900_v8 }
 0x2ba   : > { %v1959_v52 = vadd.f32 %v1958_v53, %v1957_v41  ;;  %v1904_v61 = vadd.f32 %v1903_v1, %v1902_v28 }
 0x2bc   : > { %v1961_v14 = vadd.f32 %v1960_v62, %v1959_v52 }
 0x2c3   : > { %v1856_v30 = vpop.f32.mrf.mxu3 }
 0x2c4   : > { %1874 = vst.msk [vmem:[%s2445_s15 + $0x78] sm:$0xff] %vm3567_vm0, %v1856_v30  ;;  %v1905_v11 = vsel %vm3598_vm2, %v1856_v30, 0.0  ;;  %v1932_v38 = vmul.f32 %v1856_v30, %v1856_v30 }
 0x2c5   : > { %v1906_v32 = vadd.f32 %v1905_v11, %v1904_v61 }
 0x2c6   : > { %v1962_v0 = vsel %vm3599_vm1, %v1932_v38, 0.0 }
 0x2c7   : > { %v1907_v39 = vrot.slane %v1906_v32, 4  ;;  %v1963_v31 = vadd.f32 %v1962_v0, %v1961_v14 }
 0x2c9   : > { %v1908_v44 = vadd.f32 %v1907_v39, %v1906_v32  ;;  %v1964_v48 = vrot.slane %v1963_v31, 4 }
 0x2cb   : > { %v1909_v51 = vrot.slane %v1908_v44, 2  ;;  %v1965_v6 = vadd.f32 %v1964_v48, %v1963_v31 }
 0x2cd   : > { %v1910_v16 = vadd.f32 %v1909_v51, %v1908_v44  ;;  %v1966_v56 = vrot.slane %v1965_v6, 2 }
 0x2cf   : > { %v1911_v22 = vrot.slane %v1910_v16, 1  ;;  %v1967_v36 = vadd.f32 %v1966_v56, %v1965_v6 }
 0x2d1   : > { %v1912_v63 = vadd.f32 %v1911_v22, %v1910_v16  ;;  %v1968_v37 = vrot.slane %v1967_v36, 1 }
 0x2d3   : > { %v1913_v24 = vadd.f32 %v1912_v63, %v1875_v18  ;;  %v1969_v12 = vadd.f32 %v1968_v37, %v1967_v36 }
 0x2d5   : > { %1915 = vst.msk [vmem:[%s3494_s5] sm:$0x1] %vm1914_vm12, %v1913_v24  ;;  %v1970_v50 = vadd.f32 %v1969_v12, %v1916_v9 }
 0x2d7   : > { %1971 = vst.msk [vmem:[%s3495_s6] sm:$0x1] %vm1914_vm12, %v1970_v50 }
 0x2d8 PF: > { %s17_s25 = sadd.s32 1, %s2357_s25   ;;  %s3600_s21 = smov %s2349_s23 }
 0x2d9   : > { %p14_p11 = scmp.ge.s32.totalorder %s17_s25, 6   ;;  %s3601_s22 = smov %s2353_s24 }
 0x2da   : > { %s3602_s23 = smov %s3605_s26  ;;  %s3603_s24 = smov %s3609_s27 }
 0x2db   :  { %16 = sbr.rel (!%p14_p11) target bundleno = 3 (0x3), region = 99 }

</bundles_post_ra>
